<compile_context>
chip_gen: v7x
topology: tpu7x:2x2x1
jax: 0.10.0
libtpu: 0.0.40
codegen_flags: <defaults>
</compile_context>

<pallas_src>
import jax
import jax.numpy as jnp
from jax.experimental import pallas as pl
from jax.experimental.pallas import tpu as pltpu

LATENT_DIMS = 2
IN_DIM = 784
PAD_IN = 896          # 7 * 128 -> lane-dense loads / unmasked stores
HID_DIM = 512


def _round_up(x, m):
    return (x + m - 1) // m * m


def _choose_bt(B, block_b, min_grid_steps):
    # Big enough to fill the 256-wide MXUs (v6e/v7x), small enough that the
    # batch grid has >= min_grid_steps steps so both v7x TensorCores get work.
    bt = _round_up(max(1, pl.cdiv(B, min_grid_steps)), 8)
    return max(8, min(block_b, bt))


def vae_kernel(x_ref,
               w_fc_ref, b_fc_ref,
               w_ms_ref, b_ms_ref,
               eps_ref,
               w_d1_ref, b_d1_ref,
               w_d2_ref, b_d2_ref,
               out_ref, kl_ref):
    # ----- encoder -----
    # (Bt, 896) bf16 @ (896, 512) bf16 -> f32 accumulate on the MXU.
    h = jnp.dot(x_ref[...], w_fc_ref[...], preferred_element_type=jnp.float32)
    h = jnp.maximum(h + b_fc_ref[...], 0.0)                        # (Bt, 512) f32

    # Fused mu||sigma projection (N = 2*latent = 4): one small MXU pass.
    # NOTE: default dot precision; pass precision=jax.lax.Precision.HIGHEST
    # here if bit-level f32 fidelity of mu/sigma/KL is required (cheap, N=4).
    ms = jnp.dot(h, w_ms_ref[...],
                 preferred_element_type=jnp.float32) + b_ms_ref[...]   # (Bt, 2L)
    mu = ms[:, :LATENT_DIMS]
    sigma = ms[:, LATENT_DIMS:]                                     # raw, no exp (as in torch ref)

    z = mu + sigma * eps_ref[...]                                   # (Bt, L) f32

    # Per-row KL partials; reduced in the wrapper over *real* rows only
    # (padded batch rows yield garbage/NaN and must stay sliced off there).
    kl_ref[...] = jnp.sum(sigma * sigma + mu * mu - jnp.log(sigma) - 0.5,
                          axis=1, keepdims=True)                    # (Bt, 1) f32

    # ----- decoder -----
    # First layer has K = latent = 2: VPU broadcast-FMAs (free filler while
    # the MXU is busy with the two big matmuls).
    w_d1 = w_d1_ref[...]                                            # (L, 512) f32
    acc = z[:, 0:1] * w_d1[0:1, :]
    for l in range(1, LATENT_DIMS):
        acc = acc + z[:, l:l + 1] * w_d1[l:l + 1, :]
    d = jnp.maximum(acc + b_d1_ref[...], 0.0)                       # (Bt, 512) f32

    # (Bt, 512) bf16 @ (512, 896) bf16 -> f32, sigmoid, bf16 store.
    logits = jnp.dot(d.astype(jnp.bfloat16), w_d2_ref[...],
                     preferred_element_type=jnp.float32) + b_d2_ref[...]
    out_ref[...] = jax.nn.sigmoid(logits).astype(out_ref.dtype)     # (Bt, 896) bf16


def _build_specs(Bt, single_buffer_weights):
    if single_buffer_weights:
        # Weights never change across batch tiles -> no need to double-buffer.
        def const(shape):
            return pl.BlockSpec(shape, lambda i: (0, 0),
                                pipeline_mode=pl.Buffered(1))
    else:
        def const(shape):
            return pl.BlockSpec(shape, lambda i: (0, 0))

    in_specs = [
        pl.BlockSpec((Bt, PAD_IN), lambda i: (i, 0)),        # x (bf16)
        const((PAD_IN, HID_DIM)),                            # w_fc  (bf16)
        const((1, HID_DIM)),                                 # b_fc
        const((HID_DIM, 2 * LATENT_DIMS)),                   # w_mu||w_sigma
        const((1, 2 * LATENT_DIMS)),                         # b_mu||b_sigma
        pl.BlockSpec((Bt, LATENT_DIMS), lambda i: (i, 0)),   # eps
        const((LATENT_DIMS, HID_DIM)),                       # w_d1
        const((1, HID_DIM)),                                 # b_d1
        const((HID_DIM, PAD_IN)),                            # w_d2 (bf16)
        const((1, PAD_IN)),                                  # b_d2
    ]
    out_specs = (
        pl.BlockSpec((Bt, PAD_IN), lambda i: (i, 0)),        # recon (lane-dense, bf16)
        pl.BlockSpec((Bt, 1), lambda i: (i, 0)),             # per-row KL partials
    )
    return in_specs, out_specs


def prepack_params(params):
    """One-time repack of the params for the kernel — cache and reuse.

    Pads the 784 feature dim to 896 (lane-dense), fuses the mu/sigma
    projections into a single (512, 2L) matrix, and stores the two big
    weights in bf16 (inputs to those matmuls are bf16, f32 MXU accumulate).
    """
    return dict(
        w_fc=jnp.pad(params["w_fc"],
                     ((0, PAD_IN - IN_DIM), (0, 0))).astype(jnp.bfloat16),
        b_fc=params["b_fc"],
        w_ms=jnp.concatenate([params["w_mu"], params["w_sg"]], axis=1),   # (512, 2L) f32
        b_ms=jnp.concatenate([params["b_mu"], params["b_sg"]], axis=1),   # (1, 2L)  f32
        w_d1=params["w_d1"],
        b_d1=params["b_d1"],
        w_d2=jnp.pad(params["w_d2"],
                     ((0, 0), (0, PAD_IN - IN_DIM))).astype(jnp.bfloat16),
        b_d2=jnp.pad(params["b_d2"], ((0, 0), (0, PAD_IN - IN_DIM))),
    )


def vae_forward(x, packed, eps, *, block_b=256, min_grid_steps=4):
    """x: (B, 784), eps: (B, latent), packed: prepack_params(init_params(...)).

    Returns (recon (B, 784) bf16, kl scalar f32).
    """
    B = x.shape[0]
    Bt = _choose_bt(B, block_b, min_grid_steps)
    B_pad = _round_up(B, Bt)
    grid_n = B_pad // Bt

    # Per-call activation plumbing only (weights are prepacked once).
    # x goes in as bf16: halves the input DMA and removes the in-kernel cast.
    xp = jnp.pad(x, ((0, B_pad - B), (0, PAD_IN - IN_DIM))).astype(jnp.bfloat16)
    epsp = jnp.pad(eps, ((0, B_pad - B), (0, 0))).astype(jnp.float32)

    args = (xp, packed["w_fc"], packed["b_fc"], packed["w_ms"], packed["b_ms"],
            epsp, packed["w_d1"], packed["b_d1"], packed["w_d2"], packed["b_d2"])
    out_shape = (
        jax.ShapeDtypeStruct((B_pad, PAD_IN), jnp.bfloat16),   # recon (bf16 store)
        jax.ShapeDtypeStruct((B_pad, 1), jnp.float32),         # per-row KL
    )

    last_err = None
    for single_buffer_weights in (True, False):
        in_specs, out_specs = _build_specs(Bt, single_buffer_weights)
        try:
            out_pad, kl_rows = pl.pallas_call(
                vae_kernel,
                grid=(grid_n,),
                in_specs=in_specs,
                out_specs=out_specs,
                out_shape=out_shape,
                compiler_params=pltpu.CompilerParams(
                    dimension_semantics=("parallel",)),
            )(*args)
            break
        except Exception as e:   # pl.Buffered(1) unsupported -> default buffering
            last_err = e
    else:
        raise last_err

    recon = out_pad[:B, :IN_DIM]
    kl = jnp.sum(kl_rows[:B, 0])   # padded rows (garbage/NaN) stay sliced off
    return recon, kl


def init_params(key):
    """Deterministic init mimicking torch.nn.Linear default (U[-1/sqrt(fan_in), +])."""
    def linear(k, fan_in, fan_out):
        kw, kb = jax.random.split(k)
        bound = 1.0 / jnp.sqrt(fan_in)
        # stored as (in, out) so the kernel does x @ W
        w = jax.random.uniform(kw, (fan_in, fan_out), jnp.float32, -bound, bound)
        b = jax.random.uniform(kb, (1, fan_out), jnp.float32, -bound, bound)
        return w, b

    k = jax.random.split(key, 5)
    w_fc, b_fc = linear(k[0], IN_DIM, HID_DIM)
    w_mu, b_mu = linear(k[1], HID_DIM, LATENT_DIMS)
    w_sg, b_sg = linear(k[2], HID_DIM, LATENT_DIMS)
    w_d1, b_d1 = linear(k[3], LATENT_DIMS, HID_DIM)
    w_d2, b_d2 = linear(k[4], HID_DIM, IN_DIM)
    return dict(w_fc=w_fc, b_fc=b_fc, w_mu=w_mu, b_mu=b_mu,
                w_sg=w_sg, b_sg=b_sg, w_d1=w_d1, b_d1=b_d1,
                w_d2=w_d2, b_d2=b_d2)


if __name__ == "__main__":
    key = jax.random.PRNGKey(0)
    k_param, k_x, k_eps = jax.random.split(key, 3)

    B = 8  # small batch
    params = init_params(k_param)
    packed = prepack_params(params)     # one-time weight repack, cached with params

    x = jax.random.uniform(k_x, (B, IN_DIM), jnp.float32)          # flattened 28x28
    eps = jax.random.normal(k_eps, (B, LATENT_DIMS), jnp.float32)  # N(0,1) sample
    # TODO(synk): torch draws eps via torch.distributions.Normal inside forward;
    # here it is an explicit input (no in-kernel RNG needed).

    recon, kl = vae_forward(x, packed, eps)
    recon = jax.block_until_ready(recon)
    kl = jax.block_until_ready(kl)

    assert recon.shape == (B, IN_DIM)
    assert recon.dtype == jnp.bfloat16
    assert kl.shape == ()
    print("KERNEL_OK")
</pallas_src>

<mosaic_0001>
module attributes {stable_mosaic.version = 11 : i64} {
  func.func @vae_kernel(%arg0: i32, %arg1: memref<8x896xbf16, #tpu.memory_space<vmem>>, %arg2: memref<896x512xbf16, #tpu.memory_space<vmem>>, %arg3: memref<1x512xf32, #tpu.memory_space<vmem>>, %arg4: memref<512x4xf32, #tpu.memory_space<vmem>>, %arg5: memref<1x4xf32, #tpu.memory_space<vmem>>, %arg6: memref<8x2xf32, #tpu.memory_space<vmem>>, %arg7: memref<2x512xf32, #tpu.memory_space<vmem>>, %arg8: memref<1x512xf32, #tpu.memory_space<vmem>>, %arg9: memref<512x896xbf16, #tpu.memory_space<vmem>>, %arg10: memref<1x896xf32, #tpu.memory_space<vmem>>, %arg11: memref<8x896xbf16, #tpu.memory_space<vmem>>, %arg12: memref<8x1xf32, #tpu.memory_space<vmem>>) attributes {dimension_semantics = [#tpu.dimension_semantics<parallel>], iteration_bounds = array<i64: 1>, scalar_prefetch = 0 : i64, scratch_operands = 0 : i64, tpu.core_type = #tpu.core_type<tc>, window_params = [{transform_indices = @transform_0, window_bounds = array<i64: 8, 896>}, {pipeline_mode = #tpu.pipeline_mode<synchronous>, transform_indices = @transform_1, window_bounds = array<i64: 896, 512>}, {pipeline_mode = #tpu.pipeline_mode<synchronous>, transform_indices = @transform_2, window_bounds = array<i64: 1, 512>}, {pipeline_mode = #tpu.pipeline_mode<synchronous>, transform_indices = @transform_3, window_bounds = array<i64: 512, 4>}, {pipeline_mode = #tpu.pipeline_mode<synchronous>, transform_indices = @transform_4, window_bounds = array<i64: 1, 4>}, {transform_indices = @transform_5, window_bounds = array<i64: 8, 2>}, {pipeline_mode = #tpu.pipeline_mode<synchronous>, transform_indices = @transform_6, window_bounds = array<i64: 2, 512>}, {pipeline_mode = #tpu.pipeline_mode<synchronous>, transform_indices = @transform_7, window_bounds = array<i64: 1, 512>}, {pipeline_mode = #tpu.pipeline_mode<synchronous>, transform_indices = @transform_8, window_bounds = array<i64: 512, 896>}, {pipeline_mode = #tpu.pipeline_mode<synchronous>, transform_indices = @transform_9, window_bounds = array<i64: 1, 896>}, {transform_indices = @transform_10, window_bounds = array<i64: 8, 896>}, {transform_indices = @transform_11, window_bounds = array<i64: 8, 1>}]} {
    %c0 = arith.constant 0 : index
    %c0_0 = arith.constant 0 : index
    %0 = vector.load %arg1[%c0, %c0_0] : memref<8x896xbf16, #tpu.memory_space<vmem>>, vector<8x896xbf16>
    %c0_1 = arith.constant 0 : index
    %c0_2 = arith.constant 0 : index
    %1 = vector.load %arg2[%c0_1, %c0_2] : memref<896x512xbf16, #tpu.memory_space<vmem>>, vector<896x512xbf16>
    %cst = arith.constant dense<0.000000e+00> : vector<8x512xf32>
    %2 = tpu.matmul %0, %1, %cst {dimension_numbers = #tpu.dot_dimension_numbers<[1], [0], [0], [1], [0, 0, 1, 1], [], []>} : vector<8x896xbf16>, vector<896x512xbf16>, vector<8x512xf32> -> vector<8x512xf32>
    %c0_3 = arith.constant 0 : index
    %c0_4 = arith.constant 0 : index
    %3 = vector.load %arg3[%c0_3, %c0_4] : memref<1x512xf32, #tpu.memory_space<vmem>>, vector<1x512xf32>
    %4 = vector.broadcast %3 : vector<1x512xf32> to vector<8x512xf32>
    %5 = arith.addf %2, %4 : vector<8x512xf32>
    %cst_5 = arith.constant 0.000000e+00 : f32
    %6 = vector.broadcast %cst_5 : f32 to vector<8x512xf32>
    %7 = arith.maximumf %5, %6 : vector<8x512xf32>
    %c0_6 = arith.constant 0 : index
    %c0_7 = arith.constant 0 : index
    %8 = vector.load %arg4[%c0_6, %c0_7] : memref<512x4xf32, #tpu.memory_space<vmem>>, vector<512x4xf32>
    %cst_8 = arith.constant dense<0.000000e+00> : vector<8x4xf32>
    %9 = tpu.matmul %7, %8, %cst_8 {dimension_numbers = #tpu.dot_dimension_numbers<[1], [0], [0], [1], [0, 0, 1, 1], [], []>} : vector<8x512xf32>, vector<512x4xf32>, vector<8x4xf32> -> vector<8x4xf32>
    %c0_9 = arith.constant 0 : index
    %c0_10 = arith.constant 0 : index
    %10 = vector.load %arg5[%c0_9, %c0_10] : memref<1x4xf32, #tpu.memory_space<vmem>>, vector<1x4xf32>
    %11 = vector.broadcast %10 : vector<1x4xf32> to vector<8x4xf32>
    %12 = arith.addf %9, %11 : vector<8x4xf32>
    %13 = vector.extract_strided_slice %12 {offsets = [0, 0], sizes = [8, 2], strides = [1, 1]} : vector<8x4xf32> to vector<8x2xf32>
    %14 = vector.extract_strided_slice %12 {offsets = [0, 2], sizes = [8, 2], strides = [1, 1]} : vector<8x4xf32> to vector<8x2xf32>
    %c0_11 = arith.constant 0 : index
    %c0_12 = arith.constant 0 : index
    %15 = vector.load %arg6[%c0_11, %c0_12] : memref<8x2xf32, #tpu.memory_space<vmem>>, vector<8x2xf32>
    %16 = arith.mulf %14, %15 : vector<8x2xf32>
    %17 = arith.addf %13, %16 : vector<8x2xf32>
    %18 = arith.mulf %14, %14 : vector<8x2xf32>
    %19 = arith.mulf %13, %13 : vector<8x2xf32>
    %20 = arith.addf %18, %19 : vector<8x2xf32>
    %21 = math.log %14 : vector<8x2xf32>
    %22 = arith.subf %20, %21 : vector<8x2xf32>
    %cst_13 = arith.constant 5.000000e-01 : f32
    %23 = vector.broadcast %cst_13 : f32 to vector<8x2xf32>
    %24 = arith.subf %22, %23 : vector<8x2xf32>
    %cst_14 = arith.constant dense<0.000000e+00> : vector<8xf32>
    %25 = vector.multi_reduction <add>, %24, %cst_14 [1] : vector<8x2xf32> to vector<8xf32>
    %26 = vector.shape_cast %25 : vector<8xf32> to vector<8x1xf32>
    %c0_15 = arith.constant 0 : index
    %c0_16 = arith.constant 0 : index
    %27 = vector.load %arg12[%c0_15, %c0_16] : memref<8x1xf32, #tpu.memory_space<vmem>>, vector<8x1xf32>
    tpu.vector_store %arg12[%c0_15, %c0_16], %26 {strides = array<i32>} : memref<8x1xf32, #tpu.memory_space<vmem>>, vector<8x1xf32>,
    %c0_17 = arith.constant 0 : index
    %c0_18 = arith.constant 0 : index
    %28 = vector.load %arg7[%c0_17, %c0_18] : memref<2x512xf32, #tpu.memory_space<vmem>>, vector<2x512xf32>
    %29 = vector.extract_strided_slice %17 {offsets = [0, 0], sizes = [8, 1], strides = [1, 1]} : vector<8x2xf32> to vector<8x1xf32>
    %30 = vector.extract_strided_slice %28 {offsets = [0, 0], sizes = [1, 512], strides = [1, 1]} : vector<2x512xf32> to vector<1x512xf32>
    %31 = vector.broadcast %29 : vector<8x1xf32> to vector<8x512xf32>
    %32 = vector.broadcast %30 : vector<1x512xf32> to vector<8x512xf32>
    %33 = arith.mulf %31, %32 : vector<8x512xf32>
    %34 = vector.extract_strided_slice %17 {offsets = [0, 1], sizes = [8, 1], strides = [1, 1]} : vector<8x2xf32> to vector<8x1xf32>
    %35 = vector.extract_strided_slice %28 {offsets = [1, 0], sizes = [1, 512], strides = [1, 1]} : vector<2x512xf32> to vector<1x512xf32>
    %36 = vector.broadcast %34 : vector<8x1xf32> to vector<8x512xf32>
    %37 = vector.broadcast %35 : vector<1x512xf32> to vector<8x512xf32>
    %38 = arith.mulf %36, %37 : vector<8x512xf32>
    %39 = arith.addf %33, %38 : vector<8x512xf32>
    %c0_19 = arith.constant 0 : index
    %c0_20 = arith.constant 0 : index
    %40 = vector.load %arg8[%c0_19, %c0_20] : memref<1x512xf32, #tpu.memory_space<vmem>>, vector<1x512xf32>
    %41 = vector.broadcast %40 : vector<1x512xf32> to vector<8x512xf32>
    %42 = arith.addf %39, %41 : vector<8x512xf32>
    %cst_21 = arith.constant 0.000000e+00 : f32
    %43 = vector.broadcast %cst_21 : f32 to vector<8x512xf32>
    %44 = arith.maximumf %42, %43 : vector<8x512xf32>
    %45 = arith.truncf %44 : vector<8x512xf32> to vector<8x512xbf16>
    %c0_22 = arith.constant 0 : index
    %c0_23 = arith.constant 0 : index
    %46 = vector.load %arg9[%c0_22, %c0_23] : memref<512x896xbf16, #tpu.memory_space<vmem>>, vector<512x896xbf16>
    %cst_24 = arith.constant dense<0.000000e+00> : vector<8x896xf32>
    %47 = tpu.matmul %45, %46, %cst_24 {dimension_numbers = #tpu.dot_dimension_numbers<[1], [0], [0], [1], [0, 0, 1, 1], [], []>} : vector<8x512xbf16>, vector<512x896xbf16>, vector<8x896xf32> -> vector<8x896xf32>
    %c0_25 = arith.constant 0 : index
    %c0_26 = arith.constant 0 : index
    %48 = vector.load %arg10[%c0_25, %c0_26] : memref<1x896xf32, #tpu.memory_space<vmem>>, vector<1x896xf32>
    %49 = vector.broadcast %48 : vector<1x896xf32> to vector<8x896xf32>
    %50 = arith.addf %47, %49 : vector<8x896xf32>
    %51 = arith.negf %50 : vector<8x896xf32>
    %52 = math.exp %51 : vector<8x896xf32>
    %cst_27 = arith.constant 1.000000e+00 : f32
    %53 = vector.broadcast %cst_27 : f32 to vector<8x896xf32>
    %54 = arith.addf %53, %52 : vector<8x896xf32>
    %55 = arith.divf %53, %54 : vector<8x896xf32>
    %56 = arith.truncf %55 : vector<8x896xf32> to vector<8x896xbf16>
    %c0_28 = arith.constant 0 : index
    %c0_29 = arith.constant 0 : index
    %57 = vector.load %arg11[%c0_28, %c0_29] : memref<8x896xbf16, #tpu.memory_space<vmem>>, vector<8x896xbf16>
    tpu.vector_store %arg11[%c0_28, %c0_29], %56 {strides = array<i32>} : memref<8x896xbf16, #tpu.memory_space<vmem>>, vector<8x896xbf16>,
    return
  }
  func.func @transform_0(%arg0: i32) -> (i32, i32) {
    %c0_i32 = arith.constant 0 : i32
    %c0_i32_0 = arith.constant 0 : i32
    return %arg0, %c0_i32 : i32, i32
  }
  func.func @transform_1(%arg0: i32) -> (i32, i32) {
    %c0_i32 = arith.constant 0 : i32
    %c0_i32_0 = arith.constant 0 : i32
    %c0_i32_1 = arith.constant 0 : i32
    return %c0_i32, %c0_i32_0 : i32, i32
  }
  func.func @transform_2(%arg0: i32) -> (i32, i32) {
    %c0_i32 = arith.constant 0 : i32
    %c0_i32_0 = arith.constant 0 : i32
    %c0_i32_1 = arith.constant 0 : i32
    return %c0_i32, %c0_i32_0 : i32, i32
  }
  func.func @transform_3(%arg0: i32) -> (i32, i32) {
    %c0_i32 = arith.constant 0 : i32
    %c0_i32_0 = arith.constant 0 : i32
    %c0_i32_1 = arith.constant 0 : i32
    return %c0_i32, %c0_i32_0 : i32, i32
  }
  func.func @transform_4(%arg0: i32) -> (i32, i32) {
    %c0_i32 = arith.constant 0 : i32
    %c0_i32_0 = arith.constant 0 : i32
    %c0_i32_1 = arith.constant 0 : i32
    return %c0_i32, %c0_i32_0 : i32, i32
  }
  func.func @transform_5(%arg0: i32) -> (i32, i32) {
    %c0_i32 = arith.constant 0 : i32
    %c0_i32_0 = arith.constant 0 : i32
    return %arg0, %c0_i32 : i32, i32
  }
  func.func @transform_6(%arg0: i32) -> (i32, i32) {
    %c0_i32 = arith.constant 0 : i32
    %c0_i32_0 = arith.constant 0 : i32
    %c0_i32_1 = arith.constant 0 : i32
    return %c0_i32, %c0_i32_0 : i32, i32
  }
  func.func @transform_7(%arg0: i32) -> (i32, i32) {
    %c0_i32 = arith.constant 0 : i32
    %c0_i32_0 = arith.constant 0 : i32
    %c0_i32_1 = arith.constant 0 : i32
    return %c0_i32, %c0_i32_0 : i32, i32
  }
  func.func @transform_8(%arg0: i32) -> (i32, i32) {
    %c0_i32 = arith.constant 0 : i32
    %c0_i32_0 = arith.constant 0 : i32
    %c0_i32_1 = arith.constant 0 : i32
    return %c0_i32, %c0_i32_0 : i32, i32
  }
  func.func @transform_9(%arg0: i32) -> (i32, i32) {
    %c0_i32 = arith.constant 0 : i32
    %c0_i32_0 = arith.constant 0 : i32
    %c0_i32_1 = arith.constant 0 : i32
    return %c0_i32, %c0_i32_0 : i32, i32
  }
  func.func @transform_10(%arg0: i32) -> (i32, i32) {
    %c0_i32 = arith.constant 0 : i32
    %c0_i32_0 = arith.constant 0 : i32
    return %arg0, %c0_i32 : i32, i32
  }
  func.func @transform_11(%arg0: i32) -> (i32, i32) {
    %c0_i32 = arith.constant 0 : i32
    %c0_i32_0 = arith.constant 0 : i32
    return %arg0, %c0_i32 : i32, i32
  }
}

module attributes {stable_mosaic.version = 11 : i64} {
  func.func @vae_kernel(%arg0: i32, %arg1: memref<8x896xbf16, #tpu.memory_space<vmem>>, %arg2: memref<896x512xbf16, #tpu.memory_space<vmem>>, %arg3: memref<1x512xf32, #tpu.memory_space<vmem>>, %arg4: memref<512x4xf32, #tpu.memory_space<vmem>>, %arg5: memref<1x4xf32, #tpu.memory_space<vmem>>, %arg6: memref<8x2xf32, #tpu.memory_space<vmem>>, %arg7: memref<2x512xf32, #tpu.memory_space<vmem>>, %arg8: memref<1x512xf32, #tpu.memory_space<vmem>>, %arg9: memref<512x896xbf16, #tpu.memory_space<vmem>>, %arg10: memref<1x896xf32, #tpu.memory_space<vmem>>, %arg11: memref<8x896xbf16, #tpu.memory_space<vmem>>, %arg12: memref<8x1xf32, #tpu.memory_space<vmem>>) attributes {dimension_semantics = [#tpu.dimension_semantics<parallel>], iteration_bounds = array<i64: 1>, scalar_prefetch = 0 : i64, scratch_operands = 0 : i64, tpu.core_type = #tpu.core_type<tc>, window_params = [{transform_indices = @transform_0, window_bounds = array<i64: 8, 896>}, {pipeline_mode = #tpu.pipeline_mode<synchronous>, transform_indices = @transform_1, window_bounds = array<i64: 896, 512>}, {pipeline_mode = #tpu.pipeline_mode<synchronous>, transform_indices = @transform_2, window_bounds = array<i64: 1, 512>}, {pipeline_mode = #tpu.pipeline_mode<synchronous>, transform_indices = @transform_3, window_bounds = array<i64: 512, 4>}, {pipeline_mode = #tpu.pipeline_mode<synchronous>, transform_indices = @transform_4, window_bounds = array<i64: 1, 4>}, {transform_indices = @transform_5, window_bounds = array<i64: 8, 2>}, {pipeline_mode = #tpu.pipeline_mode<synchronous>, transform_indices = @transform_6, window_bounds = array<i64: 2, 512>}, {pipeline_mode = #tpu.pipeline_mode<synchronous>, transform_indices = @transform_7, window_bounds = array<i64: 1, 512>}, {pipeline_mode = #tpu.pipeline_mode<synchronous>, transform_indices = @transform_8, window_bounds = array<i64: 512, 896>}, {pipeline_mode = #tpu.pipeline_mode<synchronous>, transform_indices = @transform_9, window_bounds = array<i64: 1, 896>}, {transform_indices = @transform_10, window_bounds = array<i64: 8, 896>}, {transform_indices = @transform_11, window_bounds = array<i64: 8, 1>}]} {
    %c0 = arith.constant 0 : index
    %c0_0 = arith.constant 0 : index
    %0 = vector.load %arg1[%c0, %c0_0] : memref<8x896xbf16, #tpu.memory_space<vmem>>, vector<8x896xbf16>
    %c0_1 = arith.constant 0 : index
    %c0_2 = arith.constant 0 : index
    %1 = vector.load %arg2[%c0_1, %c0_2] : memref<896x512xbf16, #tpu.memory_space<vmem>>, vector<896x512xbf16>
    %cst = arith.constant dense<0.000000e+00> : vector<8x512xf32>
    %2 = tpu.matmul %0, %1, %cst {dimension_numbers = #tpu.dot_dimension_numbers<[1], [0], [0], [1], [0, 0, 1, 1], [], []>} : vector<8x896xbf16>, vector<896x512xbf16>, vector<8x512xf32> -> vector<8x512xf32>
    %c0_3 = arith.constant 0 : index
    %c0_4 = arith.constant 0 : index
    %3 = vector.load %arg3[%c0_3, %c0_4] : memref<1x512xf32, #tpu.memory_space<vmem>>, vector<1x512xf32>
    %4 = vector.broadcast %3 : vector<1x512xf32> to vector<8x512xf32>
    %5 = arith.addf %2, %4 : vector<8x512xf32>
    %cst_5 = arith.constant 0.000000e+00 : f32
    %6 = vector.broadcast %cst_5 : f32 to vector<8x512xf32>
    %7 = arith.maximumf %5, %6 : vector<8x512xf32>
    %c0_6 = arith.constant 0 : index
    %c0_7 = arith.constant 0 : index
    %8 = vector.load %arg4[%c0_6, %c0_7] : memref<512x4xf32, #tpu.memory_space<vmem>>, vector<512x4xf32>
    %cst_8 = arith.constant dense<0.000000e+00> : vector<8x4xf32>
    %9 = tpu.matmul %7, %8, %cst_8 {dimension_numbers = #tpu.dot_dimension_numbers<[1], [0], [0], [1], [0, 0, 1, 1], [], []>} : vector<8x512xf32>, vector<512x4xf32>, vector<8x4xf32> -> vector<8x4xf32>
    %c0_9 = arith.constant 0 : index
    %c0_10 = arith.constant 0 : index
    %10 = vector.load %arg5[%c0_9, %c0_10] : memref<1x4xf32, #tpu.memory_space<vmem>>, vector<1x4xf32>
    %11 = vector.broadcast %10 : vector<1x4xf32> to vector<8x4xf32>
    %12 = arith.addf %9, %11 : vector<8x4xf32>
    %13 = vector.extract_strided_slice %12 {offsets = [0, 0], sizes = [8, 2], strides = [1, 1]} : vector<8x4xf32> to vector<8x2xf32>
    %14 = vector.extract_strided_slice %12 {offsets = [0, 2], sizes = [8, 2], strides = [1, 1]} : vector<8x4xf32> to vector<8x2xf32>
    %c0_11 = arith.constant 0 : index
    %c0_12 = arith.constant 0 : index
    %15 = vector.load %arg6[%c0_11, %c0_12] : memref<8x2xf32, #tpu.memory_space<vmem>>, vector<8x2xf32>
    %16 = arith.mulf %14, %15 : vector<8x2xf32>
    %17 = arith.addf %13, %16 : vector<8x2xf32>
    %18 = arith.mulf %14, %14 : vector<8x2xf32>
    %19 = arith.mulf %13, %13 : vector<8x2xf32>
    %20 = arith.addf %18, %19 : vector<8x2xf32>
    %21 = math.log %14 : vector<8x2xf32>
    %22 = arith.subf %20, %21 : vector<8x2xf32>
    %cst_13 = arith.constant 5.000000e-01 : f32
    %23 = vector.broadcast %cst_13 : f32 to vector<8x2xf32>
    %24 = arith.subf %22, %23 : vector<8x2xf32>
    %cst_14 = arith.constant dense<0.000000e+00> : vector<8xf32>
    %25 = vector.multi_reduction <add>, %24, %cst_14 [1] : vector<8x2xf32> to vector<8xf32>
    %26 = vector.shape_cast %25 : vector<8xf32> to vector<8x1xf32>
    %c0_15 = arith.constant 0 : index
    %c0_16 = arith.constant 0 : index
    %27 = vector.load %arg12[%c0_15, %c0_16] : memref<8x1xf32, #tpu.memory_space<vmem>>, vector<8x1xf32>
    tpu.vector_store %arg12[%c0_15, %c0_16], %26 {strides = array<i32>} : memref<8x1xf32, #tpu.memory_space<vmem>>, vector<8x1xf32>,
    %c0_17 = arith.constant 0 : index
    %c0_18 = arith.constant 0 : index
    %28 = vector.load %arg7[%c0_17, %c0_18] : memref<2x512xf32, #tpu.memory_space<vmem>>, vector<2x512xf32>
    %29 = vector.extract_strided_slice %17 {offsets = [0, 0], sizes = [8, 1], strides = [1, 1]} : vector<8x2xf32> to vector<8x1xf32>
    %30 = vector.extract_strided_slice %28 {offsets = [0, 0], sizes = [1, 512], strides = [1, 1]} : vector<2x512xf32> to vector<1x512xf32>
    %31 = vector.broadcast %29 : vector<8x1xf32> to vector<8x512xf32>
    %32 = vector.broadcast %30 : vector<1x512xf32> to vector<8x512xf32>
    %33 = arith.mulf %31, %32 : vector<8x512xf32>
    %34 = vector.extract_strided_slice %17 {offsets = [0, 1], sizes = [8, 1], strides = [1, 1]} : vector<8x2xf32> to vector<8x1xf32>
    %35 = vector.extract_strided_slice %28 {offsets = [1, 0], sizes = [1, 512], strides = [1, 1]} : vector<2x512xf32> to vector<1x512xf32>
    %36 = vector.broadcast %34 : vector<8x1xf32> to vector<8x512xf32>
    %37 = vector.broadcast %35 : vector<1x512xf32> to vector<8x512xf32>
    %38 = arith.mulf %36, %37 : vector<8x512xf32>
    %39 = arith.addf %33, %38 : vector<8x512xf32>
    %c0_19 = arith.constant 0 : index
    %c0_20 = arith.constant 0 : index
    %40 = vector.load %arg8[%c0_19, %c0_20] : memref<1x512xf32, #tpu.memory_space<vmem>>, vector<1x512xf32>
    %41 = vector.broadcast %40 : vector<1x512xf32> to vector<8x512xf32>
    %42 = arith.addf %39, %41 : vector<8x512xf32>
    %cst_21 = arith.constant 0.000000e+00 : f32
    %43 = vector.broadcast %cst_21 : f32 to vector<8x512xf32>
    %44 = arith.maximumf %42, %43 : vector<8x512xf32>
    %45 = arith.truncf %44 : vector<8x512xf32> to vector<8x512xbf16>
    %c0_22 = arith.constant 0 : index
    %c0_23 = arith.constant 0 : index
    %46 = vector.load %arg9[%c0_22, %c0_23] : memref<512x896xbf16, #tpu.memory_space<vmem>>, vector<512x896xbf16>
    %cst_24 = arith.constant dense<0.000000e+00> : vector<8x896xf32>
    %47 = tpu.matmul %45, %46, %cst_24 {dimension_numbers = #tpu.dot_dimension_numbers<[1], [0], [0], [1], [0, 0, 1, 1], [], []>} : vector<8x512xbf16>, vector<512x896xbf16>, vector<8x896xf32> -> vector<8x896xf32>
    %c0_25 = arith.constant 0 : index
    %c0_26 = arith.constant 0 : index
    %48 = vector.load %arg10[%c0_25, %c0_26] : memref<1x896xf32, #tpu.memory_space<vmem>>, vector<1x896xf32>
    %49 = vector.broadcast %48 : vector<1x896xf32> to vector<8x896xf32>
    %50 = arith.addf %47, %49 : vector<8x896xf32>
    %51 = arith.negf %50 : vector<8x896xf32>
    %52 = math.exp %51 : vector<8x896xf32>
    %cst_27 = arith.constant 1.000000e+00 : f32
    %53 = vector.broadcast %cst_27 : f32 to vector<8x896xf32>
    %54 = arith.addf %53, %52 : vector<8x896xf32>
    %55 = arith.divf %53, %54 : vector<8x896xf32>
    %56 = arith.truncf %55 : vector<8x896xf32> to vector<8x896xbf16>
    %c0_28 = arith.constant 0 : index
    %c0_29 = arith.constant 0 : index
    %57 = vector.load %arg11[%c0_28, %c0_29] : memref<8x896xbf16, #tpu.memory_space<vmem>>, vector<8x896xbf16>
    tpu.vector_store %arg11[%c0_28, %c0_29], %56 {strides = array<i32>} : memref<8x896xbf16, #tpu.memory_space<vmem>>, vector<8x896xbf16>,
    return
  }
  func.func @transform_0(%arg0: i32) -> (i32, i32) {
    %c0_i32 = arith.constant 0 : i32
    %c0_i32_0 = arith.constant 0 : i32
    return %arg0, %c0_i32 : i32, i32
  }
  func.func @transform_1(%arg0: i32) -> (i32, i32) {
    %c0_i32 = arith.constant 0 : i32
    %c0_i32_0 = arith.constant 0 : i32
    %c0_i32_1 = arith.constant 0 : i32
    return %c0_i32, %c0_i32_0 : i32, i32
  }
  func.func @transform_2(%arg0: i32) -> (i32, i32) {
    %c0_i32 = arith.constant 0 : i32
    %c0_i32_0 = arith.constant 0 : i32
    %c0_i32_1 = arith.constant 0 : i32
    return %c0_i32, %c0_i32_0 : i32, i32
  }
  func.func @transform_3(%arg0: i32) -> (i32, i32) {
    %c0_i32 = arith.constant 0 : i32
    %c0_i32_0 = arith.constant 0 : i32
    %c0_i32_1 = arith.constant 0 : i32
    return %c0_i32, %c0_i32_0 : i32, i32
  }
  func.func @transform_4(%arg0: i32) -> (i32, i32) {
    %c0_i32 = arith.constant 0 : i32
    %c0_i32_0 = arith.constant 0 : i32
    %c0_i32_1 = arith.constant 0 : i32
    return %c0_i32, %c0_i32_0 : i32, i32
  }
  func.func @transform_5(%arg0: i32) -> (i32, i32) {
    %c0_i32 = arith.constant 0 : i32
    %c0_i32_0 = arith.constant 0 : i32
    return %arg0, %c0_i32 : i32, i32
  }
  func.func @transform_6(%arg0: i32) -> (i32, i32) {
    %c0_i32 = arith.constant 0 : i32
    %c0_i32_0 = arith.constant 0 : i32
    %c0_i32_1 = arith.constant 0 : i32
    return %c0_i32, %c0_i32_0 : i32, i32
  }
  func.func @transform_7(%arg0: i32) -> (i32, i32) {
    %c0_i32 = arith.constant 0 : i32
    %c0_i32_0 = arith.constant 0 : i32
    %c0_i32_1 = arith.constant 0 : i32
    return %c0_i32, %c0_i32_0 : i32, i32
  }
  func.func @transform_8(%arg0: i32) -> (i32, i32) {
    %c0_i32 = arith.constant 0 : i32
    %c0_i32_0 = arith.constant 0 : i32
    %c0_i32_1 = arith.constant 0 : i32
    return %c0_i32, %c0_i32_0 : i32, i32
  }
  func.func @transform_9(%arg0: i32) -> (i32, i32) {
    %c0_i32 = arith.constant 0 : i32
    %c0_i32_0 = arith.constant 0 : i32
    %c0_i32_1 = arith.constant 0 : i32
    return %c0_i32, %c0_i32_0 : i32, i32
  }
  func.func @transform_10(%arg0: i32) -> (i32, i32) {
    %c0_i32 = arith.constant 0 : i32
    %c0_i32_0 = arith.constant 0 : i32
    return %arg0, %c0_i32 : i32, i32
  }
  func.func @transform_11(%arg0: i32) -> (i32, i32) {
    %c0_i32 = arith.constant 0 : i32
    %c0_i32_0 = arith.constant 0 : i32
    return %arg0, %c0_i32 : i32, i32
  }
}

</mosaic_0001>

<bundles_post_ra>
// kernel: tpu_custom_call.1
= control target key start
LH: loop header
LB: loop body
LE: loop exit
PB: predicated region body
PF: predicated region fallthrough
CT: control target
= control target key end

     0   :  { %17 = vsyncpa [#allocation3], 0  ;;  %s5984_s0 = inlined_call_operand.vmem [shape: bf16[8,896], index: 0, kind: input, shape index: {}]   ;;  %s5985_s1 = inlined_call_operand.hbm [shape: bf16[896,512], index: 1, kind: input, shape index: {}]   ;;  %s5986_s2 = inlined_call_operand.vmem [shape: f32[1,512], index: 2, kind: input, shape index: {}]   ;;  %s5987_s3 = inlined_call_operand.vmem [shape: f32[512,4], index: 3, kind: input, shape index: {}]   ;;  %s5988_s4 = inlined_call_operand.vmem [shape: f32[1,4], index: 4, kind: input, shape index: {}]   ;;  %s5989_s5 = inlined_call_operand.vmem [shape: f32[8,2], index: 5, kind: input, shape index: {}]   ;;  %s5990_s6 = inlined_call_operand.vmem [shape: f32[2,512], index: 6, kind: input, shape index: {}]   ;;  %s5991_s7 = inlined_call_operand.vmem [shape: f32[1,512], index: 7, kind: input, shape index: {}]   ;;  %s5992_s8 = inlined_call_operand.hbm [shape: bf16[512,896], index: 8, kind: input, shape index: {}]   ;;  %s5993_s9 = inlined_call_operand.vmem [shape: f32[1,896], index: 9, kind: input, shape index: {}]   ;;  %s5994_s10 = inlined_call_operand.hbm [shape: bf16[8,896], index: 10, kind: output, shape index: {0}]   ;;  %s5995_s11 = inlined_call_operand.vmem [shape: f32[8,1], index: 11, kind: output, shape index: {1}]  }
   0x1   :  { %18 = vsyncpa [#allocation6], 0 }
   0x2   :  { %19 = vsyncpa [#allocation4], 0  ;;  %s5505_s17 = smov [#allocation2]   ;;  %s5433_s21 = scalar_lea.hbm %s5985_s1, 28672 }
   0x3   :  { %s27_s18 = sshll.u32 %s5505_s17, 4  ;;  %p5434_p0 = scmp.ne.s32.totalorder %s5985_s1, %s5433_s21  ;;  %s28_s18 = int_to_ptr.vmem [resolvable:$true] %s27_s18 }
   0x4   :  { %p5437_p1 = scmp.lt.u32.totalorder %s5433_s21, %s5985_s1 }
   0x6   :  { %p5439_p2 = pnand %p5437_p1, %p5434_p0 }
   0x8   :  { %5442 = shalt.err (!%p5439_p2)
}
   0x9   :  { %s5443_s26 = scalar_lea.vmem %s28_s18, 28672  ;;  %p5448_p4 = scmp.lt.s32.totalorder %s28_s18, %s28_s18 }
   0xa   :  { %p5444_p3 = scmp.ne.s32.totalorder %s28_s18, %s5443_s26  ;;  %p5449_p5 = scmp.lt.s32.totalorder %s5443_s26, %s5443_s26 }
   0xc   :  { %p5450_p6 = por %p5449_p5, %p5448_p4 }
   0xe   :  { %p5451_p7 = pnand %p5450_p6, %p5444_p3 }
  0x10   :  { %5454 = shalt.err (!%p5451_p7)
}
  0x11   :  { %s5506_s27 = smov 256   ;;  %s5507_s28 = smov 16  }
  0x12   :  { %33 = dma.hbm_to_vmem [thread:$0]  %s5985_s1, 28672, %s28_s18, [#allocation3], %s5506_s27, %s5506_s27, %s5507_s28  }
  0x13   :  { %s5508_s12 = smov [#allocation5]   ;;  %s5455_s16 = scalar_lea.hbm %s5992_s8, 28672 }
  0x14   :  { %s51_s13 = sshll.u32 %s5508_s12, 4  ;;  %p5456_p8 = scmp.ne.s32.totalorder %s5992_s8, %s5455_s16  ;;  %s52_s13 = int_to_ptr.vmem [resolvable:$true] %s51_s13 }
  0x15   :  { %p5459_p9 = scmp.lt.u32.totalorder %s5455_s16, %s5992_s8 }
  0x17   :  { %p5461_p10 = pnand %p5459_p9, %p5456_p8 }
  0x19   :  { %5464 = shalt.err (!%p5461_p10)
}
  0x1a   :  { %s5465_s22 = scalar_lea.vmem %s52_s13, 28672  ;;  %p5470_p12 = scmp.lt.s32.totalorder %s52_s13, %s52_s13 }
  0x1b   :  { %p5466_p11 = scmp.ne.s32.totalorder %s52_s13, %s5465_s22  ;;  %p5471_p13 = scmp.lt.s32.totalorder %s5465_s22, %s5465_s22 }
  0x1d   :  { %p5472_p0 = por %p5471_p13, %p5470_p12 }
  0x1f   :  { %p5473_p1 = pnand %p5472_p0, %p5466_p11 }
  0x21   :  { %5476 = shalt.err (!%p5473_p1)
}
  0x22   :  { %s5509_s1 = smov 448   ;;  %s5510_s18 = smov 28  }
  0x23   :  { %57 = dma.hbm_to_vmem [thread:$0]  %s5992_s8, 28672, %s52_s13, [#allocation6], %s5509_s1, %s5509_s1, %s5510_s18  }
  0x24   :  { %5499 = dma.done.wait [#allocation3], 28672  }
  0x25   :  { %5500 = vsyncadd [#allocation3], 4294938624 }
  0x26   :  { %5501 = dma.done.wait [#allocation6], 28672  }
  0x27   :  { %5502 = vsyncadd [#allocation6], 4294938624  ;;  %v5511_v0 = vmov 0   ;;  %v4739_v1 = vld [vmem:[#allocation2 + $0x4] ss:$16 sps:$4 sm:$0xff]   ;;  %s5512_s15 = smov 2  }
  0x28   :  { %1617 = vmatprep.mubr.bf16.mxu1 %v5511_v0  ;;  %4736 = vset.pattern.permute.xlu1 %v5511_v0  ;;  %v4741_v2 = vld [vmem:[#allocation2 + $0x604] ss:$16 sps:$4 sm:$0xff]   ;;  %v4743_v3 = vld [vmem:[#allocation2] ss:$16 sps:$4 sm:$0xff]   ;;  %v4792_v34 = vld [vmem:[#allocation2 + $0xc] ss:$16 sps:$4 sm:$0xff]  }
  0x29   :  { %1462 = vmatprep.subr.bf16.mxu0 %v4739_v1  ;;  %v4744_v4 = vld [vmem:[#allocation2 + $0x600] ss:$16 sps:$4 sm:$0xff]   ;;  %1585 = vmatprep.subr.bf16.mxu1 %v4741_v2  ;;  %v4745_v5 = vld [vmem:[#allocation2 + $0x24] ss:$16 sps:$4 sm:$0xff]   ;;  %v4789_v35 = vld [vmem:[%s5984_s0 + $0x18] ss:$0 sps:$4 sm:$0xff]  }
  0x2a   :  { %1463 = vmatpush1.bf16.msra.mxu0 %v4743_v3  ;;  %1586 = vmatpush1.bf16.msra.mxu1 %v4744_v4  ;;  %v4747_v6 = vld [vmem:[#allocation2 + $0x624] ss:$16 sps:$4 sm:$0xff]   ;;  %v4749_v7 = vld [vmem:[#allocation2 + $0x20] ss:$16 sps:$4 sm:$0xff]   ;;  %v4790_v36 = vld [vmem:[#allocation2 + $0x8] ss:$16 sps:$4 sm:$0xff]  }
  0x2b   :  { %1464 = vmatprep.subr.bf16.mxu0 %v4745_v5  ;;  %v4750_v8 = vld [vmem:[#allocation2 + $0x620] ss:$16 sps:$4 sm:$0xff]   ;;  %1587 = vmatprep.subr.bf16.mxu1 %v4747_v6  ;;  %v4751_v9 = vld [vmem:[#allocation2 + $0x44] ss:$16 sps:$4 sm:$0xff]   ;;  %v4798_v39 = vld [vmem:[#allocation2 + $0x2c] ss:$16 sps:$4 sm:$0xff]  }
  0x2c   :  { %v4753_v10 = vld [vmem:[#allocation2 + $0x644] ss:$16 sps:$4 sm:$0xff]   ;;  %v4755_v11 = vld [vmem:[#allocation2 + $0x40] ss:$16 sps:$4 sm:$0xff]   ;;  %v4796_v40 = vld [vmem:[#allocation2 + $0x28] ss:$16 sps:$4 sm:$0xff]  }
  0x2d   :  { %v4756_v12 = vld [vmem:[#allocation2 + $0x640] ss:$16 sps:$4 sm:$0xff]   ;;  %v4757_v13 = vld [vmem:[#allocation2 + $0x64] ss:$16 sps:$4 sm:$0xff]   ;;  %v4804_v43 = vld [vmem:[#allocation2 + $0x4c] ss:$16 sps:$4 sm:$0xff]  }
  0x2e   :  { %1465 = vmatpush1.bf16.msra.mxu0 %v4749_v7  ;;  %1588 = vmatpush1.bf16.msra.mxu1 %v4750_v8  ;;  %v4759_v14 = vld [vmem:[#allocation2 + $0x664] ss:$16 sps:$4 sm:$0xff]   ;;  %v4761_v15 = vld [vmem:[#allocation2 + $0x60] ss:$16 sps:$4 sm:$0xff]   ;;  %v4802_v44 = vld [vmem:[#allocation2 + $0x48] ss:$16 sps:$4 sm:$0xff]  }
  0x2f   :  { %1466 = vmatprep.subr.bf16.mxu0 %v4751_v9  ;;  %1589 = vmatprep.subr.bf16.mxu1 %v4753_v10  ;;  %v4762_v16 = vld [vmem:[#allocation2 + $0x660] ss:$16 sps:$4 sm:$0xff]   ;;  %v4763_v17 = vld [vmem:[#allocation2 + $0x84] ss:$16 sps:$4 sm:$0xff]   ;;  %v4810_v47 = vld [vmem:[#allocation2 + $0x6c] ss:$16 sps:$4 sm:$0xff]  }
  0x30   :  { %v4765_v18 = vld [vmem:[#allocation2 + $0x684] ss:$16 sps:$4 sm:$0xff]   ;;  %v4767_v19 = vld [vmem:[#allocation2 + $0x80] ss:$16 sps:$4 sm:$0xff]   ;;  %v4808_v48 = vld [vmem:[#allocation2 + $0x68] ss:$16 sps:$4 sm:$0xff]  }
  0x31   :  { %v4768_v20 = vld [vmem:[#allocation2 + $0x680] ss:$16 sps:$4 sm:$0xff]   ;;  %v4769_v21 = vld [vmem:[#allocation2 + $0xa4] ss:$16 sps:$4 sm:$0xff]   ;;  %v4816_v53 = vld [vmem:[#allocation2 + $0x8c] ss:$16 sps:$4 sm:$0xff]  }
  0x32   :  { %1467 = vmatpush1.bf16.msra.mxu0 %v4755_v11  ;;  %1590 = vmatpush1.bf16.msra.mxu1 %v4756_v12  ;;  %v4771_v22 = vld [vmem:[#allocation2 + $0x6a4] ss:$16 sps:$4 sm:$0xff]   ;;  %v4773_v23 = vld [vmem:[#allocation2 + $0xa0] ss:$16 sps:$4 sm:$0xff]   ;;  %v4814_v54 = vld [vmem:[#allocation2 + $0x88] ss:$16 sps:$4 sm:$0xff]  }
  0x33   :  { %1468 = vmatprep.subr.bf16.mxu0 %v4757_v13  ;;  %1591 = vmatprep.subr.bf16.mxu1 %v4759_v14  ;;  %v4774_v24 = vld [vmem:[#allocation2 + $0x6a0] ss:$16 sps:$4 sm:$0xff]   ;;  %v4775_v25 = vld [vmem:[#allocation2 + $0xc4] ss:$16 sps:$4 sm:$0xff]   ;;  %v4822_v57 = vld [vmem:[#allocation2 + $0xac] ss:$16 sps:$4 sm:$0xff]  }
  0x34   :  { %v4777_v26 = vld [vmem:[#allocation2 + $0x6c4] ss:$16 sps:$4 sm:$0xff]   ;;  %v4779_v27 = vld [vmem:[#allocation2 + $0xc0] ss:$16 sps:$4 sm:$0xff]   ;;  %v4820_v58 = vld [vmem:[#allocation2 + $0xa8] ss:$16 sps:$4 sm:$0xff]  }
  0x35   :  { %v4780_v28 = vld [vmem:[#allocation2 + $0x6c0] ss:$16 sps:$4 sm:$0xff]   ;;  %v4781_v29 = vld [vmem:[#allocation2 + $0xe4] ss:$16 sps:$4 sm:$0xff]   ;;  %v4828_v61 = vld [vmem:[#allocation2 + $0xcc] ss:$16 sps:$4 sm:$0xff]  }
  0x36   :  { %1469 = vmatpush1.bf16.msra.mxu0 %v4761_v15  ;;  %1592 = vmatpush1.bf16.msra.mxu1 %v4762_v16  ;;  %v4783_v30 = vld [vmem:[#allocation2 + $0x6e4] ss:$16 sps:$4 sm:$0xff]   ;;  %v4785_v31 = vld [vmem:[#allocation2 + $0xe0] ss:$16 sps:$4 sm:$0xff]   ;;  %v4826_v62 = vld [vmem:[#allocation2 + $0xc8] ss:$16 sps:$4 sm:$0xff]  }
  0x37   :  { %1470 = vmatprep.subr.bf16.mxu0 %v4763_v17  ;;  %1593 = vmatprep.subr.bf16.mxu1 %v4765_v18  ;;  %v4786_v32 = vld [vmem:[#allocation2 + $0x6e0] ss:$16 sps:$4 sm:$0xff]   ;;  %v4787_v33 = vld [vmem:[#allocation2 + $0x104] ss:$16 sps:$4 sm:$0xff]   ;;  %v4834_v2 = vld [vmem:[#allocation2 + $0xec] ss:$16 sps:$4 sm:$0xff]  }
  0x38   :  { %v4793_v37 = vld [vmem:[#allocation2 + $0x100] ss:$16 sps:$4 sm:$0xff]   ;;  %v4794_v38 = vld [vmem:[#allocation2 + $0x124] ss:$16 sps:$4 sm:$0xff]   ;;  %v4832_v3 = vld [vmem:[#allocation2 + $0xe8] ss:$16 sps:$4 sm:$0xff]  }
  0x39   :  { %v4799_v41 = vld [vmem:[#allocation2 + $0x120] ss:$16 sps:$4 sm:$0xff]   ;;  %v4800_v42 = vld [vmem:[#allocation2 + $0x144] ss:$16 sps:$4 sm:$0xff]   ;;  %v4843_v6 = vld [vmem:[#allocation2 + $0x10c] ss:$16 sps:$4 sm:$0xff]  }
  0x3a   :  { %1471 = vmatpush1.bf16.msra.mxu0 %v4767_v19  ;;  %1594 = vmatpush1.bf16.msra.mxu1 %v4768_v20  ;;  %v4805_v45 = vld [vmem:[#allocation2 + $0x140] ss:$16 sps:$4 sm:$0xff]   ;;  %v4806_v46 = vld [vmem:[#allocation2 + $0x164] ss:$16 sps:$4 sm:$0xff]   ;;  %v4841_v9 = vld [vmem:[#allocation2 + $0x108] ss:$16 sps:$4 sm:$0xff]  }
  0x3b   :  { %1472 = vmatprep.subr.bf16.mxu0 %v4769_v21  ;;  %1595 = vmatprep.subr.bf16.mxu1 %v4771_v22  ;;  %v67_v49 = vld [vmem:[%s5984_s0] sm:$0xff]  ;;  %v4849_v11 = vld [vmem:[#allocation2 + $0x12c] ss:$16 sps:$4 sm:$0xff]   ;;  %v4847_v13 = vld [vmem:[#allocation2 + $0x128] ss:$16 sps:$4 sm:$0xff]   ;;  %vm2030_vm0 = vcmask 15360  }
  0x3c   :  { %v4811_v50 = vld [vmem:[#allocation2 + $0x160] ss:$16 sps:$4 sm:$0xff]   ;;  %v4812_v51 = vld [vmem:[#allocation2 + $0x184] ss:$16 sps:$4 sm:$0xff]   ;;  %v4032_v52 = vcombine.high %v67_v49, %v67_v49  ;;  %v5608_v7 = vcombine.low %v67_v49, %v67_v49  ;;  %v4855_v15 = vld [vmem:[#allocation2 + $0x14c] ss:$16 sps:$4 sm:$0xff]  }
  0x3d   :  { %v4817_v55 = vld [vmem:[#allocation2 + $0x180] ss:$16 sps:$4 sm:$0xff]   ;;  %v4818_v56 = vld [vmem:[#allocation2 + $0x1a4] ss:$16 sps:$4 sm:$0xff]   ;;  %v4853_v17 = vld [vmem:[#allocation2 + $0x148] ss:$16 sps:$4 sm:$0xff]  }
  0x3e   :  { %1473 = vmatpush1.bf16.msra.mxu0 %v4773_v23  ;;  %1596 = vmatpush1.bf16.msra.mxu1 %v4774_v24  ;;  %v4823_v59 = vld [vmem:[#allocation2 + $0x1a0] ss:$16 sps:$4 sm:$0xff]   ;;  %v4824_v60 = vld [vmem:[#allocation2 + $0x1c4] ss:$16 sps:$4 sm:$0xff]   ;;  %v4861_v19 = vld [vmem:[#allocation2 + $0x16c] ss:$16 sps:$4 sm:$0xff]  }
  0x3f   :  { %1474 = vmatprep.subr.bf16.mxu0 %v4775_v25  ;;  %1597 = vmatprep.subr.bf16.mxu1 %v4777_v26  ;;  %v4829_v63 = vld [vmem:[#allocation2 + $0x1c0] ss:$16 sps:$4 sm:$0xff]   ;;  %v4830_v1 = vld [vmem:[#allocation2 + $0x1e4] ss:$16 sps:$4 sm:$0xff]   ;;  %v4859_v21 = vld [vmem:[#allocation2 + $0x168] ss:$16 sps:$4 sm:$0xff]  }
  0x40   :  { %1494 = vmatprep.mubr.bf16.mxu0 %v4032_v52  ;;  %v4835_v4 = vld [vmem:[#allocation2 + $0x1e0] ss:$16 sps:$4 sm:$0xff]   ;;  %v4840_v5 = vld [vmem:[#allocation2 + $0x204] ss:$16 sps:$4 sm:$0xff]   ;;  %v4867_v23 = vld [vmem:[#allocation2 + $0x18c] ss:$16 sps:$4 sm:$0xff]  }
  0x41   :  { %v4838_v8 = vld [vmem:[#allocation2 + $0x200] ss:$16 sps:$4 sm:$0xff]   ;;  %v4846_v10 = vld [vmem:[#allocation2 + $0x224] ss:$16 sps:$4 sm:$0xff]   ;;  %v4865_v25 = vld [vmem:[#allocation2 + $0x188] ss:$16 sps:$4 sm:$0xff]  }
  0x42   :  { %1475 = vmatpush1.bf16.msra.mxu0 %v4779_v27  ;;  %1598 = vmatpush1.bf16.msra.mxu1 %v4780_v28  ;;  %v4844_v12 = vld [vmem:[#allocation2 + $0x220] ss:$16 sps:$4 sm:$0xff]   ;;  %v4852_v14 = vld [vmem:[#allocation2 + $0x244] ss:$16 sps:$4 sm:$0xff]   ;;  %v4873_v27 = vld [vmem:[#allocation2 + $0x1ac] ss:$16 sps:$4 sm:$0xff]  }
  0x43   :  { %1476 = vmatprep.subr.bf16.mxu0 %v4781_v29  ;;  %1599 = vmatprep.subr.bf16.mxu1 %v4783_v30  ;;  %v4850_v16 = vld [vmem:[#allocation2 + $0x240] ss:$16 sps:$4 sm:$0xff]   ;;  %v4858_v18 = vld [vmem:[#allocation2 + $0x264] ss:$16 sps:$4 sm:$0xff]   ;;  %v4871_v29 = vld [vmem:[#allocation2 + $0x1a8] ss:$16 sps:$4 sm:$0xff]  }
  0x44   :  { %v4856_v20 = vld [vmem:[#allocation2 + $0x260] ss:$16 sps:$4 sm:$0xff]   ;;  %v4864_v22 = vld [vmem:[#allocation2 + $0x284] ss:$16 sps:$4 sm:$0xff]   ;;  %v4903_v49 = vld [vmem:[#allocation2 + $0x24c] ss:$16 sps:$4 sm:$0xff]  }
  0x45   :  { %v4862_v24 = vld [vmem:[#allocation2 + $0x280] ss:$16 sps:$4 sm:$0xff]   ;;  %v4870_v26 = vld [vmem:[#allocation2 + $0x2a4] ss:$16 sps:$4 sm:$0xff]   ;;  %vm2034_vm1 = vcmask 7168  }
  0x46   :  { %1477 = vmatpush1.bf16.msra.mxu0 %v4785_v31  ;;  %1600 = vmatpush1.bf16.msra.mxu1 %v4786_v32  ;;  %v4868_v28 = vld [vmem:[#allocation2 + $0x2a0] ss:$16 sps:$4 sm:$0xff]   ;;  %v4876_v30 = vld [vmem:[#allocation2 + $0x2c4] ss:$16 sps:$4 sm:$0xff]   ;;  %v4879_v31 = vld [vmem:[#allocation2 + $0x1cc] ss:$16 sps:$4 sm:$0xff]  }
  0x47   :  { %1478 = vmatprep.subr.bf16.mxu0 %v4787_v33  ;;  %1626 = vmatprep.subr.bf16.mxu1 %v4792_v34  ;;  %v5614_v32 = vld [vmem:[%s5984_s0 + $0x8] sm:$0xff]  ;;  %v4874_v33 = vld [vmem:[#allocation2 + $0x2c0] ss:$16 sps:$4 sm:$0xff]  }
  0x48   :  { %v4877_v34 = vld [vmem:[#allocation2 + $0x1c8] ss:$16 sps:$4 sm:$0xff]  }
  0x49   :  { %1618 = vmatmul.mubr.bf16.vlgmr.msra.gmra.mrb[0].mxu1 %v4789_v35  ;;  %v4034_v35 = vcombine.high %v5614_v32, %v5614_v32 }
  0x4a   :  { %1479 = vmatpush1.bf16.msra.mxu0 %v4793_v37  ;;  %1627 = vmatpush1.bf16.msra.mxu1 %v4790_v36  ;;  %v4882_v36 = vld [vmem:[#allocation2 + $0x2e4] ss:$16 sps:$4 sm:$0xff]   ;;  %v4885_v37 = vld [vmem:[#allocation2 + $0x1ec] ss:$16 sps:$4 sm:$0xff]  }
  0x4b   :  { %1480 = vmatprep.subr.bf16.mxu0 %v4794_v38  ;;  %1628 = vmatprep.subr.bf16.mxu1 %v4798_v39  ;;  %v4880_v38 = vld [vmem:[#allocation2 + $0x2e0] ss:$16 sps:$4 sm:$0xff]   ;;  %v4883_v39 = vld [vmem:[#allocation2 + $0x1e8] ss:$16 sps:$4 sm:$0xff]  }
  0x4c   :  { %1658 = vmatprep.mubr.bf16.mxu1 %v4032_v52  ;;  %v4906_v52 = vld [vmem:[#allocation2 + $0x364] ss:$16 sps:$4 sm:$0xff]  }
  0x4e   :  { %1481 = vmatpush1.bf16.msra.mxu0 %v4799_v41  ;;  %1629 = vmatpush1.bf16.msra.mxu1 %v4796_v40  ;;  %v4888_v40 = vld [vmem:[#allocation2 + $0x304] ss:$16 sps:$4 sm:$0xff]   ;;  %v4891_v41 = vld [vmem:[#allocation2 + $0x20c] ss:$16 sps:$4 sm:$0xff]  }
  0x4f   :  { %1482 = vmatprep.subr.bf16.mxu0 %v4800_v42  ;;  %1630 = vmatprep.subr.bf16.mxu1 %v4804_v43  ;;  %v4886_v42 = vld [vmem:[#allocation2 + $0x300] ss:$16 sps:$4 sm:$0xff]   ;;  %v4889_v43 = vld [vmem:[#allocation2 + $0x208] ss:$16 sps:$4 sm:$0xff]  }
  0x52   :  { %1483 = vmatpush1.bf16.msra.mxu0 %v4805_v45  ;;  %1631 = vmatpush1.bf16.msra.mxu1 %v4802_v44  ;;  %v4894_v44 = vld [vmem:[#allocation2 + $0x324] ss:$16 sps:$4 sm:$0xff]   ;;  %v4897_v45 = vld [vmem:[#allocation2 + $0x22c] ss:$16 sps:$4 sm:$0xff]  }
  0x53   :  { %1484 = vmatprep.subr.bf16.mxu0 %v4806_v46  ;;  %1632 = vmatprep.subr.bf16.mxu1 %v4810_v47  ;;  %v4892_v46 = vld [vmem:[#allocation2 + $0x320] ss:$16 sps:$4 sm:$0xff]   ;;  %v4895_v47 = vld [vmem:[#allocation2 + $0x228] ss:$16 sps:$4 sm:$0xff]  }
  0x56   :  { %1485 = vmatpush1.bf16.msra.mxu0 %v4811_v50  ;;  %1633 = vmatpush1.bf16.msra.mxu1 %v4808_v48  ;;  %v4900_v48 = vld [vmem:[#allocation2 + $0x344] ss:$16 sps:$4 sm:$0xff]   ;;  %v4898_v50 = vld [vmem:[#allocation2 + $0x340] ss:$16 sps:$4 sm:$0xff]  }
  0x57   :  { %1486 = vmatprep.subr.bf16.mxu0 %v4812_v51  ;;  %1634 = vmatprep.subr.bf16.mxu1 %v4816_v53  ;;  %v4901_v51 = vld [vmem:[#allocation2 + $0x248] ss:$16 sps:$4 sm:$0xff]   ;;  %v4909_v53 = vld [vmem:[#allocation2 + $0x26c] ss:$16 sps:$4 sm:$0xff]  }
  0x5a   :  { %1487 = vmatpush1.bf16.msra.mxu0 %v4817_v55  ;;  %1635 = vmatpush1.bf16.msra.mxu1 %v4814_v54  ;;  %v4904_v54 = vld [vmem:[#allocation2 + $0x360] ss:$16 sps:$4 sm:$0xff]   ;;  %v4907_v55 = vld [vmem:[#allocation2 + $0x268] ss:$16 sps:$4 sm:$0xff]  }
  0x5b   :  { %1488 = vmatprep.subr.bf16.mxu0 %v4818_v56  ;;  %1636 = vmatprep.subr.bf16.mxu1 %v4822_v57  ;;  %v4912_v56 = vld [vmem:[#allocation2 + $0x384] ss:$16 sps:$4 sm:$0xff]   ;;  %v4915_v57 = vld [vmem:[#allocation2 + $0x28c] ss:$16 sps:$4 sm:$0xff]  }
  0x5e   :  { %1489 = vmatpush1.bf16.msra.mxu0 %v4823_v59  ;;  %1637 = vmatpush1.bf16.msra.mxu1 %v4820_v58  ;;  %v4910_v58 = vld [vmem:[#allocation2 + $0x380] ss:$16 sps:$4 sm:$0xff]   ;;  %v4913_v59 = vld [vmem:[#allocation2 + $0x288] ss:$16 sps:$4 sm:$0xff]  }
  0x5f   :  { %1490 = vmatprep.subr.bf16.mxu0 %v4824_v60  ;;  %1638 = vmatprep.subr.bf16.mxu1 %v4828_v61  ;;  %v4918_v60 = vld [vmem:[#allocation2 + $0x3a4] ss:$16 sps:$4 sm:$0xff]   ;;  %v4921_v61 = vld [vmem:[#allocation2 + $0x2ac] ss:$16 sps:$4 sm:$0xff]  }
  0x62   :  { %1491 = vmatpush1.bf16.msra.mxu0 %v4829_v63  ;;  %1639 = vmatpush1.bf16.msra.mxu1 %v4826_v62  ;;  %v4916_v62 = vld [vmem:[#allocation2 + $0x3a0] ss:$16 sps:$4 sm:$0xff]   ;;  %v4919_v63 = vld [vmem:[#allocation2 + $0x2a8] ss:$16 sps:$4 sm:$0xff]  }
  0x63   :  { %1492 = vmatprep.subr.bf16.mxu0 %v4830_v1  ;;  %1640 = vmatprep.subr.bf16.mxu1 %v4834_v2  ;;  %v4924_v1 = vld [vmem:[#allocation2 + $0x3c4] ss:$16 sps:$4 sm:$0xff]   ;;  %v4927_v2 = vld [vmem:[#allocation2 + $0x2cc] ss:$16 sps:$4 sm:$0xff]  }
  0x66   :  { %1493 = vmatpush1.bf16.msra.mxu0 %v4835_v4  ;;  %1641 = vmatpush1.bf16.msra.mxu1 %v4832_v3  ;;  %v4922_v3 = vld [vmem:[#allocation2 + $0x3c0] ss:$16 sps:$4 sm:$0xff]   ;;  %v4925_v4 = vld [vmem:[#allocation2 + $0x2c8] ss:$16 sps:$4 sm:$0xff]  }
  0x67   :  { %1503 = vmatprep.subr.bf16.mxu0 %v4840_v5  ;;  %1642 = vmatprep.subr.bf16.mxu1 %v4843_v6  ;;  %v4930_v5 = vld [vmem:[#allocation2 + $0x3e4] ss:$16 sps:$4 sm:$0xff]   ;;  %v4933_v6 = vld [vmem:[#allocation2 + $0x2ec] ss:$16 sps:$4 sm:$0xff]  }
  0x69   :  { %1495 = vmatmul.mubr.bf16.vlgmr.msra.gmra.mrb[0].mxu0 %v5608_v7 }
  0x6a   :  { %1504 = vmatpush1.bf16.msra.mxu0 %v4838_v8  ;;  %1643 = vmatpush1.bf16.msra.mxu1 %v4841_v9  ;;  %v4931_v8 = vld [vmem:[#allocation2 + $0x2e8] ss:$16 sps:$4 sm:$0xff]   ;;  %v4938_v9 = vld [vmem:[#allocation2 + $0x404] ss:$16 sps:$4 sm:$0xff]  }
  0x6b   :  { %1505 = vmatprep.subr.bf16.mxu0 %v4846_v10  ;;  %1644 = vmatprep.subr.bf16.mxu1 %v4849_v11  ;;  %v4941_v10 = vld [vmem:[#allocation2 + $0x30c] ss:$16 sps:$4 sm:$0xff]   ;;  %v5621_v11 = vcombine.low %v5614_v32, %v5614_v32  ;;  %v4968_v32 = vld [vmem:[#allocation2 + $0x4a4] ss:$16 sps:$4 sm:$0xff]  }
  0x6c   :  { %1535 = vmatprep.mubr.bf16.mxu0 %v4034_v35 }
  0x6e   :  { %1506 = vmatpush1.bf16.msra.mxu0 %v4844_v12  ;;  %1645 = vmatpush1.bf16.msra.mxu1 %v4847_v13  ;;  %v4936_v12 = vld [vmem:[#allocation2 + $0x400] ss:$16 sps:$4 sm:$0xff]   ;;  %v4939_v13 = vld [vmem:[#allocation2 + $0x308] ss:$16 sps:$4 sm:$0xff]  }
  0x6f   :  { %1507 = vmatprep.subr.bf16.mxu0 %v4852_v14  ;;  %1646 = vmatprep.subr.bf16.mxu1 %v4855_v15  ;;  %v4944_v14 = vld [vmem:[#allocation2 + $0x424] ss:$16 sps:$4 sm:$0xff]   ;;  %v4947_v15 = vld [vmem:[#allocation2 + $0x32c] ss:$16 sps:$4 sm:$0xff]  }
  0x72   :  { %1508 = vmatpush1.bf16.msra.mxu0 %v4850_v16  ;;  %1647 = vmatpush1.bf16.msra.mxu1 %v4853_v17  ;;  %v5626_v16 = vld [vmem:[%s5984_s0 + $0x10] sm:$0xff] }
  0x73   :  { %1509 = vmatprep.subr.bf16.mxu0 %v4858_v18  ;;  %1648 = vmatprep.subr.bf16.mxu1 %v4861_v19  ;;  %v5630_v17 = vcombine.high %v5626_v16, %v5626_v16  ;;  %v4942_v18 = vld [vmem:[#allocation2 + $0x420] ss:$16 sps:$4 sm:$0xff]   ;;  %v4945_v19 = vld [vmem:[#allocation2 + $0x328] ss:$16 sps:$4 sm:$0xff]  }
  0x76   :  { %1510 = vmatpush1.bf16.msra.mxu0 %v4856_v20  ;;  %1649 = vmatpush1.bf16.msra.mxu1 %v4859_v21  ;;  %v4950_v20 = vld [vmem:[#allocation2 + $0x444] ss:$16 sps:$4 sm:$0xff]   ;;  %v4953_v21 = vld [vmem:[#allocation2 + $0x34c] ss:$16 sps:$4 sm:$0xff]  }
  0x77   :  { %1511 = vmatprep.subr.bf16.mxu0 %v4864_v22  ;;  %1650 = vmatprep.subr.bf16.mxu1 %v4867_v23  ;;  %v4948_v22 = vld [vmem:[#allocation2 + $0x440] ss:$16 sps:$4 sm:$0xff]   ;;  %v4951_v23 = vld [vmem:[#allocation2 + $0x348] ss:$16 sps:$4 sm:$0xff]  }
  0x7a   :  { %1512 = vmatpush1.bf16.msra.mxu0 %v4862_v24  ;;  %1651 = vmatpush1.bf16.msra.mxu1 %v4865_v25  ;;  %v4956_v24 = vld [vmem:[#allocation2 + $0x464] ss:$16 sps:$4 sm:$0xff]   ;;  %v4959_v25 = vld [vmem:[#allocation2 + $0x36c] ss:$16 sps:$4 sm:$0xff]  }
  0x7b   :  { %1513 = vmatprep.subr.bf16.mxu0 %v4870_v26  ;;  %1652 = vmatprep.subr.bf16.mxu1 %v4873_v27  ;;  %v4954_v26 = vld [vmem:[#allocation2 + $0x460] ss:$16 sps:$4 sm:$0xff]   ;;  %v4957_v27 = vld [vmem:[#allocation2 + $0x368] ss:$16 sps:$4 sm:$0xff]  }
  0x7e   :  { %1514 = vmatpush1.bf16.msra.mxu0 %v4868_v28  ;;  %1653 = vmatpush1.bf16.msra.mxu1 %v4871_v29  ;;  %v4962_v28 = vld [vmem:[#allocation2 + $0x484] ss:$16 sps:$4 sm:$0xff]   ;;  %v4965_v29 = vld [vmem:[#allocation2 + $0x38c] ss:$16 sps:$4 sm:$0xff]  }
  0x7f   :  { %1515 = vmatprep.subr.bf16.mxu0 %v4876_v30  ;;  %1654 = vmatprep.subr.bf16.mxu1 %v4879_v31  ;;  %v4960_v30 = vld [vmem:[#allocation2 + $0x480] ss:$16 sps:$4 sm:$0xff]   ;;  %v4963_v31 = vld [vmem:[#allocation2 + $0x388] ss:$16 sps:$4 sm:$0xff]  }
  0x82   :  { %1516 = vmatpush1.bf16.msra.mxu0 %v4874_v33  ;;  %1655 = vmatpush1.bf16.msra.mxu1 %v4877_v34  ;;  %v4971_v33 = vld [vmem:[#allocation2 + $0x3ac] ss:$16 sps:$4 sm:$0xff]   ;;  %v4966_v34 = vld [vmem:[#allocation2 + $0x4a0] ss:$16 sps:$4 sm:$0xff]  }
  0x83   :  { %1517 = vmatprep.subr.bf16.mxu0 %v4882_v36  ;;  %1656 = vmatprep.subr.bf16.mxu1 %v4885_v37  ;;  %v4974_v36 = vld [vmem:[#allocation2 + $0x4c4] ss:$16 sps:$4 sm:$0xff]   ;;  %v4977_v37 = vld [vmem:[#allocation2 + $0x3cc] ss:$16 sps:$4 sm:$0xff]  }
  0x86   :  { %1518 = vmatpush1.bf16.msra.mxu0 %v4880_v38  ;;  %1657 = vmatpush1.bf16.msra.mxu1 %v4883_v39  ;;  %v4972_v38 = vld [vmem:[#allocation2 + $0x4c0] ss:$16 sps:$4 sm:$0xff]   ;;  %v4975_v39 = vld [vmem:[#allocation2 + $0x3c8] ss:$16 sps:$4 sm:$0xff]  }
  0x87   :  { %1519 = vmatprep.subr.bf16.mxu0 %v4888_v40  ;;  %1667 = vmatprep.subr.bf16.mxu1 %v4891_v41  ;;  %v4980_v40 = vld [vmem:[#allocation2 + $0x4e4] ss:$16 sps:$4 sm:$0xff]   ;;  %v4983_v41 = vld [vmem:[#allocation2 + $0x3ec] ss:$16 sps:$4 sm:$0xff]  }
  0x89   :  { %1659 = vmatmul.mubr.bf16.vlgmr.msra.gmra.mrb[4].mxu1 %v5608_v7  ;;  %v4928_v7 = vld [vmem:[#allocation2 + $0x3e0] ss:$16 sps:$4 sm:$0xff]  }
  0x8a   :  { %1520 = vmatpush1.bf16.msra.mxu0 %v4886_v42  ;;  %1668 = vmatpush1.bf16.msra.mxu1 %v4889_v43  ;;  %v4978_v42 = vld [vmem:[#allocation2 + $0x4e0] ss:$16 sps:$4 sm:$0xff]   ;;  %v4981_v43 = vld [vmem:[#allocation2 + $0x3e8] ss:$16 sps:$4 sm:$0xff]  }
  0x8b   :  { %1521 = vmatprep.subr.bf16.mxu0 %v4894_v44  ;;  %1669 = vmatprep.subr.bf16.mxu1 %v4897_v45  ;;  %v4986_v44 = vld [vmem:[#allocation2 + $0x504] ss:$16 sps:$4 sm:$0xff]   ;;  %v4989_v45 = vld [vmem:[#allocation2 + $0x40c] ss:$16 sps:$4 sm:$0xff]  }
  0x8c   :  { %1699 = vmatprep.mubr.bf16.mxu1 %v4034_v35  ;;  %v4969_v35 = vld [vmem:[#allocation2 + $0x3a8] ss:$16 sps:$4 sm:$0xff]  }
  0x8e   :  { %1522 = vmatpush1.bf16.msra.mxu0 %v4892_v46  ;;  %1670 = vmatpush1.bf16.msra.mxu1 %v4895_v47  ;;  %v4984_v46 = vld [vmem:[#allocation2 + $0x500] ss:$16 sps:$4 sm:$0xff]   ;;  %v4987_v47 = vld [vmem:[#allocation2 + $0x408] ss:$16 sps:$4 sm:$0xff]  }
  0x8f   :  { %1523 = vmatprep.subr.bf16.mxu0 %v4900_v48  ;;  %1671 = vmatprep.subr.bf16.mxu1 %v4903_v49  ;;  %v4992_v48 = vld [vmem:[#allocation2 + $0x524] ss:$16 sps:$4 sm:$0xff]   ;;  %v4995_v49 = vld [vmem:[#allocation2 + $0x42c] ss:$16 sps:$4 sm:$0xff]  }
  0x92   :  { %1524 = vmatpush1.bf16.msra.mxu0 %v4898_v50  ;;  %1672 = vmatpush1.bf16.msra.mxu1 %v4901_v51  ;;  %v4990_v50 = vld [vmem:[#allocation2 + $0x520] ss:$16 sps:$4 sm:$0xff]   ;;  %v4993_v51 = vld [vmem:[#allocation2 + $0x428] ss:$16 sps:$4 sm:$0xff]  }
  0x93   :  { %1525 = vmatprep.subr.bf16.mxu0 %v4906_v52  ;;  %1673 = vmatprep.subr.bf16.mxu1 %v4909_v53  ;;  %v4998_v52 = vld [vmem:[#allocation2 + $0x544] ss:$16 sps:$4 sm:$0xff]   ;;  %v5001_v53 = vld [vmem:[#allocation2 + $0x44c] ss:$16 sps:$4 sm:$0xff]  }
  0x96   :  { %1526 = vmatpush1.bf16.msra.mxu0 %v4904_v54  ;;  %1674 = vmatpush1.bf16.msra.mxu1 %v4907_v55  ;;  %v4996_v54 = vld [vmem:[#allocation2 + $0x540] ss:$16 sps:$4 sm:$0xff]   ;;  %v4999_v55 = vld [vmem:[#allocation2 + $0x448] ss:$16 sps:$4 sm:$0xff]  }
  0x97   :  { %1527 = vmatprep.subr.bf16.mxu0 %v4912_v56  ;;  %1675 = vmatprep.subr.bf16.mxu1 %v4915_v57  ;;  %v5004_v56 = vld [vmem:[#allocation2 + $0x564] ss:$16 sps:$4 sm:$0xff]   ;;  %v5007_v57 = vld [vmem:[#allocation2 + $0x46c] ss:$16 sps:$4 sm:$0xff]  }
  0x9a   :  { %1528 = vmatpush1.bf16.msra.mxu0 %v4910_v58  ;;  %1676 = vmatpush1.bf16.msra.mxu1 %v4913_v59  ;;  %v5002_v58 = vld [vmem:[#allocation2 + $0x560] ss:$16 sps:$4 sm:$0xff]   ;;  %v5005_v59 = vld [vmem:[#allocation2 + $0x468] ss:$16 sps:$4 sm:$0xff]  }
  0x9b   :  { %1529 = vmatprep.subr.bf16.mxu0 %v4918_v60  ;;  %1677 = vmatprep.subr.bf16.mxu1 %v4921_v61  ;;  %v5010_v60 = vld [vmem:[#allocation2 + $0x584] ss:$16 sps:$4 sm:$0xff]   ;;  %v5013_v61 = vld [vmem:[#allocation2 + $0x48c] ss:$16 sps:$4 sm:$0xff]  }
  0x9e   :  { %1530 = vmatpush1.bf16.msra.mxu0 %v4916_v62  ;;  %1678 = vmatpush1.bf16.msra.mxu1 %v4919_v63  ;;  %v5008_v62 = vld [vmem:[#allocation2 + $0x580] ss:$16 sps:$4 sm:$0xff]   ;;  %v5011_v63 = vld [vmem:[#allocation2 + $0x488] ss:$16 sps:$4 sm:$0xff]  }
  0x9f   :  { %1531 = vmatprep.subr.bf16.mxu0 %v4924_v1  ;;  %1679 = vmatprep.subr.bf16.mxu1 %v4927_v2  ;;  %v5016_v1 = vld [vmem:[#allocation2 + $0x5a4] ss:$16 sps:$4 sm:$0xff]   ;;  %v5019_v2 = vld [vmem:[#allocation2 + $0x4ac] ss:$16 sps:$4 sm:$0xff]  }
  0xa2   :  { %1532 = vmatpush1.bf16.msra.mxu0 %v4922_v3  ;;  %1680 = vmatpush1.bf16.msra.mxu1 %v4925_v4  ;;  %v5014_v3 = vld [vmem:[#allocation2 + $0x5a0] ss:$16 sps:$4 sm:$0xff]   ;;  %v5017_v4 = vld [vmem:[#allocation2 + $0x4a8] ss:$16 sps:$4 sm:$0xff]  }
  0xa3   :  { %1533 = vmatprep.subr.bf16.mxu0 %v4930_v5  ;;  %1681 = vmatprep.subr.bf16.mxu1 %v4933_v6  ;;  %v5022_v5 = vld [vmem:[#allocation2 + $0x5c4] ss:$16 sps:$4 sm:$0xff]   ;;  %v5025_v6 = vld [vmem:[#allocation2 + $0x4cc] ss:$16 sps:$4 sm:$0xff]  }
  0xa6   :  { %1534 = vmatpush1.bf16.msra.mxu0 %v4928_v7  ;;  %1682 = vmatpush1.bf16.msra.mxu1 %v4931_v8  ;;  %v5020_v7 = vld [vmem:[#allocation2 + $0x5c0] ss:$16 sps:$4 sm:$0xff]   ;;  %v5023_v8 = vld [vmem:[#allocation2 + $0x4c8] ss:$16 sps:$4 sm:$0xff]  }
  0xa7   :  { %1544 = vmatprep.subr.bf16.mxu0 %v4938_v9  ;;  %1683 = vmatprep.subr.bf16.mxu1 %v4941_v10  ;;  %v5028_v9 = vld [vmem:[#allocation2 + $0x5e4] ss:$16 sps:$4 sm:$0xff]   ;;  %v5031_v10 = vld [vmem:[#allocation2 + $0x4ec] ss:$16 sps:$4 sm:$0xff]  }
  0xa9   :  { %1536 = vmatmul.mubr.bf16.vlgmr.msra.gmra.mrb[0].mxu0 %v5621_v11 }
  0xaa   :  { %1545 = vmatpush1.bf16.msra.mxu0 %v4936_v12  ;;  %1684 = vmatpush1.bf16.msra.mxu1 %v4939_v13  ;;  %v1811_v12 = vld [vmem:[%s5987_s3 + $0x88] sm:$0xff]  ;;  %v5026_v13 = vld [vmem:[#allocation2 + $0x5e0] ss:$16 sps:$4 sm:$0xff]  }
  0xab   :  { %1546 = vmatprep.subr.bf16.mxu0 %v4944_v14  ;;  %1685 = vmatprep.subr.bf16.mxu1 %v4947_v15  ;;  %v5029_v14 = vld [vmem:[#allocation2 + $0x4e8] ss:$16 sps:$4 sm:$0xff]   ;;  %v5036_v15 = vld [vmem:[#allocation2 + $0x50c] ss:$16 sps:$4 sm:$0xff]  }
  0xac   :  { %1576 = vmatprep.mubr.bf16.mxu0 %v5630_v17 }
  0xae   :  { %1547 = vmatpush1.bf16.msra.mxu0 %v4942_v18  ;;  %1686 = vmatpush1.bf16.msra.mxu1 %v4945_v19  ;;  %v1795_v18 = vld [vmem:[%s5987_s3 + $0x8] sm:$0xff]  ;;  %v1812_v19 = vld [vmem:[%s5987_s3 + $0x90] sm:$0xff] }
  0xaf   :  { %1548 = vmatprep.subr.bf16.mxu0 %v4950_v20  ;;  %1687 = vmatprep.subr.bf16.mxu1 %v4953_v21  ;;  %v1813_v20 = vld [vmem:[%s5987_s3 + $0x98] sm:$0xff] }
  0xb2   :  { %1549 = vmatpush1.bf16.msra.mxu0 %v4948_v22  ;;  %1688 = vmatpush1.bf16.msra.mxu1 %v4951_v23  ;;  %v5034_v22 = vld [vmem:[#allocation2 + $0x508] ss:$16 sps:$4 sm:$0xff]   ;;  %v5656_v23 = vcombine.low %v5626_v16, %v5626_v16 }
  0xb3   :  { %1550 = vmatprep.subr.bf16.mxu0 %v4956_v24  ;;  %1689 = vmatprep.subr.bf16.mxu1 %v4959_v25  ;;  %v5039_v24 = vld [vmem:[#allocation2 + $0x52c] ss:$16 sps:$4 sm:$0xff]   ;;  %v1796_v25 = vld [vmem:[%s5987_s3 + $0x10] sm:$0xff] }
  0xb4   :  { %v1815_v16 = vld [vmem:[%s5987_s3 + $0xa8] sm:$0xff] }
  0xb6   :  { %1551 = vmatpush1.bf16.msra.mxu0 %v4954_v26  ;;  %1690 = vmatpush1.bf16.msra.mxu1 %v4957_v27  ;;  %v1797_v26 = vld [vmem:[%s5987_s3 + $0x18] sm:$0xff] }
  0xb7   :  { %1552 = vmatprep.subr.bf16.mxu0 %v4962_v28  ;;  %1691 = vmatprep.subr.bf16.mxu1 %v4965_v29  ;;  %v1814_v28 = vld [vmem:[%s5987_s3 + $0xa0] sm:$0xff]  ;;  %v4621_v29 = vpack.c.bf16 %v1813_v20, %v1812_v19  ;;  %v5076_v19 = vld [vmem:[#allocation2 + $0x6c8] ss:$16 sps:$4 sm:$0xff]  }
  0xba   :  { %1553 = vmatpush1.bf16.msra.mxu0 %v4960_v30  ;;  %1692 = vmatpush1.bf16.msra.mxu1 %v4963_v31  ;;  %v5037_v30 = vld [vmem:[#allocation2 + $0x528] ss:$16 sps:$4 sm:$0xff]   ;;  %v5042_v31 = vld [vmem:[#allocation2 + $0x54c] ss:$16 sps:$4 sm:$0xff]  }
  0xbb   :  { %1554 = vmatprep.subr.bf16.mxu0 %v4968_v32  ;;  %1693 = vmatprep.subr.bf16.mxu1 %v4971_v33  ;;  %v1798_v32 = vld [vmem:[%s5987_s3 + $0x20] sm:$0xff]  ;;  %v1799_v33 = vld [vmem:[%s5987_s3 + $0x28] sm:$0xff] }
  0xbe   :  { %1555 = vmatpush1.bf16.msra.mxu0 %v4966_v34  ;;  %1694 = vmatpush1.bf16.msra.mxu1 %v4969_v35  ;;  %v4623_v34 = vpack.c.bf16 %v1797_v26, %v1796_v25  ;;  %v1816_v35 = vld [vmem:[%s5987_s3 + $0xb0] sm:$0xff]  ;;  %v1823_v25 = vld [vmem:[%s5987_s3 + $0xe8] sm:$0xff] }
  0xbf   :  { %1556 = vmatprep.subr.bf16.mxu0 %v4974_v36  ;;  %1695 = vmatprep.subr.bf16.mxu1 %v4977_v37  ;;  %v1817_v36 = vld [vmem:[%s5987_s3 + $0xb8] sm:$0xff]  ;;  %v4625_v37 = vpack.c.bf16 %v1815_v16, %v1814_v28  ;;  %v1807_v28 = vld [vmem:[%s5987_s3 + $0x68] sm:$0xff] }
  0xc2   :  { %1557 = vmatpush1.bf16.msra.mxu0 %v4972_v38  ;;  %1696 = vmatpush1.bf16.msra.mxu1 %v4975_v39  ;;  %v5040_v38 = vld [vmem:[#allocation2 + $0x548] ss:$16 sps:$4 sm:$0xff]   ;;  %v5045_v39 = vld [vmem:[#allocation2 + $0x56c] ss:$16 sps:$4 sm:$0xff]  }
  0xc3   :  { %1558 = vmatprep.subr.bf16.mxu0 %v4980_v40  ;;  %1697 = vmatprep.subr.bf16.mxu1 %v4983_v41  ;;  %v1800_v40 = vld [vmem:[%s5987_s3 + $0x30] sm:$0xff]  ;;  %v1801_v41 = vld [vmem:[%s5987_s3 + $0x38] sm:$0xff] }
  0xc6   :  { %1559 = vmatpush1.bf16.msra.mxu0 %v4978_v42  ;;  %1698 = vmatpush1.bf16.msra.mxu1 %v4981_v43  ;;  %v4627_v42 = vpack.c.bf16 %v1799_v33, %v1798_v32  ;;  %v1818_v43 = vld [vmem:[%s5987_s3 + $0xc0] sm:$0xff]  ;;  %v1808_v32 = vld [vmem:[%s5987_s3 + $0x70] sm:$0xff]  ;;  %v1809_v33 = vld [vmem:[%s5987_s3 + $0x78] sm:$0xff] }
  0xc7   :  { %1560 = vmatprep.subr.bf16.mxu0 %v4986_v44  ;;  %1708 = vmatprep.subr.bf16.mxu1 %v4989_v45  ;;  %v1819_v44 = vld [vmem:[%s5987_s3 + $0xc8] sm:$0xff]  ;;  %v4629_v45 = vpack.c.bf16 %v1817_v36, %v1816_v35  ;;  %v1842_v35 = vld [vmem:[%s5987_s3 + $0x180] sm:$0xff] }
  0xc8   :  { %v1843_v36 = vld [vmem:[%s5987_s3 + $0x188] sm:$0xff] }
  0xc9   :  { %1700 = vmatmul.mubr.bf16.vlgmr.msra.gmra.mrb[4].mxu1 %v5621_v11  ;;  %v1810_v11 = vld [vmem:[%s5987_s3 + $0x80] sm:$0xff] }
  0xca   :  { %1561 = vmatpush1.bf16.msra.mxu0 %v4984_v46  ;;  %1709 = vmatpush1.bf16.msra.mxu1 %v4987_v47  ;;  %v4617_v21 = vpack.c.bf16 %v1811_v12, %v1810_v11  ;;  %v5043_v46 = vld [vmem:[#allocation2 + $0x568] ss:$16 sps:$4 sm:$0xff]   ;;  %v5048_v47 = vld [vmem:[#allocation2 + $0x58c] ss:$16 sps:$4 sm:$0xff]  }
  0xcb   :  { %1562 = vmatprep.subr.bf16.mxu0 %v4992_v48  ;;  %1710 = vmatprep.subr.bf16.mxu1 %v4995_v49  ;;  %v1802_v48 = vld [vmem:[%s5987_s3 + $0x40] sm:$0xff]  ;;  %v1803_v49 = vld [vmem:[%s5987_s3 + $0x48] sm:$0xff] }
  0xcc   :  { %1740 = vmatprep.mubr.bf16.mxu1 %v5630_v17  ;;  %v1794_v17 = vld [vmem:[%s5987_s3] sm:$0xff]  ;;  %v5072_v11 = vld [vmem:[#allocation2 + $0x68c] ss:$16 sps:$4 sm:$0xff]   ;;  %v5070_v12 = vld [vmem:[#allocation2 + $0x688] ss:$16 sps:$4 sm:$0xff]  }
  0xcd   :  { %v4619_v27 = vpack.c.bf16 %v1795_v18, %v1794_v17 }
  0xce   :  { %1563 = vmatpush1.bf16.msra.mxu0 %v4990_v50  ;;  %1711 = vmatpush1.bf16.msra.mxu1 %v4993_v51  ;;  %v4631_v50 = vpack.c.bf16 %v1801_v41, %v1800_v40  ;;  %v1820_v51 = vld [vmem:[%s5987_s3 + $0xd0] sm:$0xff]  ;;  %v1845_v41 = vld [vmem:[%s5987_s3 + $0x198] sm:$0xff] }
  0xcf   :  { %1564 = vmatprep.subr.bf16.mxu0 %v4998_v52  ;;  %1712 = vmatprep.subr.bf16.mxu1 %v5001_v53  ;;  %v1821_v52 = vld [vmem:[%s5987_s3 + $0xd8] sm:$0xff]  ;;  %v4633_v53 = vpack.c.bf16 %v1819_v44, %v1818_v43  ;;  %v1844_v40 = vld [vmem:[%s5987_s3 + $0x190] sm:$0xff] }
  0xd0   :  { %v4653_v43 = vpack.c.bf16 %v1845_v41, %v1844_v40  ;;  %v1828_v44 = vld [vmem:[%s5987_s3 + $0x110] sm:$0xff] }
  0xd2   :  { %1565 = vmatpush1.bf16.msra.mxu0 %v4996_v54  ;;  %1713 = vmatpush1.bf16.msra.mxu1 %v4999_v55  ;;  %v5046_v54 = vld [vmem:[#allocation2 + $0x588] ss:$16 sps:$4 sm:$0xff]   ;;  %v5051_v55 = vld [vmem:[#allocation2 + $0x5ac] ss:$16 sps:$4 sm:$0xff]  }
  0xd3   :  { %1566 = vmatprep.subr.bf16.mxu0 %v5004_v56  ;;  %1714 = vmatprep.subr.bf16.mxu1 %v5007_v57  ;;  %v1804_v56 = vld [vmem:[%s5987_s3 + $0x50] sm:$0xff]  ;;  %v1805_v57 = vld [vmem:[%s5987_s3 + $0x58] sm:$0xff] }
  0xd6   :  { %1567 = vmatpush1.bf16.msra.mxu0 %v5002_v58  ;;  %1715 = vmatpush1.bf16.msra.mxu1 %v5005_v59  ;;  %v4635_v58 = vpack.c.bf16 %v1803_v49, %v1802_v48  ;;  %v4637_v59 = vpack.c.bf16 %v1821_v52, %v1820_v51  ;;  %v1831_v51 = vld [vmem:[%s5987_s3 + $0x128] sm:$0xff]  ;;  %v1848_v52 = vld [vmem:[%s5987_s3 + $0x1b0] sm:$0xff] }
  0xd7   :  { %1568 = vmatprep.subr.bf16.mxu0 %v5010_v60  ;;  %1716 = vmatprep.subr.bf16.mxu1 %v5013_v61  ;;  %v5049_v60 = vld [vmem:[#allocation2 + $0x5a8] ss:$16 sps:$4 sm:$0xff]   ;;  %v5054_v61 = vld [vmem:[#allocation2 + $0x5cc] ss:$16 sps:$4 sm:$0xff]  }
  0xda   :  { %1569 = vmatpush1.bf16.msra.mxu0 %v5008_v62  ;;  %1717 = vmatpush1.bf16.msra.mxu1 %v5011_v63  ;;  %v4639_v62 = vpack.c.bf16 %v1805_v57, %v1804_v56  ;;  %v5052_v63 = vld [vmem:[#allocation2 + $0x5c8] ss:$16 sps:$4 sm:$0xff]   ;;  %v1832_v56 = vld [vmem:[%s5987_s3 + $0x130] sm:$0xff] }
  0xdb   :  { %1570 = vmatprep.subr.bf16.mxu0 %v5016_v1  ;;  %1718 = vmatprep.subr.bf16.mxu1 %v5019_v2  ;;  %v5057_v1 = vld [vmem:[#allocation2 + $0x5ec] ss:$16 sps:$4 sm:$0xff]   ;;  %v5055_v2 = vld [vmem:[#allocation2 + $0x5e8] ss:$16 sps:$4 sm:$0xff]  }
  0xdc   :  { %v1833_v57 = vld [vmem:[%s5987_s3 + $0x138] sm:$0xff] }
  0xde   :  { %1571 = vmatpush1.bf16.msra.mxu0 %v5014_v3  ;;  %1719 = vmatpush1.bf16.msra.mxu1 %v5017_v4  ;;  %v5060_v3 = vld [vmem:[#allocation2 + $0x60c] ss:$16 sps:$4 sm:$0xff]   ;;  %v5058_v4 = vld [vmem:[#allocation2 + $0x608] ss:$16 sps:$4 sm:$0xff]  }
  0xdf   :  { %1572 = vmatprep.subr.bf16.mxu0 %v5022_v5  ;;  %1720 = vmatprep.subr.bf16.mxu1 %v5025_v6  ;;  %v5063_v5 = vld [vmem:[#allocation2 + $0x62c] ss:$16 sps:$4 sm:$0xff]   ;;  %v5061_v6 = vld [vmem:[#allocation2 + $0x628] ss:$16 sps:$4 sm:$0xff]  }
  0xe2   :  { %1573 = vmatpush1.bf16.msra.mxu0 %v5020_v7  ;;  %1721 = vmatpush1.bf16.msra.mxu1 %v5023_v8  ;;  %v5066_v7 = vld [vmem:[#allocation2 + $0x64c] ss:$16 sps:$4 sm:$0xff]   ;;  %v5064_v8 = vld [vmem:[#allocation2 + $0x648] ss:$16 sps:$4 sm:$0xff]  }
  0xe3   :  { %1574 = vmatprep.subr.bf16.mxu0 %v5028_v9  ;;  %1722 = vmatprep.subr.bf16.mxu1 %v5031_v10  ;;  %v5069_v9 = vld [vmem:[#allocation2 + $0x66c] ss:$16 sps:$4 sm:$0xff]   ;;  %v5067_v10 = vld [vmem:[#allocation2 + $0x668] ss:$16 sps:$4 sm:$0xff]  }
  0xe6   :  { %1575 = vmatpush1.bf16.msra.mxu0 %v5026_v13  ;;  %1723 = vmatpush1.bf16.msra.mxu1 %v5029_v14  ;;  %v5075_v13 = vld [vmem:[#allocation2 + $0x6ac] ss:$16 sps:$4 sm:$0xff]   ;;  %v5073_v14 = vld [vmem:[#allocation2 + $0x6a8] ss:$16 sps:$4 sm:$0xff]  }
  0xe7   :  { %1724 = vmatprep.subr.bf16.mxu1 %v5036_v15  ;;  %4618 = vmatprep.subr.bf16.mxu0 %v4617_v21  ;;  %v5078_v15 = vld [vmem:[#allocation2 + $0x6cc] ss:$16 sps:$4 sm:$0xff]  }
  0xe8   :  { %v5081_v21 = vld [vmem:[#allocation2 + $0x6ec] ss:$16 sps:$4 sm:$0xff]  }
  0xe9   :  { %1577 = vmatmul.mubr.bf16.vlgmr.msra.gmra.mrb[0].mxu0 %v5656_v23 }
  0xea   :  { %1725 = vmatpush1.bf16.msra.mxu1 %v5034_v22  ;;  %4620 = vmatpush3.bf16.msra.mxu0 %v4619_v27  ;;  %v5079_v22 = vld [vmem:[#allocation2 + $0x6e8] ss:$16 sps:$4 sm:$0xff]   ;;  %v1806_v27 = vld [vmem:[%s5987_s3 + $0x60] sm:$0xff] }
  0xeb   :  { %1726 = vmatprep.subr.bf16.mxu1 %v5039_v24  ;;  %4622 = vmatprep.subr.bf16.mxu0 %v4621_v29  ;;  %v1822_v24 = vld [vmem:[%s5987_s3 + $0xe0] sm:$0xff]  ;;  %v4643_v16 = vpack.c.bf16 %v1807_v28, %v1806_v27  ;;  %v1824_v29 = vld [vmem:[%s5987_s3 + $0xf0] sm:$0xff] }
  0xec   :  { %v4641_v26 = vpack.c.bf16 %v1823_v25, %v1822_v24 }
  0xee   :  { %1727 = vmatpush1.bf16.msra.mxu1 %v5037_v30  ;;  %4624 = vmatpush3.bf16.msra.mxu0 %v4623_v34  ;;  %v1825_v30 = vld [vmem:[%s5987_s3 + $0xf8] sm:$0xff]  ;;  %v4647_v34 = vpack.c.bf16 %v1809_v33, %v1808_v32 }
  0xef   :  { %1728 = vmatprep.subr.bf16.mxu1 %v5042_v31  ;;  %4626 = vmatprep.subr.bf16.mxu0 %v4625_v37  ;;  %v4645_v31 = vpack.c.bf16 %v1825_v30, %v1824_v29  ;;  %v1826_v37 = vld [vmem:[%s5987_s3 + $0x100] sm:$0xff] }
  0xf2   :  { %1729 = vmatpush1.bf16.msra.mxu1 %v5040_v38  ;;  %4628 = vmatpush3.bf16.msra.mxu0 %v4627_v42  ;;  %v4649_v38 = vpack.c.bf16 %v1843_v36, %v1842_v35 }
  0xf3   :  { %1730 = vmatprep.subr.bf16.mxu1 %v5045_v39  ;;  %4630 = vmatprep.subr.bf16.mxu0 %v4629_v45  ;;  %v1827_v39 = vld [vmem:[%s5987_s3 + $0x108] sm:$0xff]  ;;  %v1829_v45 = vld [vmem:[%s5987_s3 + $0x118] sm:$0xff] }
  0xf4   :  { %v4651_v42 = vpack.c.bf16 %v1827_v39, %v1826_v37  ;;  %v4655_v48 = vpack.c.bf16 %v1829_v45, %v1828_v44 }
  0xf6   :  { %1731 = vmatpush1.bf16.msra.mxu1 %v5043_v46  ;;  %4632 = vmatpush3.bf16.msra.mxu0 %v4631_v50  ;;  %v1846_v46 = vld [vmem:[%s5987_s3 + $0x1a0] sm:$0xff] }
  0xf7   :  { %1732 = vmatprep.subr.bf16.mxu1 %v5048_v47  ;;  %4634 = vmatprep.subr.bf16.mxu0 %v4633_v53  ;;  %v1847_v47 = vld [vmem:[%s5987_s3 + $0x1a8] sm:$0xff]  ;;  %v1830_v50 = vld [vmem:[%s5987_s3 + $0x120] sm:$0xff]  ;;  %v1849_v53 = vld [vmem:[%s5987_s3 + $0x1b8] sm:$0xff] }
  0xf8   :  { %v4657_v49 = vpack.c.bf16 %v1847_v47, %v1846_v46 }
  0xfa   :  { %1733 = vmatpush1.bf16.msra.mxu1 %v5046_v54  ;;  %4636 = vmatpush3.bf16.msra.mxu0 %v4635_v58  ;;  %v4659_v54 = vpack.c.bf16 %v1831_v51, %v1830_v50  ;;  %v1850_v58 = vld [vmem:[%s5987_s3 + $0x1c0] sm:$0xff] }
  0xfb   :  { %1734 = vmatprep.subr.bf16.mxu1 %v5051_v55  ;;  %4638 = vmatprep.subr.bf16.mxu0 %v4637_v59  ;;  %v4661_v55 = vpack.c.bf16 %v1849_v53, %v1848_v52  ;;  %v1851_v59 = vld [vmem:[%s5987_s3 + $0x1c8] sm:$0xff]  ;;  %v4262_v52 = vld [vmem:[%s5988_s4] ss:$0 sm:$0xff] }
  0xfe   :  { %1735 = vmatpush1.bf16.msra.mxu1 %v5049_v60  ;;  %4640 = vmatpush3.bf16.msra.mxu0 %v4639_v62  ;;  %v4663_v60 = vpack.c.bf16 %v1833_v57, %v1832_v56  ;;  %v1834_v62 = vld [vmem:[%s5987_s3 + $0x140] sm:$0xff] }
  0xff   :  { %1736 = vmatprep.subr.bf16.mxu1 %v5054_v61  ;;  %4642 = vmatprep.subr.bf16.mxu0 %v4641_v26  ;;  %v4665_v61 = vpack.c.bf16 %v1851_v59, %v1850_v58  ;;  %v295_v26 = vld [vmem:[%s5986_s2] sm:$0xf] }
 0x102   :  { %1737 = vmatpush1.bf16.msra.mxu1 %v5052_v63  ;;  %4644 = vmatpush3.bf16.msra.mxu0 %v4643_v16  ;;  %v1835_v63 = vld [vmem:[%s5987_s3 + $0x148] sm:$0xff] }
 0x103   :  { %1738 = vmatprep.subr.bf16.mxu1 %v5057_v1  ;;  %4646 = vmatprep.subr.bf16.mxu0 %v4645_v31  ;;  %v1852_v1 = vld [vmem:[%s5987_s3 + $0x1d0] sm:$0xff] }
 0x106   :  { %1739 = vmatpush1.bf16.msra.mxu1 %v5055_v2  ;;  %4648 = vmatpush3.bf16.msra.mxu0 %v4647_v34  ;;  %v1853_v2 = vld [vmem:[%s5987_s3 + $0x1d8] sm:$0xff] }
 0x107   :  { %1749 = vmatprep.subr.bf16.mxu1 %v5060_v3  ;;  %v4667_v3 = vpack.c.bf16 %v1835_v63, %v1834_v62  ;;  %v5084_v62 = vld [vmem:[#allocation5 + $0x4] ss:$28 sps:$4 sm:$0xff]  }
 0x108   :  { %v5085_v63 = vld [vmem:[#allocation5 + $0x8] ss:$28 sps:$4 sm:$0xff]   ;;  %3610 = vmatprep.subr.bf16.mxu0 %v5084_v62  ;;  %v5163_v62 = vld [vmem:[#allocation5 + $0x2e0] ss:$28 sps:$4 sm:$0xff]  }
 0x109   :  { %1741 = vmatmul.mubr.bf16.vlgmr.msra.gmra.mrb[4].mxu1 %v5656_v23  ;;  %v5432_v23 = vld [vmem:[%s5984_s0 + $0x18] ss:$0 sps:$4 sm:$0xff]  }
 0x10a   :  { %1750 = vmatpush1.bf16.msra.mxu1 %v5058_v4  ;;  %1781 = vmatprep.mubr.bf16.mxu1 %v5511_v0  ;;  %v4669_v4 = vpack.c.bf16 %v1853_v2, %v1852_v1  ;;  %v5087_v1 = vld [vmem:[#allocation5 + $0xc] ss:$28 sps:$4 sm:$0xff]   ;;  %v5090_v2 = vld [vmem:[#allocation5 + $0x3c] ss:$28 sps:$4 sm:$0xff]  }
 0x10b   :  { %1751 = vmatprep.subr.bf16.mxu1 %v5063_v5  ;;  %v1836_v5 = vld [vmem:[%s5987_s3 + $0x150] sm:$0xff] }
 0x10e   :  { %1752 = vmatpush1.bf16.msra.mxu1 %v5061_v6  ;;  %v1837_v6 = vld [vmem:[%s5987_s3 + $0x158] sm:$0xff] }
 0x10f   :  { %1753 = vmatprep.subr.bf16.mxu1 %v5066_v7  ;;  %v1854_v7 = vld [vmem:[%s5987_s3 + $0x1e0] sm:$0xff] }
 0x112   :  { %1754 = vmatpush1.bf16.msra.mxu1 %v5064_v8  ;;  %v1855_v8 = vld [vmem:[%s5987_s3 + $0x1e8] sm:$0xff] }
 0x113   :  { %1755 = vmatprep.subr.bf16.mxu1 %v5069_v9  ;;  %v4671_v9 = vpack.c.bf16 %v1837_v6, %v1836_v5  ;;  %v5091_v6 = vld [vmem:[#allocation5 + $0x40] ss:$28 sps:$4 sm:$0xff]  }
 0x116   :  { %1756 = vmatpush1.bf16.msra.mxu1 %v5067_v10  ;;  %v4673_v10 = vpack.c.bf16 %v1855_v8, %v1854_v7  ;;  %v5096_v7 = vld [vmem:[#allocation5 + $0x74] ss:$28 sps:$4 sm:$0xff]   ;;  %v5099_v8 = vld [vmem:[#allocation5 + $0x7c] ss:$28 sps:$4 sm:$0xff]  }
 0x117   :  { %1757 = vmatprep.subr.bf16.mxu1 %v5072_v11  ;;  %v1838_v11 = vld [vmem:[%s5987_s3 + $0x160] sm:$0xff] }
 0x11a   :  { %1758 = vmatpush1.bf16.msra.mxu1 %v5070_v12  ;;  %v1839_v12 = vld [vmem:[%s5987_s3 + $0x168] sm:$0xff] }
 0x11b   :  { %1759 = vmatprep.subr.bf16.mxu1 %v5075_v13  ;;  %v4675_v13 = vpack.c.bf16 %v1839_v12, %v1838_v11  ;;  %v5102_v11 = vld [vmem:[#allocation5 + $0xac] ss:$28 sps:$4 sm:$0xff]   ;;  %v5105_v12 = vld [vmem:[#allocation5 + $0xb4] ss:$28 sps:$4 sm:$0xff]  }
 0x11c   :  { %v5715_v17 = vpop.f32.mrb[0].mxu1 }
 0x11d   :  { %v5717_v0 = vpop.f32.mrb[1].mxu1 }
 0x11e   :  { %v1623_v18 = vpop.f32.mrb[2].mxu1  ;;  %1760 = vmatpush1.bf16.msra.mxu1 %v5073_v14  ;;  %v1856_v14 = vld [vmem:[%s5987_s3 + $0x1f0] sm:$0xff] }
 0x11f   :  { %v1624_v20 = vpop.f32.mrb[3].mxu1  ;;  %1761 = vmatprep.subr.bf16.mxu1 %v5078_v15  ;;  %v1857_v15 = vld [vmem:[%s5987_s3 + $0x1f8] sm:$0xff] }
 0x120   :  { %v4677_v18 = vpack.c.bf16 %v1857_v15, %v1856_v14  ;;  %v1841_v20 = vld [vmem:[%s5987_s3 + $0x178] sm:$0xff]  ;;  %v5103_v14 = vld [vmem:[#allocation5 + $0xb0] ss:$28 sps:$4 sm:$0xff]   ;;  %v5108_v15 = vld [vmem:[#allocation5 + $0xe4] ss:$28 sps:$4 sm:$0xff]  }
 0x122   :  { %1762 = vmatpush1.bf16.msra.mxu1 %v5076_v19  ;;  %v1840_v19 = vld [vmem:[%s5987_s3 + $0x170] sm:$0xff] }
 0x123   :  { %1763 = vmatprep.subr.bf16.mxu1 %v5081_v21  ;;  %v4679_v21 = vpack.c.bf16 %v1841_v20, %v1840_v19  ;;  %v5106_v19 = vld [vmem:[#allocation5 + $0xe0] ss:$28 sps:$4 sm:$0xff]   ;;  %v5109_v20 = vld [vmem:[#allocation5 + $0xe8] ss:$28 sps:$4 sm:$0xff]  }
 0x126   :  { %1764 = vmatpush1.bf16.msra.mxu1 %v5079_v22  ;;  %v2005_v22 = vld [vmem:[%s5989_s5] sm:$0xff]  ;;  %s5514_s5 = smov 126  }
 0x127   :  { %4650 = vmatprep.subr.bf16.mxu1 %v4649_v38  ;;  %2007 = vrot.lane.b32.xlu0 %v2005_v22, %s5512_s15  ;;  %v5117_v22 = vld [vmem:[#allocation5 + $0x124] ss:$28 sps:$4 sm:$0xff]  }
 0x129   :  { %1782 = vmatmul.mubr.bf16.vlgmr.msra.gmra.mrb[4].mxu1 %v5432_v23  ;;  %v297_v23 = vlaneseq }
 0x12a   :  { %4652 = vmatpush3.bf16.msra.mxu1 %v4651_v42 }
 0x12b   :  { %4654 = vmatprep.subr.bf16.mxu1 %v4653_v43  ;;  %v5846_v24 = vshrl.u32 %v297_v23, 7  ;;  %v5112_v23 = vld [vmem:[#allocation5 + $0x118] ss:$28 sps:$4 sm:$0xff]  }
 0x12d   :  { %v5849_v25 = vsub.s32 0, %v5846_v24  ;;  %v5855_v27 = vsub.s32 1, %v5846_v24  ;;  %v5862_v39 = vsub.s32 2, %v5846_v24  ;;  %v5865_v40 = vsub.s32 3, %v5846_v24 }
 0x12e   :  { %4656 = vmatpush3.bf16.msra.mxu1 %v4655_v48 }
 0x12f   :  { %4658 = vmatprep.subr.bf16.mxu1 %v4657_v49  ;;  %v300_v28 = vrot.slane %v295_v26, %v5849_v25  ;;  %v304_v16 = vrot.slane %v295_v26, %v5855_v27  ;;  %v308_v41 = vrot.slane %v295_v26, %v5862_v39  ;;  %v312_v42 = vrot.slane %v295_v26, %v5865_v40  ;;  %v5115_v26 = vld [vmem:[#allocation5 + $0x120] ss:$28 sps:$4 sm:$0xff]  }
 0x132   :  { %4660 = vmatpush3.bf16.msra.mxu1 %v4659_v54 }
 0x133   :  { %4662 = vmatprep.subr.bf16.mxu1 %v4661_v55  ;;  %v5513_v55 = vmov 1  }
 0x134   :  { %4738 = vset.pattern.permute.xlu0 %v5513_v55 }
 0x136   :  { %4664 = vmatpush3.bf16.msra.mxu1 %v4663_v60 }
 0x137   :  { %4666 = vmatprep.subr.bf16.mxu1 %v4665_v61  ;;  %v5082_v61 = vld [vmem:[#allocation5] ss:$28 sps:$4 sm:$0xff]  }
 0x13a   :  { %4668 = vmatpush3.bf16.msra.mxu1 %v4667_v3  ;;  %v5093_v3 = vld [vmem:[#allocation5 + $0x44] ss:$28 sps:$4 sm:$0xff]  }
 0x13b   :  { %4670 = vmatprep.subr.bf16.mxu1 %v4669_v4  ;;  %v5088_v4 = vld [vmem:[#allocation5 + $0x38] ss:$28 sps:$4 sm:$0xff]  }
 0x13e   :  { %4672 = vmatpush3.bf16.msra.mxu1 %v4671_v9  ;;  %v5094_v9 = vld [vmem:[#allocation5 + $0x70] ss:$28 sps:$4 sm:$0xff]  }
 0x13f   :  { %4674 = vmatprep.subr.bf16.mxu1 %v4673_v10  ;;  %v5097_v10 = vld [vmem:[#allocation5 + $0x78] ss:$28 sps:$4 sm:$0xff]  }
 0x142   :  { %4676 = vmatpush3.bf16.msra.mxu1 %v4675_v13  ;;  %v5100_v13 = vld [vmem:[#allocation5 + $0xa8] ss:$28 sps:$4 sm:$0xff]  }
 0x143   :  { %4678 = vmatprep.subr.bf16.mxu1 %v4677_v18  ;;  %v5111_v18 = vld [vmem:[#allocation5 + $0xec] ss:$28 sps:$4 sm:$0xff]  }
 0x146   :  { %4680 = vmatpush3.bf16.msra.mxu1 %v4679_v21  ;;  %v5114_v21 = vld [vmem:[#allocation5 + $0x11c] ss:$28 sps:$4 sm:$0xff]  }
 0x147   :  { %3692 = vmatprep.subr.bf16.mxu1 %v5087_v1  ;;  %v5165_v1 = vld [vmem:[#allocation5 + $0x2e4] ss:$28 sps:$4 sm:$0xff]  }
 0x199   :  { %v2008_v58 = vpop.permute.xlu0 %2007 }
 0x1bc   :  { %v1578_v29 = vpop.f32.mrb[0].mxu0 }
 0x1bd   :  { %v4681_v30 = vadd.f32 %v1578_v29, %v300_v28  ;;  %v1580_v31 = vpop.f32.mrb[1].mxu0  ;;  %v5120_v28 = vld [vmem:[#allocation5 + $0x154] ss:$28 sps:$4 sm:$0xff]  }
 0x1be   :  { %v4683_v32 = vadd.f32 %v1580_v31, %v304_v16  ;;  %v1582_v33 = vpop.f32.mrb[2].mxu0  ;;  %v5123_v16 = vld [vmem:[#allocation5 + $0x15c] ss:$28 sps:$4 sm:$0xff]   ;;  %v5118_v29 = vld [vmem:[#allocation5 + $0x150] ss:$28 sps:$4 sm:$0xff]  }
 0x1bf   :  { %v4682_v34 = vadd.f32 %v4681_v30, %v5715_v17  ;;  %v1583_v35 = vpop.f32.mrb[3].mxu0  ;;  %v5121_v30 = vld [vmem:[#allocation5 + $0x158] ss:$28 sps:$4 sm:$0xff]   ;;  %v5126_v31 = vld [vmem:[#allocation5 + $0x18c] ss:$28 sps:$4 sm:$0xff]  }
 0x1c0   :  { %v4684_v36 = vadd.f32 %v4683_v32, %v5717_v0  ;;  %v5129_v32 = vld [vmem:[#allocation5 + $0x194] ss:$28 sps:$4 sm:$0xff]   ;;  %v5124_v33 = vld [vmem:[#allocation5 + $0x188] ss:$28 sps:$4 sm:$0xff]  }
 0x1c1   :  { %v1790_v38 = vmax.f32 %v4682_v34, 0.0  ;;  %v5127_v34 = vld [vmem:[#allocation5 + $0x190] ss:$28 sps:$4 sm:$0xff]   ;;  %v5132_v35 = vld [vmem:[#allocation5 + $0x1c4] ss:$28 sps:$4 sm:$0xff]  }
 0x1c2   :  { %v1791_v37 = vmax.f32 %v4684_v36, 0.0  ;;  %v5135_v36 = vld [vmem:[#allocation5 + $0x1cc] ss:$28 sps:$4 sm:$0xff]  }
 0x1c4   :  { %1929 = vmatprep.mubr.f32.mxu0 %v1791_v37  ;;  %v5130_v37 = vld [vmem:[#allocation5 + $0x1c0] ss:$28 sps:$4 sm:$0xff]  }
 0x1c5   :  { %1930 = vmatmul.mubr.f32.vlgmr.msra.gmra.mrb[4].mxu0 %v1790_v38  ;;  %v5133_v38 = vld [vmem:[#allocation5 + $0x1c8] ss:$28 sps:$4 sm:$0xff]  }
 0x1c6   :  { %3611 = vmatpush1.bf16.msra.mxu0 %v5082_v61  ;;  %v5162_v61 = vld [vmem:[#allocation5 + $0x2dc] ss:$28 sps:$4 sm:$0xff]  }
 0x1c7   :  { %3612 = vmatprep.subr.bf16.mxu0 %v5090_v2 }
 0x1ca   :  { %3613 = vmatpush1.bf16.msra.mxu0 %v5088_v4 }
 0x1cb   :  { %3614 = vmatprep.subr.bf16.mxu0 %v5096_v7 }
 0x1ce   :  { %3615 = vmatpush1.bf16.msra.mxu0 %v5094_v9  ;;  %v5169_v9 = vld [vmem:[#allocation5 + $0x318] ss:$28 sps:$4 sm:$0xff]  }
 0x1cf   :  { %3616 = vmatprep.subr.bf16.mxu0 %v5102_v11  ;;  %v5172_v11 = vld [vmem:[#allocation5 + $0x348] ss:$28 sps:$4 sm:$0xff]  }
 0x1d2   :  { %3617 = vmatpush1.bf16.msra.mxu0 %v5100_v13  ;;  %v5183_v13 = vld [vmem:[#allocation5 + $0x38c] ss:$28 sps:$4 sm:$0xff]  }
 0x1d3   :  { %3618 = vmatprep.subr.bf16.mxu0 %v5108_v15  ;;  %v2057_v15 = vsub.s32 6, %v5846_v24 }
 0x1d6   :  { %3619 = vmatpush1.bf16.msra.mxu0 %v5106_v19  ;;  %v2097_v19 = vsub.s32 5, %v5846_v24 }
 0x1d7   :  { %3620 = vmatprep.subr.bf16.mxu0 %v5114_v21 }
 0x1da   :  { %3621 = vmatpush1.bf16.msra.mxu0 %v5112_v23 }
 0x1db   :  { %3622 = vmatprep.subr.bf16.mxu0 %v5120_v28 }
 0x1de   :  { %3623 = vmatpush1.bf16.msra.mxu0 %v5118_v29 }
 0x1df   :  { %3624 = vmatprep.subr.bf16.mxu0 %v5126_v31 }
 0x1e2   :  { %3625 = vmatpush1.bf16.msra.mxu0 %v5124_v33 }
 0x1e3   :  { %3626 = vmatprep.subr.bf16.mxu0 %v5132_v35 }
 0x1e6   :  { %3627 = vmatpush1.bf16.msra.mxu0 %v5130_v37 }
 0x1fc   :  { %v1783_v43 = vpop.f32.mrb[4].mxu1 }
 0x1fd   :  { %v4685_v44 = vadd.f32 %v1783_v43, %v308_v41  ;;  %v1785_v17 = vpop.f32.mrb[5].mxu1  ;;  %v5138_v41 = vld [vmem:[#allocation5 + $0x1fc] ss:$28 sps:$4 sm:$0xff]  }
 0x1fe   :  { %v4686_v45 = vadd.f32 %v1785_v17, %v312_v42  ;;  %v1787_v46 = vpop.f32.mrb[6].mxu1  ;;  %v5141_v42 = vld [vmem:[#allocation5 + $0x204] ss:$28 sps:$4 sm:$0xff]   ;;  %v5136_v43 = vld [vmem:[#allocation5 + $0x1f8] ss:$28 sps:$4 sm:$0xff]   ;;  %3628 = vmatprep.subr.bf16.mxu0 %v5138_v41 }
 0x1ff   :  { %v1788_v0 = vpop.f32.mrb[7].mxu1  ;;  %v1792_v48 = vmax.f32 %v4685_v44, 0.0  ;;  %v5139_v44 = vld [vmem:[#allocation5 + $0x200] ss:$28 sps:$4 sm:$0xff]   ;;  %v5144_v17 = vld [vmem:[#allocation5 + $0x234] ss:$28 sps:$4 sm:$0xff]   ;;  %3629 = vmatpush1.bf16.msra.mxu0 %v5136_v43 }
 0x200   :  { %v1793_v47 = vmax.f32 %v4686_v45, 0.0  ;;  %v5147_v45 = vld [vmem:[#allocation5 + $0x23c] ss:$28 sps:$4 sm:$0xff]   ;;  %v5142_v46 = vld [vmem:[#allocation5 + $0x230] ss:$28 sps:$4 sm:$0xff]   ;;  %3630 = vmatprep.subr.bf16.mxu0 %v5144_v17 }
 0x201   :  { %v5145_v0 = vld [vmem:[#allocation5 + $0x238] ss:$28 sps:$4 sm:$0xff]  }
 0x202   :  { %1999 = vmatprep.mubr.f32.mxu1 %v1793_v47  ;;  %v5150_v47 = vld [vmem:[#allocation5 + $0x26c] ss:$28 sps:$4 sm:$0xff]  }
 0x203   :  { %2000 = vmatmul.mubr.f32.vlgmr.msra.gmra.mrb[8].mxu1 %v1792_v48  ;;  %v5153_v48 = vld [vmem:[#allocation5 + $0x274] ss:$28 sps:$4 sm:$0xff]   ;;  %3631 = vmatpush1.bf16.msra.mxu0 %v5142_v46 }
 0x204   :  { %3693 = vmatpush1.bf16.msra.mxu1 %v5085_v63  ;;  %3632 = vmatprep.subr.bf16.mxu0 %v5150_v47 }
 0x205   :  { %3694 = vmatprep.subr.bf16.mxu1 %v5093_v3 }
 0x208   :  { %3695 = vmatpush1.bf16.msra.mxu1 %v5091_v6  ;;  %v5168_v6 = vld [vmem:[#allocation5 + $0x314] ss:$28 sps:$4 sm:$0xff]  }
 0x209   :  { %3696 = vmatprep.subr.bf16.mxu1 %v5099_v8  ;;  %v5166_v8 = vld [vmem:[#allocation5 + $0x310] ss:$28 sps:$4 sm:$0xff]  }
 0x20c   :  { %3697 = vmatpush1.bf16.msra.mxu1 %v5097_v10  ;;  %v5177_v10 = vld [vmem:[#allocation5 + $0x354] ss:$28 sps:$4 sm:$0xff]  }
 0x20d   :  { %3698 = vmatprep.subr.bf16.mxu1 %v5105_v12  ;;  %v5175_v12 = vld [vmem:[#allocation5 + $0x350] ss:$28 sps:$4 sm:$0xff]  }
 0x210   :  { %3699 = vmatpush1.bf16.msra.mxu1 %v5103_v14  ;;  %v2053_v14 = vsub.s32 4, %v5846_v24 }
 0x211   :  { %3700 = vmatprep.subr.bf16.mxu1 %v5111_v18  ;;  %v2036_v18 = vld [vmem:[%s5990_s6] sm:$0xff] }
 0x212   :  { %v2046_v21 = vrot.slane %v2036_v18, %v5849_v25  ;;  %v2054_v23 = vrot.slane %v2036_v18, %v2053_v14  ;;  %v2090_v28 = vrot.slane %v2036_v18, %v5855_v27  ;;  %v2098_v29 = vrot.slane %v2036_v18, %v2097_v19 }
 0x214   :  { %3701 = vmatpush1.bf16.msra.mxu1 %v5109_v20  ;;  %v2101_v20 = vsub.s32 7, %v5846_v24  ;;  %v2110_v37 = vrot.slane %v2090_v28, %v5855_v27  ;;  %v2118_v41 = vrot.slane %v2098_v29, %v5855_v27  ;;  %v5199_v28 = vld [vmem:[#allocation5 + $0x430] ss:$28 sps:$4 sm:$0xff]  }
 0x215   :  { %3702 = vmatprep.subr.bf16.mxu1 %v5117_v22  ;;  %v2050_v22 = vrot.slane %v2036_v18, %v5862_v39  ;;  %v5207_v29 = vld [vmem:[#allocation5 + $0x46c] ss:$28 sps:$4 sm:$0xff]  }
 0x217   :  { %v2070_v33 = vrot.slane %v2050_v22, %v5849_v25  ;;  %v5198_v22 = vld [vmem:[#allocation5 + $0x42c] ss:$28 sps:$4 sm:$0xff]  }
 0x218   :  { %3703 = vmatpush1.bf16.msra.mxu1 %v5115_v26  ;;  %v2058_v26 = vrot.slane %v2036_v18, %v2057_v15 }
 0x219   :  { %3704 = vmatprep.subr.bf16.mxu1 %v5123_v16  ;;  %v2094_v16 = vrot.slane %v2036_v18, %v5865_v40 }
 0x21a   :  { %v2078_v35 = vrot.slane %v2058_v26, %v5849_v25  ;;  %v5196_v26 = vld [vmem:[#allocation5 + $0x428] ss:$28 sps:$4 sm:$0xff]  }
 0x21c   :  { %3705 = vmatpush1.bf16.msra.mxu1 %v5121_v30  ;;  %v2102_v30 = vrot.slane %v2036_v18, %v2101_v20  ;;  %v5195_v18 = vld [vmem:[#allocation5 + $0x3fc] ss:$28 sps:$4 sm:$0xff]   ;;  %v5190_v20 = vld [vmem:[#allocation5 + $0x3f0] ss:$28 sps:$4 sm:$0xff]  }
 0x21d   :  { %3706 = vmatprep.subr.bf16.mxu1 %v5129_v32  ;;  %v2066_v32 = vrot.slane %v2046_v21, %v5849_v25  ;;  %v5193_v21 = vld [vmem:[#allocation5 + $0x3f8] ss:$28 sps:$4 sm:$0xff]  }
 0x220   :  { %3707 = vmatpush1.bf16.msra.mxu1 %v5127_v34  ;;  %v2074_v34 = vrot.slane %v2054_v23, %v5849_v25  ;;  %v5201_v23 = vld [vmem:[#allocation5 + $0x434] ss:$28 sps:$4 sm:$0xff]  }
 0x221   :  { %3708 = vmatprep.subr.bf16.mxu1 %v5135_v36  ;;  %v2131_v36 = vld [vmem:[%s5991_s7] sm:$0xf] }
 0x222   :  { %v2140_v43 = vrot.slane %v2131_v36, %v5855_v27  ;;  %v2148_v17 = vrot.slane %v2131_v36, %v5865_v40 }
 0x224   :  { %3709 = vmatpush1.bf16.msra.mxu1 %v5133_v38  ;;  %v2114_v38 = vrot.slane %v2094_v16, %v5855_v27  ;;  %v5204_v16 = vld [vmem:[#allocation5 + $0x464] ss:$28 sps:$4 sm:$0xff]  }
 0x225   :  { %3710 = vmatprep.subr.bf16.mxu1 %v5141_v42  ;;  %v2122_v42 = vrot.slane %v2102_v30, %v5855_v27  ;;  %v5202_v30 = vld [vmem:[#allocation5 + $0x460] ss:$28 sps:$4 sm:$0xff]  }
 0x228   :  { %3711 = vmatpush1.bf16.msra.mxu1 %v5139_v44  ;;  %v2136_v44 = vrot.slane %v2131_v36, %v5849_v25 }
 0x229   :  { %3712 = vmatprep.subr.bf16.mxu1 %v5147_v45 }
 0x22c   :  { %3713 = vmatpush1.bf16.msra.mxu1 %v5145_v0 }
 0x22d   :  { %3714 = vmatprep.subr.bf16.mxu1 %v5153_v48 }
 0x298   :  { %v4535_v49 = vpop.f32.mrb[4].mxu0 }
 0x299   :  { %v4536_v50 = vpop.f32.mrb[5].mxu0 }
 0x29a   :  { %v4537_v51 = vadd.f32 %v4536_v50, %v4535_v49  ;;  %v5148_v49 = vld [vmem:[#allocation5 + $0x268] ss:$28 sps:$4 sm:$0xff]   ;;  %v5151_v50 = vld [vmem:[#allocation5 + $0x270] ss:$28 sps:$4 sm:$0xff]  }
 0x29b   :  { %3633 = vmatpush1.bf16.msra.mxu0 %v5148_v49  ;;  %3715 = vmatpush1.bf16.msra.mxu1 %v5151_v50 }
 0x29c   :  { %v1932_v56 = vadd.f32 %v4537_v51, %v4262_v52  ;;  %v5156_v51 = vld [vmem:[#allocation5 + $0x2a4] ss:$28 sps:$4 sm:$0xff]   ;;  %v5159_v52 = vld [vmem:[#allocation5 + $0x2ac] ss:$28 sps:$4 sm:$0xff]  }
 0x29d   :  { %3634 = vmatprep.subr.bf16.mxu0 %v5156_v51  ;;  %3716 = vmatprep.subr.bf16.mxu1 %v5159_v52 }
 0x2d6   :  { %v4570_v53 = vpop.f32.mrb[8].mxu1 }
 0x2d7   :  { %v4571_v54 = vpop.f32.mrb[9].mxu1 }
 0x2d8   :  { %v4572_v57 = vadd.f32 %v4571_v54, %v4570_v53  ;;  %v5154_v53 = vld [vmem:[#allocation5 + $0x2a0] ss:$28 sps:$4 sm:$0xff]   ;;  %v5157_v54 = vld [vmem:[#allocation5 + $0x2a8] ss:$28 sps:$4 sm:$0xff]  }
 0x2d9   :  { %3635 = vmatpush1.bf16.msra.mxu0 %v5154_v53  ;;  %3717 = vmatpush1.bf16.msra.mxu1 %v5157_v54  ;;  %v2144_v53 = vrot.slane %v2131_v36, %v5862_v39  ;;  %v5216_v36 = vld [vmem:[#allocation5 + $0x4d4] ss:$28 sps:$4 sm:$0xff]  }
 0x2da   :  { %v5873_v59 = vadd.f32 %v4572_v57, %v1932_v56  ;;  %3636 = vmatprep.subr.bf16.mxu0 %v5162_v61  ;;  %3718 = vmatprep.subr.bf16.mxu1 %v5165_v1 }
 0x2dc   :  { %v2010_v60 = vmul.f32 %v2008_v58, %v5873_v59  ;;  %v5879_v5 = vmul.f32 %v5873_v59, %v5873_v59  ;;  %5402 = vlog2.f32 %v5873_v59 }
 0x2dd   :  { %3719 = vmatpush1.bf16.msra.mxu1 %v5163_v62 }
 0x2de   :  { %2012 = vrot.lane.b32.xlu0 %v2010_v60, %s5514_s5  ;;  %v5160_v60 = vld [vmem:[#allocation5 + $0x2d8] ss:$28 sps:$4 sm:$0xff]  }
 0x2df   :  { %3637 = vmatpush1.bf16.msra.mxu0 %v5160_v60 }
 0x2e0   :  { %3638 = vmatprep.subr.bf16.mxu0 %v5168_v6 }
 0x2e2   :  { %2018 = vrot.lane.b32.xlu0 %v5879_v5, %s5512_s15 }
 0x2e3   :  { %3639 = vmatpush1.bf16.msra.mxu0 %v5166_v8  ;;  %v5181_v8 = vld [vmem:[#allocation5 + $0x388] ss:$28 sps:$4 sm:$0xff]  }
 0x2e6   :  { %v5403_v58 = vpop.eup %5402 }
 0x2e7   :  { %v2023_v2 = vmul.f32 0.6931472, %v5403_v58 }
 0x350   :  { %v2013_v56 = vpop.permute.xlu0 %2012 }
 0x351   :  { %v2015_v57 = vadd.f32 %v2013_v56, %v5873_v59  ;;  %v5171_v59 = vld [vmem:[#allocation5 + $0x31c] ss:$28 sps:$4 sm:$0xff]  }
 0x352   :  { %3720 = vmatprep.subr.bf16.mxu1 %v5171_v59 }
 0x353   :  { %2039 = vperm.xlu1 %4736, %v2015_v57   ;;  %3721 = vmatpush1.bf16.msra.mxu1 %v5169_v9 }
 0x354   :  { %v2019_v63 = vpop.permute.xlu0 %2018  ;;  %3722 = vmatprep.subr.bf16.mxu1 %v5177_v10  ;;  %v5189_v10 = vld [vmem:[#allocation5 + $0x3c4] ss:$28 sps:$4 sm:$0xff]  }
 0x355   :  { %v2021_v3 = vadd.f32 %v2019_v63, %v5879_v5  ;;  %v5174_v5 = vld [vmem:[#allocation5 + $0x34c] ss:$28 sps:$4 sm:$0xff]  }
 0x356   :  { %3640 = vmatprep.subr.bf16.mxu0 %v5174_v5  ;;  %v5186_v5 = vld [vmem:[#allocation5 + $0x3bc] ss:$28 sps:$4 sm:$0xff]  }
 0x357   :  { %v2024_v4 = vsub.f32 %v2021_v3, %v2023_v2  ;;  %4737 = vset.pattern.permute.xlu1 %v5513_v55  ;;  %3641 = vmatpush1.bf16.msra.mxu0 %v5172_v11  ;;  %v5180_v55 = vld [vmem:[#allocation5 + $0x384] ss:$28 sps:$4 sm:$0xff]  }
 0x358   :  { %2084 = vperm.xlu1 %4737, %v2015_v57   ;;  %3723 = vmatpush1.bf16.msra.mxu1 %v5175_v12  ;;  %v5184_v12 = vld [vmem:[#allocation5 + $0x3b8] ss:$28 sps:$4 sm:$0xff]  }
 0x359   :  { %v4263_v7 = vadd.f32 -0.5, %v2024_v4  ;;  %3651 = vmatprep.subr.bf16.mxu0 %v5180_v55  ;;  %3733 = vmatprep.subr.bf16.mxu1 %v5183_v13  ;;  %v5187_v55 = vld [vmem:[#allocation5 + $0x3c0] ss:$28 sps:$4 sm:$0xff]   ;;  %v5192_v13 = vld [vmem:[#allocation5 + $0x3f4] ss:$28 sps:$4 sm:$0xff]  }
 0x35c   :  { %2027 = vrot.lane.b32.xlu1 %v4263_v7, %s5514_s5  ;;  %v5178_v7 = vld [vmem:[#allocation5 + $0x380] ss:$28 sps:$4 sm:$0xff]  }
 0x3d2   :  { %v2040_v31 = vpop.permute.xlu1 %2039 }
 0x3d3   :  { %v2079_v45 = vmul.f32 %v2066_v32, %v2040_v31  ;;  %v2080_v46 = vmul.f32 %v2070_v33, %v2040_v31  ;;  %v2081_v0 = vmul.f32 %v2074_v34, %v2040_v31  ;;  %v2082_v47 = vmul.f32 %v2078_v35, %v2040_v31  ;;  %v5205_v31 = vld [vmem:[#allocation5 + $0x468] ss:$28 sps:$4 sm:$0xff]   ;;  %v5210_v32 = vld [vmem:[#allocation5 + $0x49c] ss:$28 sps:$4 sm:$0xff]  }
 0x3d4   :  { %v5213_v33 = vld [vmem:[#allocation5 + $0x4a4] ss:$28 sps:$4 sm:$0xff]   ;;  %v5208_v34 = vld [vmem:[#allocation5 + $0x498] ss:$28 sps:$4 sm:$0xff]  }
 0x3d5   :  { %v5211_v35 = vld [vmem:[#allocation5 + $0x4a0] ss:$28 sps:$4 sm:$0xff]  }
 0x3d7   :  { %v2085_v48 = vpop.permute.xlu1 %2084 }
 0x3d8   :  { %v2123_v49 = vmul.f32 %v2110_v37, %v2085_v48  ;;  %v2124_v50 = vmul.f32 %v2114_v38, %v2085_v48  ;;  %v2125_v51 = vmul.f32 %v2118_v41, %v2085_v48  ;;  %v2126_v52 = vmul.f32 %v2122_v42, %v2085_v48  ;;  %v5219_v37 = vld [vmem:[#allocation5 + $0x4dc] ss:$28 sps:$4 sm:$0xff]   ;;  %v5214_v38 = vld [vmem:[#allocation5 + $0x4d0] ss:$28 sps:$4 sm:$0xff]  }
 0x3d9   :  { %v5217_v41 = vld [vmem:[#allocation5 + $0x4d8] ss:$28 sps:$4 sm:$0xff]   ;;  %v5222_v42 = vld [vmem:[#allocation5 + $0x50c] ss:$28 sps:$4 sm:$0xff]  }
 0x3da   :  { %v2127_v54 = vadd.f32 %v2123_v49, %v2079_v45  ;;  %v2128_v56 = vadd.f32 %v2124_v50, %v2080_v46  ;;  %v2129_v57 = vadd.f32 %v2125_v51, %v2081_v0  ;;  %v2130_v58 = vadd.f32 %v2126_v52, %v2082_v47  ;;  %v5228_v45 = vld [vmem:[#allocation5 + $0x544] ss:$28 sps:$4 sm:$0xff]   ;;  %v5231_v46 = vld [vmem:[#allocation5 + $0x54c] ss:$28 sps:$4 sm:$0xff]   ;;  %v5234_v48 = vld [vmem:[#allocation5 + $0x57c] ss:$28 sps:$4 sm:$0xff]  }
 0x3db   :  { %v2028_v60 = vpop.permute.xlu1 %2027  ;;  %v5226_v0 = vld [vmem:[#allocation5 + $0x540] ss:$28 sps:$4 sm:$0xff]   ;;  %v5229_v47 = vld [vmem:[#allocation5 + $0x548] ss:$28 sps:$4 sm:$0xff]   ;;  %v5232_v50 = vld [vmem:[#allocation5 + $0x578] ss:$28 sps:$4 sm:$0xff]  }
 0x3dc   :  { %v2031_v61 = vsel %vm2030_vm0, %v2028_v60, 0.0  ;;  %v2154_v62 = vadd.f32 %v2140_v43, %v2128_v56  ;;  %v2153_v63 = vadd.f32 %v2136_v44, %v2127_v54  ;;  %v2156_v1 = vadd.f32 %v2148_v17, %v2130_v58  ;;  %v5225_v43 = vld [vmem:[#allocation5 + $0x514] ss:$28 sps:$4 sm:$0xff]   ;;  %v5220_v44 = vld [vmem:[#allocation5 + $0x508] ss:$28 sps:$4 sm:$0xff]  }
 0x3dd   :  { %2032 = vadd.xlane.f32.xlu0 %v2031_v61  ;;  %v5920_v2 = vadd.f32 %v2144_v53, %v2129_v57  ;;  %v5223_v17 = vld [vmem:[#allocation5 + $0x510] ss:$28 sps:$4 sm:$0xff]   ;;  %v5237_v49 = vld [vmem:[#allocation5 + $0x584] ss:$28 sps:$4 sm:$0xff]   ;;  %v5243_v53 = vld [vmem:[#allocation5 + $0x5bc] ss:$28 sps:$4 sm:$0xff]  }
 0x3de   :  { %v2158_v3 = vmax.f32 %v2154_v62, 0.0  ;;  %v2157_v4 = vmax.f32 %v2153_v63, 0.0  ;;  %v2160_v6 = vmax.f32 %v2156_v1, 0.0  ;;  %v5235_v51 = vld [vmem:[#allocation5 + $0x580] ss:$28 sps:$4 sm:$0xff]  }
 0x3df   :  { %v5240_v52 = vld [vmem:[#allocation5 + $0x5b4] ss:$28 sps:$4 sm:$0xff]   ;;  %v5246_v57 = vld [vmem:[#allocation5 + $0x5ec] ss:$28 sps:$4 sm:$0xff]   ;;  %v5252_v62 = vld [vmem:[#allocation5 + $0x624] ss:$28 sps:$4 sm:$0xff]  }
 0x3e0   :  { %v5922_v59 = vpack.c.bf16 %v2158_v3, %v2158_v3  ;;  %v5924_v9 = vpack.c.bf16 %v2157_v4, %v2157_v4  ;;  %v5930_v11 = vpack.c.bf16 %v2160_v6, %v2160_v6  ;;  %v5238_v54 = vld [vmem:[#allocation5 + $0x5b0] ss:$28 sps:$4 sm:$0xff]   ;;  %v5241_v56 = vld [vmem:[#allocation5 + $0x5b8] ss:$28 sps:$4 sm:$0xff]   ;;  %v5244_v60 = vld [vmem:[#allocation5 + $0x5e8] ss:$28 sps:$4 sm:$0xff]  }
 0x3e1   :  { %v5249_v58 = vld [vmem:[#allocation5 + $0x5f4] ss:$28 sps:$4 sm:$0xff]   ;;  %v5255_v63 = vld [vmem:[#allocation5 + $0x62c] ss:$28 sps:$4 sm:$0xff]   ;;  %v5250_v1 = vld [vmem:[#allocation5 + $0x620] ss:$28 sps:$4 sm:$0xff]  }
 0x3e2   :  { %3642 = vmatprep.mubr.bf16.mxu0 %v5922_v59  ;;  %3724 = vmatprep.mubr.bf16.mxu1 %v5922_v59  ;;  %v5247_v61 = vld [vmem:[#allocation5 + $0x5f0] ss:$28 sps:$4 sm:$0xff]   ;;  %v5253_v3 = vld [vmem:[#allocation5 + $0x628] ss:$28 sps:$4 sm:$0xff]   ;;  %v5258_v4 = vld [vmem:[#allocation5 + $0x65c] ss:$28 sps:$4 sm:$0xff]  }
 0x3e3   :  { %3643 = vmatmul.mubr.bf16.vlgmr.msra.gmra.mrb[8].mxu0 %v5924_v9  ;;  %3725 = vmatmul.mubr.bf16.vlgmr.msra.gmra.mrb[12].mxu1 %v5924_v9  ;;  %v5261_v6 = vld [vmem:[#allocation5 + $0x664] ss:$28 sps:$4 sm:$0xff]  }
 0x3e4   :  { %3652 = vmatpush1.bf16.msra.mxu0 %v5178_v7  ;;  %3734 = vmatpush1.bf16.msra.mxu1 %v5181_v8  ;;  %v5256_v7 = vld [vmem:[#allocation5 + $0x658] ss:$28 sps:$4 sm:$0xff]   ;;  %v5259_v8 = vld [vmem:[#allocation5 + $0x660] ss:$28 sps:$4 sm:$0xff]  }
 0x3e5   :  { %3683 = vmatprep.mubr.bf16.mxu0 %v5930_v11  ;;  %3765 = vmatprep.mubr.bf16.mxu1 %v5930_v11 }
 0x3e6   :  { %3653 = vmatprep.subr.bf16.mxu0 %v5186_v5  ;;  %3735 = vmatprep.subr.bf16.mxu1 %v5189_v10  ;;  %v5264_v5 = vld [vmem:[#allocation5 + $0x694] ss:$28 sps:$4 sm:$0xff]   ;;  %v5267_v10 = vld [vmem:[#allocation5 + $0x69c] ss:$28 sps:$4 sm:$0xff]  }
 0x3e8   :  { %3654 = vmatpush1.bf16.msra.mxu0 %v5184_v12  ;;  %3736 = vmatpush1.bf16.msra.mxu1 %v5187_v55  ;;  %v5262_v12 = vld [vmem:[#allocation5 + $0x690] ss:$28 sps:$4 sm:$0xff]   ;;  %v5265_v55 = vld [vmem:[#allocation5 + $0x698] ss:$28 sps:$4 sm:$0xff]  }
 0x3e9   :  { %3655 = vmatprep.subr.bf16.mxu0 %v5192_v13  ;;  %3737 = vmatprep.subr.bf16.mxu1 %v5195_v18  ;;  %v5270_v13 = vld [vmem:[#allocation5 + $0x6cc] ss:$28 sps:$4 sm:$0xff]   ;;  %v5273_v18 = vld [vmem:[#allocation5 + $0x6d4] ss:$28 sps:$4 sm:$0xff]  }
 0x3ec   :  { %3656 = vmatpush1.bf16.msra.mxu0 %v5190_v20  ;;  %3738 = vmatpush1.bf16.msra.mxu1 %v5193_v21  ;;  %v5268_v20 = vld [vmem:[#allocation5 + $0x6c8] ss:$28 sps:$4 sm:$0xff]   ;;  %v5271_v21 = vld [vmem:[#allocation5 + $0x6d0] ss:$28 sps:$4 sm:$0xff]  }
 0x3ed   :  { %3657 = vmatprep.subr.bf16.mxu0 %v5198_v22  ;;  %3739 = vmatprep.subr.bf16.mxu1 %v5201_v23  ;;  %v2159_v22 = vmax.f32 %v5920_v2, 0.0  ;;  %v5276_v23 = vld [vmem:[#allocation5 + $0x14] ss:$28 sps:$4 sm:$0xff]   ;;  %v5279_v2 = vld [vmem:[#allocation5 + $0x48] ss:$28 sps:$4 sm:$0xff]  }
 0x3f0   :  { %3658 = vmatpush1.bf16.msra.mxu0 %v5196_v26  ;;  %3740 = vmatpush1.bf16.msra.mxu1 %v5199_v28  ;;  %v5277_v26 = vld [vmem:[#allocation5 + $0x1d8] ss:$28 sps:$4 sm:$0xff]   ;;  %v5274_v28 = vld [vmem:[#allocation5 + $0x10] ss:$28 sps:$4 sm:$0xff]  }
 0x3f1   :  { %3659 = vmatprep.subr.bf16.mxu0 %v5204_v16  ;;  %3741 = vmatprep.subr.bf16.mxu1 %v5207_v29  ;;  %v5935_v16 = vpack.c.bf16 %v2159_v22, %v2159_v22  ;;  %v5278_v29 = vld [vmem:[#allocation5 + $0x18] ss:$28 sps:$4 sm:$0xff]   ;;  %v5341_v22 = vld [vmem:[#allocation5 + $0x2ec] ss:$28 sps:$4 sm:$0xff]  }
 0x3f4   :  { %3660 = vmatpush1.bf16.msra.mxu0 %v5202_v30  ;;  %3742 = vmatpush1.bf16.msra.mxu1 %v5205_v31  ;;  %v5281_v30 = vld [vmem:[#allocation5 + $0x4c] ss:$28 sps:$4 sm:$0xff]  }
 0x3f5   :  { %3661 = vmatprep.subr.bf16.mxu0 %v5210_v32  ;;  %3743 = vmatprep.subr.bf16.mxu1 %v5213_v33  ;;  %v5282_v31 = vld [vmem:[#allocation5 + $0x210] ss:$28 sps:$4 sm:$0xff]   ;;  %v5286_v33 = vld [vmem:[#allocation5 + $0x84] ss:$28 sps:$4 sm:$0xff]  }
 0x3f6   :  { %v5283_v32 = vld [vmem:[#allocation5 + $0x50] ss:$28 sps:$4 sm:$0xff]  }
 0x3f8   :  { %3662 = vmatpush1.bf16.msra.mxu0 %v5208_v34  ;;  %3744 = vmatpush1.bf16.msra.mxu1 %v5211_v35  ;;  %v5287_v34 = vld [vmem:[#allocation5 + $0x248] ss:$28 sps:$4 sm:$0xff]   ;;  %v5284_v35 = vld [vmem:[#allocation5 + $0x80] ss:$28 sps:$4 sm:$0xff]  }
 0x3f9   :  { %3663 = vmatprep.subr.bf16.mxu0 %v5216_v36  ;;  %3745 = vmatprep.subr.bf16.mxu1 %v5219_v37  ;;  %v5288_v36 = vld [vmem:[#allocation5 + $0x88] ss:$28 sps:$4 sm:$0xff]   ;;  %v5291_v37 = vld [vmem:[#allocation5 + $0xbc] ss:$28 sps:$4 sm:$0xff]  }
 0x3fc   :  { %3664 = vmatpush1.bf16.msra.mxu0 %v5214_v38  ;;  %3746 = vmatpush1.bf16.msra.mxu1 %v5217_v41  ;;  %v5292_v38 = vld [vmem:[#allocation5 + $0x280] ss:$28 sps:$4 sm:$0xff]   ;;  %v5289_v41 = vld [vmem:[#allocation5 + $0xb8] ss:$28 sps:$4 sm:$0xff]  }
 0x3fd   :  { %3665 = vmatprep.subr.bf16.mxu0 %v5222_v42  ;;  %3747 = vmatprep.subr.bf16.mxu1 %v5225_v43  ;;  %v5293_v42 = vld [vmem:[#allocation5 + $0xc0] ss:$28 sps:$4 sm:$0xff]   ;;  %v5296_v43 = vld [vmem:[#allocation5 + $0xf4] ss:$28 sps:$4 sm:$0xff]  }
 0x400   :  { %3666 = vmatpush1.bf16.msra.mxu0 %v5220_v44  ;;  %3748 = vmatpush1.bf16.msra.mxu1 %v5223_v17  ;;  %v5294_v44 = vld [vmem:[#allocation5 + $0xf0] ss:$28 sps:$4 sm:$0xff]   ;;  %v5298_v17 = vld [vmem:[#allocation5 + $0xf8] ss:$28 sps:$4 sm:$0xff]  }
 0x401   :  { %3667 = vmatprep.subr.bf16.mxu0 %v5228_v45  ;;  %3749 = vmatprep.subr.bf16.mxu1 %v5231_v46  ;;  %v5301_v45 = vld [vmem:[#allocation5 + $0x12c] ss:$28 sps:$4 sm:$0xff]  }
 0x402   :  { %v5302_v46 = vld [vmem:[#allocation5 + $0x2f0] ss:$28 sps:$4 sm:$0xff]  }
 0x404   :  { %3668 = vmatpush1.bf16.msra.mxu0 %v5226_v0  ;;  %3750 = vmatpush1.bf16.msra.mxu1 %v5229_v47  ;;  %v5299_v0 = vld [vmem:[#allocation5 + $0x128] ss:$28 sps:$4 sm:$0xff]   ;;  %v5303_v47 = vld [vmem:[#allocation5 + $0x130] ss:$28 sps:$4 sm:$0xff]  }
 0x405   :  { %3669 = vmatprep.subr.bf16.mxu0 %v5234_v48  ;;  %3751 = vmatprep.subr.bf16.mxu1 %v5237_v49  ;;  %v5306_v48 = vld [vmem:[#allocation5 + $0x164] ss:$28 sps:$4 sm:$0xff]  }
 0x406   :  { %v5307_v49 = vld [vmem:[#allocation5 + $0x328] ss:$28 sps:$4 sm:$0xff]  }
 0x408   :  { %3670 = vmatpush1.bf16.msra.mxu0 %v5232_v50  ;;  %3752 = vmatpush1.bf16.msra.mxu1 %v5235_v51  ;;  %v5304_v50 = vld [vmem:[#allocation5 + $0x160] ss:$28 sps:$4 sm:$0xff]   ;;  %v5308_v51 = vld [vmem:[#allocation5 + $0x168] ss:$28 sps:$4 sm:$0xff]  }
 0x409   :  { %3671 = vmatprep.subr.bf16.mxu0 %v5240_v52  ;;  %3753 = vmatprep.subr.bf16.mxu1 %v5243_v53  ;;  %v5311_v52 = vld [vmem:[#allocation5 + $0x19c] ss:$28 sps:$4 sm:$0xff]  }
 0x40a   :  { %v5312_v53 = vld [vmem:[#allocation5 + $0x360] ss:$28 sps:$4 sm:$0xff]  }
 0x40c   :  { %3672 = vmatpush1.bf16.msra.mxu0 %v5238_v54  ;;  %3754 = vmatpush1.bf16.msra.mxu1 %v5241_v56  ;;  %v5309_v54 = vld [vmem:[#allocation5 + $0x198] ss:$28 sps:$4 sm:$0xff]   ;;  %v5313_v56 = vld [vmem:[#allocation5 + $0x1a0] ss:$28 sps:$4 sm:$0xff]  }
 0x40d   :  { %3673 = vmatprep.subr.bf16.mxu0 %v5246_v57  ;;  %3755 = vmatprep.subr.bf16.mxu1 %v5249_v58  ;;  %v5316_v57 = vld [vmem:[#allocation5 + $0x1d4] ss:$28 sps:$4 sm:$0xff]  }
 0x40e   :  { %v5317_v58 = vld [vmem:[#allocation5 + $0x558] ss:$28 sps:$4 sm:$0xff]  }
 0x410   :  { %3674 = vmatpush1.bf16.msra.mxu0 %v5244_v60  ;;  %3756 = vmatpush1.bf16.msra.mxu1 %v5247_v61  ;;  %v5314_v60 = vld [vmem:[#allocation5 + $0x1d0] ss:$28 sps:$4 sm:$0xff]   ;;  %v5318_v61 = vld [vmem:[#allocation5 + $0x398] ss:$28 sps:$4 sm:$0xff]  }
 0x411   :  { %3675 = vmatprep.subr.bf16.mxu0 %v5252_v62  ;;  %3757 = vmatprep.subr.bf16.mxu1 %v5255_v63  ;;  %v5321_v62 = vld [vmem:[#allocation5 + $0x20c] ss:$28 sps:$4 sm:$0xff]  }
 0x412   :  { %v5322_v63 = vld [vmem:[#allocation5 + $0x590] ss:$28 sps:$4 sm:$0xff]  }
 0x414   :  { %3676 = vmatpush1.bf16.msra.mxu0 %v5250_v1  ;;  %3758 = vmatpush1.bf16.msra.mxu1 %v5253_v3  ;;  %v5319_v1 = vld [vmem:[#allocation5 + $0x208] ss:$28 sps:$4 sm:$0xff]   ;;  %v5323_v3 = vld [vmem:[#allocation5 + $0x3d0] ss:$28 sps:$4 sm:$0xff]  }
 0x415   :  { %3677 = vmatprep.subr.bf16.mxu0 %v5258_v4  ;;  %3759 = vmatprep.subr.bf16.mxu1 %v5261_v6  ;;  %v5326_v4 = vld [vmem:[#allocation5 + $0x244] ss:$28 sps:$4 sm:$0xff]  }
 0x416   :  { %v5327_v6 = vld [vmem:[#allocation5 + $0x5c8] ss:$28 sps:$4 sm:$0xff]  }
 0x418   :  { %3678 = vmatpush1.bf16.msra.mxu0 %v5256_v7  ;;  %3760 = vmatpush1.bf16.msra.mxu1 %v5259_v8  ;;  %v5324_v7 = vld [vmem:[#allocation5 + $0x240] ss:$28 sps:$4 sm:$0xff]   ;;  %v5328_v8 = vld [vmem:[#allocation5 + $0x408] ss:$28 sps:$4 sm:$0xff]  }
 0x419   :  { %3679 = vmatprep.subr.bf16.mxu0 %v5264_v5  ;;  %3761 = vmatprep.subr.bf16.mxu1 %v5267_v10  ;;  %v5331_v5 = vld [vmem:[#allocation5 + $0x27c] ss:$28 sps:$4 sm:$0xff]  }
 0x41a   :  { %v5332_v10 = vld [vmem:[#allocation5 + $0x600] ss:$28 sps:$4 sm:$0xff]  }
 0x41c   :  { %3680 = vmatpush1.bf16.msra.mxu0 %v5262_v12  ;;  %3762 = vmatpush1.bf16.msra.mxu1 %v5265_v55  ;;  %v5329_v12 = vld [vmem:[#allocation5 + $0x278] ss:$28 sps:$4 sm:$0xff]   ;;  %v5333_v55 = vld [vmem:[#allocation5 + $0x440] ss:$28 sps:$4 sm:$0xff]  }
 0x41d   :  { %3681 = vmatprep.subr.bf16.mxu0 %v5270_v13  ;;  %3763 = vmatprep.subr.bf16.mxu1 %v5273_v18  ;;  %v5336_v13 = vld [vmem:[#allocation5 + $0x2b4] ss:$28 sps:$4 sm:$0xff]  }
 0x41e   :  { %v5337_v18 = vld [vmem:[#allocation5 + $0x638] ss:$28 sps:$4 sm:$0xff]  }
 0x420   :  { %3682 = vmatpush1.bf16.msra.mxu0 %v5268_v20  ;;  %3764 = vmatpush1.bf16.msra.mxu1 %v5271_v21  ;;  %v5334_v20 = vld [vmem:[#allocation5 + $0x2b0] ss:$28 sps:$4 sm:$0xff]   ;;  %v5338_v21 = vld [vmem:[#allocation5 + $0x478] ss:$28 sps:$4 sm:$0xff]  }
 0x421   :  { %3774 = vmatprep.subr.bf16.mxu0 %v5276_v23  ;;  %4573 = vmatprep.subr.bf16.mxu1 %v5277_v26  ;;  %v5342_v23 = vld [vmem:[#allocation5 + $0x670] ss:$28 sps:$4 sm:$0xff]   ;;  %v5339_v26 = vld [vmem:[#allocation5 + $0x2e8] ss:$28 sps:$4 sm:$0xff]  }
 0x423   :  { %3684 = vmatmul.mubr.bf16.vlgmr.msra.gmra.mrb[8].mxu0 %v5935_v16  ;;  %3766 = vmatmul.mubr.bf16.vlgmr.msra.gmra.mrb[12].mxu1 %v5935_v16 }
 0x424   :  { %3775 = vmatpush1.bf16.msra.mxu0 %v5274_v28  ;;  %3806 = vmatprep.mubr.bf16.mxu0 %v5922_v59  ;;  %v5343_v28 = vld [vmem:[#allocation5 + $0x4b0] ss:$28 sps:$4 sm:$0xff]  }
 0x425   :  { %4574 = vmatpush3.bf16.msra.mxu1 %v5278_v29  ;;  %3888 = vmatprep.mubr.bf16.mxu1 %v5922_v59  ;;  %v5297_v59 = vld [vmem:[#allocation5 + $0x2b8] ss:$28 sps:$4 sm:$0xff]   ;;  %v5346_v29 = vld [vmem:[#allocation5 + $0x324] ss:$28 sps:$4 sm:$0xff]  }
 0x426   :  { %3776 = vmatprep.subr.bf16.mxu0 %v5281_v30  ;;  %4575 = vmatprep.subr.bf16.mxu1 %v5282_v31  ;;  %v5347_v30 = vld [vmem:[#allocation5 + $0x6a8] ss:$28 sps:$4 sm:$0xff]   ;;  %v5344_v31 = vld [vmem:[#allocation5 + $0x320] ss:$28 sps:$4 sm:$0xff]  }
 0x428   :  { %3777 = vmatpush1.bf16.msra.mxu0 %v5279_v2  ;;  %v5348_v2 = vld [vmem:[#allocation5 + $0x4e8] ss:$28 sps:$4 sm:$0xff]  }
 0x429   :  { %4576 = vmatpush3.bf16.msra.mxu1 %v5283_v32  ;;  %3778 = vmatprep.subr.bf16.mxu0 %v5286_v33  ;;  %v5351_v32 = vld [vmem:[#allocation5 + $0x35c] ss:$28 sps:$4 sm:$0xff]  }
 0x42a   :  { %4577 = vmatprep.subr.bf16.mxu1 %v5287_v34  ;;  %v5352_v33 = vld [vmem:[#allocation5 + $0x6e0] ss:$28 sps:$4 sm:$0xff]   ;;  %v5349_v34 = vld [vmem:[#allocation5 + $0x358] ss:$28 sps:$4 sm:$0xff]  }
 0x42c   :  { %3779 = vmatpush1.bf16.msra.mxu0 %v5284_v35  ;;  %v5353_v35 = vld [vmem:[#allocation5 + $0x520] ss:$28 sps:$4 sm:$0xff]  }
 0x42d   :  { %4578 = vmatpush3.bf16.msra.mxu1 %v5288_v36  ;;  %3780 = vmatprep.subr.bf16.mxu0 %v5291_v37  ;;  %v5356_v36 = vld [vmem:[#allocation5 + $0x394] ss:$28 sps:$4 sm:$0xff]  }
 0x42e   :  { %4579 = vmatprep.subr.bf16.mxu1 %v5292_v38  ;;  %v5354_v37 = vld [vmem:[#allocation5 + $0x390] ss:$28 sps:$4 sm:$0xff]  }
 0x42f   :  { %v5359_v38 = vld [vmem:[#allocation5 + $0x3cc] ss:$28 sps:$4 sm:$0xff]  }
 0x430   :  { %3781 = vmatpush1.bf16.msra.mxu0 %v5289_v41  ;;  %v5357_v41 = vld [vmem:[#allocation5 + $0x3c8] ss:$28 sps:$4 sm:$0xff]  }
 0x431   :  { %4580 = vmatpush3.bf16.msra.mxu1 %v5293_v42  ;;  %3782 = vmatprep.subr.bf16.mxu0 %v5296_v43  ;;  %v5362_v42 = vld [vmem:[#allocation5 + $0x404] ss:$28 sps:$4 sm:$0xff]  }
 0x432   :  { %4581 = vmatprep.subr.bf16.mxu1 %v5297_v59  ;;  %v5360_v43 = vld [vmem:[#allocation5 + $0x400] ss:$28 sps:$4 sm:$0xff]  }
 0x433   :  { %v5365_v59 = vld [vmem:[#allocation5 + $0x43c] ss:$28 sps:$4 sm:$0xff]  }
 0x434   :  { %3783 = vmatpush1.bf16.msra.mxu0 %v5294_v44 }
 0x435   :  { %4582 = vmatpush3.bf16.msra.mxu1 %v5298_v17  ;;  %3784 = vmatprep.subr.bf16.mxu0 %v5301_v45  ;;  %v5368_v17 = vld [vmem:[#allocation5 + $0x474] ss:$28 sps:$4 sm:$0xff]  }
 0x436   :  { %4583 = vmatprep.subr.bf16.mxu1 %v5302_v46  ;;  %v5366_v45 = vld [vmem:[#allocation5 + $0x470] ss:$28 sps:$4 sm:$0xff]   ;;  %v5369_v46 = vld [vmem:[#allocation5 + $0x4a8] ss:$28 sps:$4 sm:$0xff]  }
 0x438   :  { %3785 = vmatpush1.bf16.msra.mxu0 %v5299_v0  ;;  %v5374_v0 = vld [vmem:[#allocation5 + $0x4e4] ss:$28 sps:$4 sm:$0xff]  }
 0x439   :  { %4584 = vmatpush3.bf16.msra.mxu1 %v5303_v47  ;;  %3786 = vmatprep.subr.bf16.mxu0 %v5306_v48  ;;  %v5372_v47 = vld [vmem:[#allocation5 + $0x4e0] ss:$28 sps:$4 sm:$0xff]  }
 0x43a   :  { %4585 = vmatprep.subr.bf16.mxu1 %v5307_v49  ;;  %v5377_v48 = vld [vmem:[#allocation5 + $0x51c] ss:$28 sps:$4 sm:$0xff]  }
 0x43b   :  { %v5375_v49 = vld [vmem:[#allocation5 + $0x518] ss:$28 sps:$4 sm:$0xff]  }
 0x43c   :  { %3787 = vmatpush1.bf16.msra.mxu0 %v5304_v50  ;;  %v5380_v50 = vld [vmem:[#allocation5 + $0x554] ss:$28 sps:$4 sm:$0xff]  }
 0x43d   :  { %4586 = vmatpush3.bf16.msra.mxu1 %v5308_v51  ;;  %3788 = vmatprep.subr.bf16.mxu0 %v5311_v52  ;;  %v5378_v51 = vld [vmem:[#allocation5 + $0x550] ss:$28 sps:$4 sm:$0xff]  }
 0x43e   :  { %4587 = vmatprep.subr.bf16.mxu1 %v5312_v53  ;;  %v5383_v52 = vld [vmem:[#allocation5 + $0x58c] ss:$28 sps:$4 sm:$0xff]  }
 0x43f   :  { %v5381_v53 = vld [vmem:[#allocation5 + $0x588] ss:$28 sps:$4 sm:$0xff]  }
 0x440   :  { %3789 = vmatpush1.bf16.msra.mxu0 %v5309_v54  ;;  %v5386_v54 = vld [vmem:[#allocation5 + $0x5c4] ss:$28 sps:$4 sm:$0xff]  }
 0x441   :  { %4588 = vmatpush3.bf16.msra.mxu1 %v5313_v56  ;;  %3790 = vmatprep.subr.bf16.mxu0 %v5316_v57  ;;  %v5384_v56 = vld [vmem:[#allocation5 + $0x5c0] ss:$28 sps:$4 sm:$0xff]  }
 0x442   :  { %4595 = vmatprep.subr.bf16.mxu1 %v5317_v58  ;;  %v5389_v57 = vld [vmem:[#allocation5 + $0x5fc] ss:$28 sps:$4 sm:$0xff]  }
 0x443   :  { %v5387_v58 = vld [vmem:[#allocation5 + $0x5f8] ss:$28 sps:$4 sm:$0xff]  }
 0x444   :  { %3889 = vmatmul.mubr.bf16.vlgmr.msra.gmra.mrb[16].mxu1 %v5924_v9  ;;  %3791 = vmatpush1.bf16.msra.mxu0 %v5314_v60  ;;  %v5392_v60 = vld [vmem:[#allocation5 + $0x634] ss:$28 sps:$4 sm:$0xff]  }
 0x445   :  { %4596 = vmatpush3.bf16.msra.mxu1 %v5318_v61  ;;  %3928 = vmatprep.mubr.bf16.mxu1 %v5930_v11  ;;  %v5390_v61 = vld [vmem:[#allocation5 + $0x630] ss:$28 sps:$4 sm:$0xff]  }
 0x446   :  { %3792 = vmatprep.subr.bf16.mxu0 %v5321_v62  ;;  %4597 = vmatprep.subr.bf16.mxu1 %v5322_v63  ;;  %v5395_v62 = vld [vmem:[#allocation5 + $0x66c] ss:$28 sps:$4 sm:$0xff]  }
 0x447   :  { %v5393_v63 = vld [vmem:[#allocation5 + $0x668] ss:$28 sps:$4 sm:$0xff]  }
 0x448   :  { %3793 = vmatpush1.bf16.msra.mxu0 %v5319_v1  ;;  %v5398_v1 = vld [vmem:[#allocation5 + $0x6a4] ss:$28 sps:$4 sm:$0xff]  }
 0x449   :  { %4598 = vmatpush3.bf16.msra.mxu1 %v5323_v3  ;;  %3794 = vmatprep.subr.bf16.mxu0 %v5326_v4  ;;  %v5396_v3 = vld [vmem:[#allocation5 + $0x6a0] ss:$28 sps:$4 sm:$0xff]  }
 0x44a   :  { %4599 = vmatprep.subr.bf16.mxu1 %v5327_v6  ;;  %v5401_v4 = vld [vmem:[#allocation5 + $0x6dc] ss:$28 sps:$4 sm:$0xff]  }
 0x44b   :  { %v5399_v6 = vld [vmem:[#allocation5 + $0x6d8] ss:$28 sps:$4 sm:$0xff]  }
 0x44c   :  { %3795 = vmatpush1.bf16.msra.mxu0 %v5324_v7  ;;  %v5953_v7 = vld [vmem:[%s5993_s9] sm:$0xff]  ;;  %s5515_s9 = smov [#allocation7]  }
 0x44d   :  { %4600 = vmatpush3.bf16.msra.mxu1 %v5328_v8  ;;  %3796 = vmatprep.subr.bf16.mxu0 %v5331_v5  ;;  %v2426_v8 = vrot.slane %v5953_v7, %v5849_v25  ;;  %v2434_v5 = vrot.slane %v5953_v7, %v5862_v39  ;;  %s4017_s1 = sshll.u32 %s5515_s9, 4  ;;  %s4018_s1 = int_to_ptr.vmem [resolvable:$true] %s4017_s1 }
 0x44e   :  { %4601 = vmatprep.subr.bf16.mxu1 %v5332_v10  ;;  %v2430_v10 = vrot.slane %v5953_v7, %v5855_v27  ;;  %s5477_s18 = scalar_lea.vmem %s4018_s1, 448  ;;  %p5482_p3 = scmp.lt.s32.totalorder %s4018_s1, %s4018_s1 }
 0x44f   :  { %p5478_p2 = scmp.ne.s32.totalorder %s4018_s1, %s5477_s18  ;;  %p5483_p4 = scmp.lt.s32.totalorder %s5477_s18, %s5477_s18 }
 0x450   :  { %3797 = vmatpush1.bf16.msra.mxu0 %v5329_v12  ;;  %v2438_v12 = vrot.slane %v5953_v7, %v5865_v40 }
 0x451   :  { %4602 = vmatpush3.bf16.msra.mxu1 %v5333_v55  ;;  %3798 = vmatprep.subr.bf16.mxu0 %v5336_v13  ;;  %p5484_p5 = por %p5483_p4, %p5482_p3 }
 0x452   :  { %4603 = vmatprep.subr.bf16.mxu1 %v5337_v18 }
 0x453   :  { %p5485_p6 = pnand %p5484_p5, %p5478_p2 }
 0x454   :  { %3799 = vmatpush1.bf16.msra.mxu0 %v5334_v20 }
 0x455   :  { %4604 = vmatpush3.bf16.msra.mxu1 %v5338_v21  ;;  %3800 = vmatprep.subr.bf16.mxu0 %v5341_v22 }
 0x456   :  { %4605 = vmatprep.subr.bf16.mxu1 %v5342_v23 }
 0x458   :  { %3801 = vmatpush1.bf16.msra.mxu0 %v5339_v26 }
 0x459   :  { %4606 = vmatpush3.bf16.msra.mxu1 %v5343_v28  ;;  %3802 = vmatprep.subr.bf16.mxu0 %v5346_v29 }
 0x45a   :  { %4607 = vmatprep.subr.bf16.mxu1 %v5347_v30 }
 0x45c   :  { %3803 = vmatpush1.bf16.msra.mxu0 %v5344_v31 }
 0x45d   :  { %4608 = vmatpush3.bf16.msra.mxu1 %v5348_v2  ;;  %3804 = vmatprep.subr.bf16.mxu0 %v5351_v32 }
 0x45e   :  { %4609 = vmatprep.subr.bf16.mxu1 %v5352_v33 }
 0x460   :  { %3805 = vmatpush1.bf16.msra.mxu0 %v5349_v34 }
 0x461   :  { %4610 = vmatpush3.bf16.msra.mxu1 %v5353_v35  ;;  %3815 = vmatprep.subr.bf16.mxu0 %v5356_v36 }
 0x463   :  { %3807 = vmatmul.mubr.bf16.vlgmr.msra.gmra.mrb[12].mxu0 %v5924_v9  ;;  %v5363_v9 = vld [vmem:[#allocation5 + $0x438] ss:$28 sps:$4 sm:$0xff]  }
 0x464   :  { %3929 = vmatmul.mubr.bf16.vlgmr.msra.gmra.mrb[20].mxu1 %v5935_v16  ;;  %3816 = vmatpush1.bf16.msra.mxu0 %v5354_v37 }
 0x465   :  { %3847 = vmatprep.mubr.bf16.mxu0 %v5930_v11  ;;  %3817 = vmatprep.subr.bf16.mxu0 %v5359_v38  ;;  %v5371_v11 = vld [vmem:[#allocation5 + $0x4ac] ss:$28 sps:$4 sm:$0xff]  }
 0x468   :  { %3818 = vmatpush1.bf16.msra.mxu0 %v5357_v41 }
 0x469   :  { %3819 = vmatprep.subr.bf16.mxu0 %v5362_v42 }
 0x46a   :  { %v2033_v44 = vpop.xlane.xlu0 %2032 }
 0x46b   :  { %2035 = vst.msk [vmem:[%s5995_s11] sm:$0xff] %vm2034_vm1, %v2033_v44 }
 0x46c   :  { %3820 = vmatpush1.bf16.msra.mxu0 %v5360_v43 }
 0x46d   :  { %3821 = vmatprep.subr.bf16.mxu0 %v5365_v59 }
 0x470   :  { %3822 = vmatpush1.bf16.msra.mxu0 %v5363_v9 }
 0x471   :  { %3823 = vmatprep.subr.bf16.mxu0 %v5368_v17 }
 0x474   :  { %3824 = vmatpush1.bf16.msra.mxu0 %v5366_v45 }
 0x475   :  { %3825 = vmatprep.subr.bf16.mxu0 %v5371_v11 }
 0x478   :  { %3826 = vmatpush1.bf16.msra.mxu0 %v5369_v46 }
 0x479   :  { %3827 = vmatprep.subr.bf16.mxu0 %v5374_v0  ;;  %v2450_v0 = vrot.slane %v5953_v7, %v2057_v15  ;;  %v2446_v15 = vrot.slane %v5953_v7, %v2097_v19 }
 0x47c   :  { %3828 = vmatpush1.bf16.msra.mxu0 %v5372_v47 }
 0x47d   :  { %3829 = vmatprep.subr.bf16.mxu0 %v5377_v48 }
 0x480   :  { %3830 = vmatpush1.bf16.msra.mxu0 %v5375_v49 }
 0x481   :  { %3831 = vmatprep.subr.bf16.mxu0 %v5380_v50 }
 0x484   :  { %3832 = vmatpush1.bf16.msra.mxu0 %v5378_v51 }
 0x485   :  { %3833 = vmatprep.subr.bf16.mxu0 %v5383_v52 }
 0x488   :  { %3834 = vmatpush1.bf16.msra.mxu0 %v5381_v53 }
 0x489   :  { %3835 = vmatprep.subr.bf16.mxu0 %v5386_v54 }
 0x48c   :  { %3836 = vmatpush1.bf16.msra.mxu0 %v5384_v56 }
 0x48d   :  { %3837 = vmatprep.subr.bf16.mxu0 %v5389_v57 }
 0x490   :  { %3838 = vmatpush1.bf16.msra.mxu0 %v5387_v58 }
 0x491   :  { %3839 = vmatprep.subr.bf16.mxu0 %v5392_v60 }
 0x494   :  { %3840 = vmatpush1.bf16.msra.mxu0 %v5390_v61  ;;  %v2442_v61 = vrot.slane %v5953_v7, %v2053_v14 }
 0x495   :  { %3841 = vmatprep.subr.bf16.mxu0 %v5395_v62 }
 0x498   :  { %3842 = vmatpush1.bf16.msra.mxu0 %v5393_v63 }
 0x499   :  { %3843 = vmatprep.subr.bf16.mxu0 %v5398_v1 }
 0x49c   :  { %3844 = vmatpush1.bf16.msra.mxu0 %v5396_v3 }
 0x49d   :  { %3845 = vmatprep.subr.bf16.mxu0 %v5401_v4 }
 0x4a0   :  { %3846 = vmatpush1.bf16.msra.mxu0 %v5399_v6 }
 0x4a3   :  { %3848 = vmatmul.mubr.bf16.vlgmr.msra.gmra.mrb[12].mxu0 %v5935_v16 }
 0x4f6   :  { %v3685_v55 = vpop.f32.mrb[8].mxu0  ;;  %v3767_v13 = vpop.f32.mrb[12].mxu1 }
 0x4f7   :  { %v4687_v16 = vadd.f32 %v3685_v55, %v2426_v8  ;;  %v4689_v18 = vadd.f32 %v3767_v13, %v2434_v5  ;;  %v3687_v20 = vpop.f32.mrb[9].mxu0  ;;  %v3769_v21 = vpop.f32.mrb[13].mxu1 }
 0x4f8   :  { %v4688_v22 = vadd.f32 %v3687_v20, %v2430_v10  ;;  %v4690_v23 = vadd.f32 %v3769_v21, %v2438_v12  ;;  %v3689_v26 = vpop.f32.mrb[10].mxu0  ;;  %v3771_v28 = vpop.f32.mrb[14].mxu1 }
 0x4f9   :  { %v4488_v25 = vmul.f32 -1.442695, %v4687_v16  ;;  %v4490_v29 = vmul.f32 -1.442695, %v4689_v18  ;;  %v3690_v30 = vpop.f32.mrb[11].mxu0  ;;  %v3772_v39 = vpop.f32.mrb[15].mxu1 }
 0x4fa   :  { %v4489_v31 = vmul.f32 -1.442695, %v4688_v22  ;;  %v4491_v2 = vmul.f32 -1.442695, %v4690_v23 }
 0x4fb   :  { %5404 = vpow2.f32 %v4488_v25 }
 0x4fc   :  { %5406 = vpow2.f32 %v4490_v29 }
 0x4fd   :  { %5408 = vpow2.f32 %v4489_v31 }
 0x4fe   :  { %5410 = vpow2.f32 %v4491_v2 }
 0x505   :  { %v5405_v27 = vpop.eup %5404 }
 0x506   :  { %v5407_v40 = vpop.eup %5406  ;;  %v3957_v32 = vadd.f32 1.0, %v5405_v27 }
 0x507   :  { %v5409_v33 = vpop.eup %5408  ;;  %v3959_v34 = vadd.f32 1.0, %v5407_v40 }
 0x508   :  { %v5411_v35 = vpop.eup %5410  ;;  %5412 = vrcp.f32 %v3957_v32  ;;  %v3958_v36 = vadd.f32 1.0, %v5409_v33 }
 0x509   :  { %5414 = vrcp.f32 %v3959_v34  ;;  %v3960_v37 = vadd.f32 1.0, %v5411_v35 }
 0x50a   :  { %5416 = vrcp.f32 %v3958_v36 }
 0x50b   :  { %5418 = vrcp.f32 %v3960_v37 }
 0x512   :  { %v5413_v38 = vpop.eup %5412 }
 0x513   :  { %v5415_v41 = vpop.eup %5414 }
 0x514   :  { %v5417_v42 = vpop.eup %5416 }
 0x515   :  { %v5419_v43 = vpop.eup %5418  ;;  %v4499_v59 = vpack.c.bf16 %v5417_v42, %v5413_v38 }
 0x516   :  { %v4500_v44 = vpack.c.bf16 %v5419_v43, %v5415_v41 }
 0x517   :  { %v4589_v9 = vpop.f32.mrb[16].mxu1  ;;  %4007 = vst [vmem:[#allocation7] sm:$0xff] %v4499_v59 }
 0x518   :  { %v4590_v17 = vpop.f32.mrb[17].mxu1  ;;  %4008 = vst [vmem:[#allocation7 + $0x8] sm:$0xff] %v4500_v44 }
 0x519   :  { %v4591_v45 = vadd.f32 %v4590_v17, %v4589_v9  ;;  %v4592_v11 = vpop.f32.mrb[18].mxu1 }
 0x51a   :  { %v4593_v46 = vpop.f32.mrb[19].mxu1 }
 0x51b   :  { %v3891_v49 = vadd.f32 %v4591_v45, %v2450_v0 }
 0x537   :  { %v4611_v47 = vpop.f32.mrb[20].mxu1 }
 0x538   :  { %v4612_v48 = vpop.f32.mrb[21].mxu1 }
 0x539   :  { %v4613_v50 = vadd.f32 %v4612_v48, %v4611_v47  ;;  %v4614_v51 = vpop.f32.mrb[22].mxu1 }
 0x53a   :  { %v4615_v52 = vpop.f32.mrb[23].mxu1 }
 0x53b   :  { %v3931_v53 = vadd.f32 %v4613_v50, %v3891_v49 }
 0x53d   :  { %v4494_v54 = vmul.f32 -1.442695, %v3931_v53 }
 0x53f   :  { %5420 = vpow2.f32 %v4494_v54 }
 0x549   :  { %v5421_v56 = vpop.eup %5420 }
 0x54a   :  { %v3963_v57 = vadd.f32 1.0, %v5421_v56 }
 0x54c   :  { %5422 = vrcp.f32 %v3963_v57 }
 0x556   :  { %v5423_v58 = vpop.eup %5422 }
 0x557   :  { %v4502_v60 = vpack.c.bf16 %v5423_v58, %v5423_v58 }
 0x559   :  { %4010 = vst [vmem:[#allocation7 + $0x18] sm:$0xf] %v4502_v60 }
 0x576   :  { %v3849_v62 = vpop.f32.mrb[12].mxu0 }
 0x577   :  { %v4691_v63 = vadd.f32 %v3849_v62, %v2442_v61  ;;  %v3851_v1 = vpop.f32.mrb[13].mxu0 }
 0x578   :  { %v4692_v3 = vadd.f32 %v3851_v1, %v2446_v15  ;;  %v3853_v4 = vpop.f32.mrb[14].mxu0 }
 0x579   :  { %v4492_v6 = vmul.f32 -1.442695, %v4691_v63  ;;  %v3854_v8 = vpop.f32.mrb[15].mxu0 }
 0x57a   :  { %v4493_v5 = vmul.f32 -1.442695, %v4692_v3 }
 0x57b   :  { %5424 = vpow2.f32 %v4492_v6 }
 0x57c   :  { %5426 = vpow2.f32 %v4493_v5 }
 0x585   :  { %v5425_v10 = vpop.eup %5424 }
 0x586   :  { %v5427_v12 = vpop.eup %5426  ;;  %v3961_v55 = vadd.f32 1.0, %v5425_v10 }
 0x587   :  { %v3962_v13 = vadd.f32 1.0, %v5427_v12 }
 0x588   :  { %5428 = vrcp.f32 %v3961_v55 }
 0x589   :  { %5430 = vrcp.f32 %v3962_v13 }
 0x592   :  { %v5429_v24 = vpop.eup %5428 }
 0x593   :  { %v5431_v14 = vpop.eup %5430 }
 0x594   :  { %v4501_v19 = vpack.c.bf16 %v5431_v14, %v5429_v24 }
 0x596   :  { %4009 = vst [vmem:[#allocation7 + $0x10] sm:$0xff] %v4501_v19 }
 0x597   :  { %5488 = shalt.err (!%p5485_p6)
}
 0x598   :  { %s5489_s8 = scalar_lea.hbm %s5994_s10, 448 }
 0x599   :  { %p5490_p7 = scmp.ne.s32.totalorder %s5994_s10, %s5489_s8  ;;  %p5493_p8 = scmp.lt.u32.totalorder %s5489_s8, %s5994_s10 }
 0x59b   :  { %p5495_p9 = pnand %p5493_p8, %p5490_p7 }
 0x59d   :  { %5498 = shalt.err (!%p5495_p9)
}
 0x59e   :  { %4020 = dma.vmem_to_hbm [thread:$0]  %s4018_s1, 448, %s5994_s10, [#allocation4]  }
 0x59f   :  { %5503 = dma.done.wait [#allocation4], 448  }
 0x5a0   :  { %5504 = vsyncadd [#allocation4], 4294966848 }
 0x5a1   :  { %4028 = vsyncpa [#allocation3], 1 }
 0x5a2   :  { %4029 = vsyncpa [#allocation6], 1 }
 0x5a3   :  { %4030 = vsyncpa [#allocation4], 1 }

// kernel: tpu_custom_call.1
= control target key start
LH: loop header
LB: loop body
LE: loop exit
PB: predicated region body
PF: predicated region fallthrough
CT: control target
= control target key end

     0   :  { %17 = vsyncpa [#allocation3], 0  ;;  %s5984_s0 = inlined_call_operand.vmem [shape: bf16[8,896], index: 0, kind: input, shape index: {}]   ;;  %s5985_s1 = inlined_call_operand.hbm [shape: bf16[896,512], index: 1, kind: input, shape index: {}]   ;;  %s5986_s2 = inlined_call_operand.vmem [shape: f32[1,512], index: 2, kind: input, shape index: {}]   ;;  %s5987_s3 = inlined_call_operand.vmem [shape: f32[512,4], index: 3, kind: input, shape index: {}]   ;;  %s5988_s4 = inlined_call_operand.vmem [shape: f32[1,4], index: 4, kind: input, shape index: {}]   ;;  %s5989_s5 = inlined_call_operand.vmem [shape: f32[8,2], index: 5, kind: input, shape index: {}]   ;;  %s5990_s6 = inlined_call_operand.vmem [shape: f32[2,512], index: 6, kind: input, shape index: {}]   ;;  %s5991_s7 = inlined_call_operand.vmem [shape: f32[1,512], index: 7, kind: input, shape index: {}]   ;;  %s5992_s8 = inlined_call_operand.hbm [shape: bf16[512,896], index: 8, kind: input, shape index: {}]   ;;  %s5993_s9 = inlined_call_operand.vmem [shape: f32[1,896], index: 9, kind: input, shape index: {}]   ;;  %s5994_s10 = inlined_call_operand.hbm [shape: bf16[8,896], index: 10, kind: output, shape index: {0}]   ;;  %s5995_s11 = inlined_call_operand.vmem [shape: f32[8,1], index: 11, kind: output, shape index: {1}]  }
   0x1   :  { %18 = vsyncpa [#allocation6], 0 }
   0x2   :  { %19 = vsyncpa [#allocation4], 0  ;;  %s5505_s17 = smov [#allocation2]   ;;  %s5433_s21 = scalar_lea.hbm %s5985_s1, 28672 }
   0x3   :  { %s27_s18 = sshll.u32 %s5505_s17, 4  ;;  %p5434_p0 = scmp.ne.s32.totalorder %s5985_s1, %s5433_s21  ;;  %s28_s18 = int_to_ptr.vmem [resolvable:$true] %s27_s18 }
   0x4   :  { %p5437_p1 = scmp.lt.u32.totalorder %s5433_s21, %s5985_s1 }
   0x6   :  { %p5439_p2 = pnand %p5437_p1, %p5434_p0 }
   0x8   :  { %5442 = shalt.err (!%p5439_p2)
}
   0x9   :  { %s5443_s26 = scalar_lea.vmem %s28_s18, 28672  ;;  %p5448_p4 = scmp.lt.s32.totalorder %s28_s18, %s28_s18 }
   0xa   :  { %p5444_p3 = scmp.ne.s32.totalorder %s28_s18, %s5443_s26  ;;  %p5449_p5 = scmp.lt.s32.totalorder %s5443_s26, %s5443_s26 }
   0xc   :  { %p5450_p6 = por %p5449_p5, %p5448_p4 }
   0xe   :  { %p5451_p7 = pnand %p5450_p6, %p5444_p3 }
  0x10   :  { %5454 = shalt.err (!%p5451_p7)
}
  0x11   :  { %s5506_s27 = smov 256   ;;  %s5507_s28 = smov 16  }
  0x12   :  { %33 = dma.hbm_to_vmem [thread:$0]  %s5985_s1, 28672, %s28_s18, [#allocation3], %s5506_s27, %s5506_s27, %s5507_s28  }
  0x13   :  { %s5508_s12 = smov [#allocation5]   ;;  %s5455_s16 = scalar_lea.hbm %s5992_s8, 28672 }
  0x14   :  { %s51_s13 = sshll.u32 %s5508_s12, 4  ;;  %p5456_p8 = scmp.ne.s32.totalorder %s5992_s8, %s5455_s16  ;;  %s52_s13 = int_to_ptr.vmem [resolvable:$true] %s51_s13 }
  0x15   :  { %p5459_p9 = scmp.lt.u32.totalorder %s5455_s16, %s5992_s8 }
  0x17   :  { %p5461_p10 = pnand %p5459_p9, %p5456_p8 }
  0x19   :  { %5464 = shalt.err (!%p5461_p10)
}
  0x1a   :  { %s5465_s22 = scalar_lea.vmem %s52_s13, 28672  ;;  %p5470_p12 = scmp.lt.s32.totalorder %s52_s13, %s52_s13 }
  0x1b   :  { %p5466_p11 = scmp.ne.s32.totalorder %s52_s13, %s5465_s22  ;;  %p5471_p13 = scmp.lt.s32.totalorder %s5465_s22, %s5465_s22 }
  0x1d   :  { %p5472_p0 = por %p5471_p13, %p5470_p12 }
  0x1f   :  { %p5473_p1 = pnand %p5472_p0, %p5466_p11 }
  0x21   :  { %5476 = shalt.err (!%p5473_p1)
}
  0x22   :  { %s5509_s1 = smov 448   ;;  %s5510_s18 = smov 28  }
  0x23   :  { %57 = dma.hbm_to_vmem [thread:$0]  %s5992_s8, 28672, %s52_s13, [#allocation6], %s5509_s1, %s5509_s1, %s5510_s18  }
  0x24   :  { %5499 = dma.done.wait [#allocation3], 28672  }
  0x25   :  { %5500 = vsyncadd [#allocation3], 4294938624 }
  0x26   :  { %5501 = dma.done.wait [#allocation6], 28672  }
  0x27   :  { %5502 = vsyncadd [#allocation6], 4294938624  ;;  %v5511_v0 = vmov 0   ;;  %v4739_v1 = vld [vmem:[#allocation2 + $0x4] ss:$16 sps:$4 sm:$0xff]   ;;  %s5512_s15 = smov 2  }
  0x28   :  { %1617 = vmatprep.mubr.bf16.mxu1 %v5511_v0  ;;  %4736 = vset.pattern.permute.xlu1 %v5511_v0  ;;  %v4741_v2 = vld [vmem:[#allocation2 + $0x604] ss:$16 sps:$4 sm:$0xff]   ;;  %v4743_v3 = vld [vmem:[#allocation2] ss:$16 sps:$4 sm:$0xff]   ;;  %v4792_v34 = vld [vmem:[#allocation2 + $0xc] ss:$16 sps:$4 sm:$0xff]  }
  0x29   :  { %1462 = vmatprep.subr.bf16.mxu0 %v4739_v1  ;;  %v4744_v4 = vld [vmem:[#allocation2 + $0x600] ss:$16 sps:$4 sm:$0xff]   ;;  %1585 = vmatprep.subr.bf16.mxu1 %v4741_v2  ;;  %v4745_v5 = vld [vmem:[#allocation2 + $0x24] ss:$16 sps:$4 sm:$0xff]   ;;  %v4789_v35 = vld [vmem:[%s5984_s0 + $0x18] ss:$0 sps:$4 sm:$0xff]  }
  0x2a   :  { %1463 = vmatpush1.bf16.msra.mxu0 %v4743_v3  ;;  %1586 = vmatpush1.bf16.msra.mxu1 %v4744_v4  ;;  %v4747_v6 = vld [vmem:[#allocation2 + $0x624] ss:$16 sps:$4 sm:$0xff]   ;;  %v4749_v7 = vld [vmem:[#allocation2 + $0x20] ss:$16 sps:$4 sm:$0xff]   ;;  %v4790_v36 = vld [vmem:[#allocation2 + $0x8] ss:$16 sps:$4 sm:$0xff]  }
  0x2b   :  { %1464 = vmatprep.subr.bf16.mxu0 %v4745_v5  ;;  %v4750_v8 = vld [vmem:[#allocation2 + $0x620] ss:$16 sps:$4 sm:$0xff]   ;;  %1587 = vmatprep.subr.bf16.mxu1 %v4747_v6  ;;  %v4751_v9 = vld [vmem:[#allocation2 + $0x44] ss:$16 sps:$4 sm:$0xff]   ;;  %v4798_v39 = vld [vmem:[#allocation2 + $0x2c] ss:$16 sps:$4 sm:$0xff]  }
  0x2c   :  { %v4753_v10 = vld [vmem:[#allocation2 + $0x644] ss:$16 sps:$4 sm:$0xff]   ;;  %v4755_v11 = vld [vmem:[#allocation2 + $0x40] ss:$16 sps:$4 sm:$0xff]   ;;  %v4796_v40 = vld [vmem:[#allocation2 + $0x28] ss:$16 sps:$4 sm:$0xff]  }
  0x2d   :  { %v4756_v12 = vld [vmem:[#allocation2 + $0x640] ss:$16 sps:$4 sm:$0xff]   ;;  %v4757_v13 = vld [vmem:[#allocation2 + $0x64] ss:$16 sps:$4 sm:$0xff]   ;;  %v4804_v43 = vld [vmem:[#allocation2 + $0x4c] ss:$16 sps:$4 sm:$0xff]  }
  0x2e   :  { %1465 = vmatpush1.bf16.msra.mxu0 %v4749_v7  ;;  %1588 = vmatpush1.bf16.msra.mxu1 %v4750_v8  ;;  %v4759_v14 = vld [vmem:[#allocation2 + $0x664] ss:$16 sps:$4 sm:$0xff]   ;;  %v4761_v15 = vld [vmem:[#allocation2 + $0x60] ss:$16 sps:$4 sm:$0xff]   ;;  %v4802_v44 = vld [vmem:[#allocation2 + $0x48] ss:$16 sps:$4 sm:$0xff]  }
  0x2f   :  { %1466 = vmatprep.subr.bf16.mxu0 %v4751_v9  ;;  %1589 = vmatprep.subr.bf16.mxu1 %v4753_v10  ;;  %v4762_v16 = vld [vmem:[#allocation2 + $0x660] ss:$16 sps:$4 sm:$0xff]   ;;  %v4763_v17 = vld [vmem:[#allocation2 + $0x84] ss:$16 sps:$4 sm:$0xff]   ;;  %v4810_v47 = vld [vmem:[#allocation2 + $0x6c] ss:$16 sps:$4 sm:$0xff]  }
  0x30   :  { %v4765_v18 = vld [vmem:[#allocation2 + $0x684] ss:$16 sps:$4 sm:$0xff]   ;;  %v4767_v19 = vld [vmem:[#allocation2 + $0x80] ss:$16 sps:$4 sm:$0xff]   ;;  %v4808_v48 = vld [vmem:[#allocation2 + $0x68] ss:$16 sps:$4 sm:$0xff]  }
  0x31   :  { %v4768_v20 = vld [vmem:[#allocation2 + $0x680] ss:$16 sps:$4 sm:$0xff]   ;;  %v4769_v21 = vld [vmem:[#allocation2 + $0xa4] ss:$16 sps:$4 sm:$0xff]   ;;  %v4816_v53 = vld [vmem:[#allocation2 + $0x8c] ss:$16 sps:$4 sm:$0xff]  }
  0x32   :  { %1467 = vmatpush1.bf16.msra.mxu0 %v4755_v11  ;;  %1590 = vmatpush1.bf16.msra.mxu1 %v4756_v12  ;;  %v4771_v22 = vld [vmem:[#allocation2 + $0x6a4] ss:$16 sps:$4 sm:$0xff]   ;;  %v4773_v23 = vld [vmem:[#allocation2 + $0xa0] ss:$16 sps:$4 sm:$0xff]   ;;  %v4814_v54 = vld [vmem:[#allocation2 + $0x88] ss:$16 sps:$4 sm:$0xff]  }
  0x33   :  { %1468 = vmatprep.subr.bf16.mxu0 %v4757_v13  ;;  %1591 = vmatprep.subr.bf16.mxu1 %v4759_v14  ;;  %v4774_v24 = vld [vmem:[#allocation2 + $0x6a0] ss:$16 sps:$4 sm:$0xff]   ;;  %v4775_v25 = vld [vmem:[#allocation2 + $0xc4] ss:$16 sps:$4 sm:$0xff]   ;;  %v4822_v57 = vld [vmem:[#allocation2 + $0xac] ss:$16 sps:$4 sm:$0xff]  }
  0x34   :  { %v4777_v26 = vld [vmem:[#allocation2 + $0x6c4] ss:$16 sps:$4 sm:$0xff]   ;;  %v4779_v27 = vld [vmem:[#allocation2 + $0xc0] ss:$16 sps:$4 sm:$0xff]   ;;  %v4820_v58 = vld [vmem:[#allocation2 + $0xa8] ss:$16 sps:$4 sm:$0xff]  }
  0x35   :  { %v4780_v28 = vld [vmem:[#allocation2 + $0x6c0] ss:$16 sps:$4 sm:$0xff]   ;;  %v4781_v29 = vld [vmem:[#allocation2 + $0xe4] ss:$16 sps:$4 sm:$0xff]   ;;  %v4828_v61 = vld [vmem:[#allocation2 + $0xcc] ss:$16 sps:$4 sm:$0xff]  }
  0x36   :  { %1469 = vmatpush1.bf16.msra.mxu0 %v4761_v15  ;;  %1592 = vmatpush1.bf16.msra.mxu1 %v4762_v16  ;;  %v4783_v30 = vld [vmem:[#allocation2 + $0x6e4] ss:$16 sps:$4 sm:$0xff]   ;;  %v4785_v31 = vld [vmem:[#allocation2 + $0xe0] ss:$16 sps:$4 sm:$0xff]   ;;  %v4826_v62 = vld [vmem:[#allocation2 + $0xc8] ss:$16 sps:$4 sm:$0xff]  }
  0x37   :  { %1470 = vmatprep.subr.bf16.mxu0 %v4763_v17  ;;  %1593 = vmatprep.subr.bf16.mxu1 %v4765_v18  ;;  %v4786_v32 = vld [vmem:[#allocation2 + $0x6e0] ss:$16 sps:$4 sm:$0xff]   ;;  %v4787_v33 = vld [vmem:[#allocation2 + $0x104] ss:$16 sps:$4 sm:$0xff]   ;;  %v4834_v2 = vld [vmem:[#allocation2 + $0xec] ss:$16 sps:$4 sm:$0xff]  }
  0x38   :  { %v4793_v37 = vld [vmem:[#allocation2 + $0x100] ss:$16 sps:$4 sm:$0xff]   ;;  %v4794_v38 = vld [vmem:[#allocation2 + $0x124] ss:$16 sps:$4 sm:$0xff]   ;;  %v4832_v3 = vld [vmem:[#allocation2 + $0xe8] ss:$16 sps:$4 sm:$0xff]  }
  0x39   :  { %v4799_v41 = vld [vmem:[#allocation2 + $0x120] ss:$16 sps:$4 sm:$0xff]   ;;  %v4800_v42 = vld [vmem:[#allocation2 + $0x144] ss:$16 sps:$4 sm:$0xff]   ;;  %v4843_v6 = vld [vmem:[#allocation2 + $0x10c] ss:$16 sps:$4 sm:$0xff]  }
  0x3a   :  { %1471 = vmatpush1.bf16.msra.mxu0 %v4767_v19  ;;  %1594 = vmatpush1.bf16.msra.mxu1 %v4768_v20  ;;  %v4805_v45 = vld [vmem:[#allocation2 + $0x140] ss:$16 sps:$4 sm:$0xff]   ;;  %v4806_v46 = vld [vmem:[#allocation2 + $0x164] ss:$16 sps:$4 sm:$0xff]   ;;  %v4841_v9 = vld [vmem:[#allocation2 + $0x108] ss:$16 sps:$4 sm:$0xff]  }
  0x3b   :  { %1472 = vmatprep.subr.bf16.mxu0 %v4769_v21  ;;  %1595 = vmatprep.subr.bf16.mxu1 %v4771_v22  ;;  %v67_v49 = vld [vmem:[%s5984_s0] sm:$0xff]  ;;  %v4849_v11 = vld [vmem:[#allocation2 + $0x12c] ss:$16 sps:$4 sm:$0xff]   ;;  %v4847_v13 = vld [vmem:[#allocation2 + $0x128] ss:$16 sps:$4 sm:$0xff]   ;;  %vm2030_vm0 = vcmask 15360  }
  0x3c   :  { %v4811_v50 = vld [vmem:[#allocation2 + $0x160] ss:$16 sps:$4 sm:$0xff]   ;;  %v4812_v51 = vld [vmem:[#allocation2 + $0x184] ss:$16 sps:$4 sm:$0xff]   ;;  %v4032_v52 = vcombine.high %v67_v49, %v67_v49  ;;  %v5608_v7 = vcombine.low %v67_v49, %v67_v49  ;;  %v4855_v15 = vld [vmem:[#allocation2 + $0x14c] ss:$16 sps:$4 sm:$0xff]  }
  0x3d   :  { %v4817_v55 = vld [vmem:[#allocation2 + $0x180] ss:$16 sps:$4 sm:$0xff]   ;;  %v4818_v56 = vld [vmem:[#allocation2 + $0x1a4] ss:$16 sps:$4 sm:$0xff]   ;;  %v4853_v17 = vld [vmem:[#allocation2 + $0x148] ss:$16 sps:$4 sm:$0xff]  }
  0x3e   :  { %1473 = vmatpush1.bf16.msra.mxu0 %v4773_v23  ;;  %1596 = vmatpush1.bf16.msra.mxu1 %v4774_v24  ;;  %v4823_v59 = vld [vmem:[#allocation2 + $0x1a0] ss:$16 sps:$4 sm:$0xff]   ;;  %v4824_v60 = vld [vmem:[#allocation2 + $0x1c4] ss:$16 sps:$4 sm:$0xff]   ;;  %v4861_v19 = vld [vmem:[#allocation2 + $0x16c] ss:$16 sps:$4 sm:$0xff]  }
  0x3f   :  { %1474 = vmatprep.subr.bf16.mxu0 %v4775_v25  ;;  %1597 = vmatprep.subr.bf16.mxu1 %v4777_v26  ;;  %v4829_v63 = vld [vmem:[#allocation2 + $0x1c0] ss:$16 sps:$4 sm:$0xff]   ;;  %v4830_v1 = vld [vmem:[#allocation2 + $0x1e4] ss:$16 sps:$4 sm:$0xff]   ;;  %v4859_v21 = vld [vmem:[#allocation2 + $0x168] ss:$16 sps:$4 sm:$0xff]  }
  0x40   :  { %1494 = vmatprep.mubr.bf16.mxu0 %v4032_v52  ;;  %v4835_v4 = vld [vmem:[#allocation2 + $0x1e0] ss:$16 sps:$4 sm:$0xff]   ;;  %v4840_v5 = vld [vmem:[#allocation2 + $0x204] ss:$16 sps:$4 sm:$0xff]   ;;  %v4867_v23 = vld [vmem:[#allocation2 + $0x18c] ss:$16 sps:$4 sm:$0xff]  }
  0x41   :  { %v4838_v8 = vld [vmem:[#allocation2 + $0x200] ss:$16 sps:$4 sm:$0xff]   ;;  %v4846_v10 = vld [vmem:[#allocation2 + $0x224] ss:$16 sps:$4 sm:$0xff]   ;;  %v4865_v25 = vld [vmem:[#allocation2 + $0x188] ss:$16 sps:$4 sm:$0xff]  }
  0x42   :  { %1475 = vmatpush1.bf16.msra.mxu0 %v4779_v27  ;;  %1598 = vmatpush1.bf16.msra.mxu1 %v4780_v28  ;;  %v4844_v12 = vld [vmem:[#allocation2 + $0x220] ss:$16 sps:$4 sm:$0xff]   ;;  %v4852_v14 = vld [vmem:[#allocation2 + $0x244] ss:$16 sps:$4 sm:$0xff]   ;;  %v4873_v27 = vld [vmem:[#allocation2 + $0x1ac] ss:$16 sps:$4 sm:$0xff]  }
  0x43   :  { %1476 = vmatprep.subr.bf16.mxu0 %v4781_v29  ;;  %1599 = vmatprep.subr.bf16.mxu1 %v4783_v30  ;;  %v4850_v16 = vld [vmem:[#allocation2 + $0x240] ss:$16 sps:$4 sm:$0xff]   ;;  %v4858_v18 = vld [vmem:[#allocation2 + $0x264] ss:$16 sps:$4 sm:$0xff]   ;;  %v4871_v29 = vld [vmem:[#allocation2 + $0x1a8] ss:$16 sps:$4 sm:$0xff]  }
  0x44   :  { %v4856_v20 = vld [vmem:[#allocation2 + $0x260] ss:$16 sps:$4 sm:$0xff]   ;;  %v4864_v22 = vld [vmem:[#allocation2 + $0x284] ss:$16 sps:$4 sm:$0xff]   ;;  %v4903_v49 = vld [vmem:[#allocation2 + $0x24c] ss:$16 sps:$4 sm:$0xff]  }
  0x45   :  { %v4862_v24 = vld [vmem:[#allocation2 + $0x280] ss:$16 sps:$4 sm:$0xff]   ;;  %v4870_v26 = vld [vmem:[#allocation2 + $0x2a4] ss:$16 sps:$4 sm:$0xff]   ;;  %vm2034_vm1 = vcmask 7168  }
  0x46   :  { %1477 = vmatpush1.bf16.msra.mxu0 %v4785_v31  ;;  %1600 = vmatpush1.bf16.msra.mxu1 %v4786_v32  ;;  %v4868_v28 = vld [vmem:[#allocation2 + $0x2a0] ss:$16 sps:$4 sm:$0xff]   ;;  %v4876_v30 = vld [vmem:[#allocation2 + $0x2c4] ss:$16 sps:$4 sm:$0xff]   ;;  %v4879_v31 = vld [vmem:[#allocation2 + $0x1cc] ss:$16 sps:$4 sm:$0xff]  }
  0x47   :  { %1478 = vmatprep.subr.bf16.mxu0 %v4787_v33  ;;  %1626 = vmatprep.subr.bf16.mxu1 %v4792_v34  ;;  %v5614_v32 = vld [vmem:[%s5984_s0 + $0x8] sm:$0xff]  ;;  %v4874_v33 = vld [vmem:[#allocation2 + $0x2c0] ss:$16 sps:$4 sm:$0xff]  }
  0x48   :  { %v4877_v34 = vld [vmem:[#allocation2 + $0x1c8] ss:$16 sps:$4 sm:$0xff]  }
  0x49   :  { %1618 = vmatmul.mubr.bf16.vlgmr.msra.gmra.mrb[0].mxu1 %v4789_v35  ;;  %v4034_v35 = vcombine.high %v5614_v32, %v5614_v32 }
  0x4a   :  { %1479 = vmatpush1.bf16.msra.mxu0 %v4793_v37  ;;  %1627 = vmatpush1.bf16.msra.mxu1 %v4790_v36  ;;  %v4882_v36 = vld [vmem:[#allocation2 + $0x2e4] ss:$16 sps:$4 sm:$0xff]   ;;  %v4885_v37 = vld [vmem:[#allocation2 + $0x1ec] ss:$16 sps:$4 sm:$0xff]  }
  0x4b   :  { %1480 = vmatprep.subr.bf16.mxu0 %v4794_v38  ;;  %1628 = vmatprep.subr.bf16.mxu1 %v4798_v39  ;;  %v4880_v38 = vld [vmem:[#allocation2 + $0x2e0] ss:$16 sps:$4 sm:$0xff]   ;;  %v4883_v39 = vld [vmem:[#allocation2 + $0x1e8] ss:$16 sps:$4 sm:$0xff]  }
  0x4c   :  { %1658 = vmatprep.mubr.bf16.mxu1 %v4032_v52  ;;  %v4906_v52 = vld [vmem:[#allocation2 + $0x364] ss:$16 sps:$4 sm:$0xff]  }
  0x4e   :  { %1481 = vmatpush1.bf16.msra.mxu0 %v4799_v41  ;;  %1629 = vmatpush1.bf16.msra.mxu1 %v4796_v40  ;;  %v4888_v40 = vld [vmem:[#allocation2 + $0x304] ss:$16 sps:$4 sm:$0xff]   ;;  %v4891_v41 = vld [vmem:[#allocation2 + $0x20c] ss:$16 sps:$4 sm:$0xff]  }
  0x4f   :  { %1482 = vmatprep.subr.bf16.mxu0 %v4800_v42  ;;  %1630 = vmatprep.subr.bf16.mxu1 %v4804_v43  ;;  %v4886_v42 = vld [vmem:[#allocation2 + $0x300] ss:$16 sps:$4 sm:$0xff]   ;;  %v4889_v43 = vld [vmem:[#allocation2 + $0x208] ss:$16 sps:$4 sm:$0xff]  }
  0x52   :  { %1483 = vmatpush1.bf16.msra.mxu0 %v4805_v45  ;;  %1631 = vmatpush1.bf16.msra.mxu1 %v4802_v44  ;;  %v4894_v44 = vld [vmem:[#allocation2 + $0x324] ss:$16 sps:$4 sm:$0xff]   ;;  %v4897_v45 = vld [vmem:[#allocation2 + $0x22c] ss:$16 sps:$4 sm:$0xff]  }
  0x53   :  { %1484 = vmatprep.subr.bf16.mxu0 %v4806_v46  ;;  %1632 = vmatprep.subr.bf16.mxu1 %v4810_v47  ;;  %v4892_v46 = vld [vmem:[#allocation2 + $0x320] ss:$16 sps:$4 sm:$0xff]   ;;  %v4895_v47 = vld [vmem:[#allocation2 + $0x228] ss:$16 sps:$4 sm:$0xff]  }
  0x56   :  { %1485 = vmatpush1.bf16.msra.mxu0 %v4811_v50  ;;  %1633 = vmatpush1.bf16.msra.mxu1 %v4808_v48  ;;  %v4900_v48 = vld [vmem:[#allocation2 + $0x344] ss:$16 sps:$4 sm:$0xff]   ;;  %v4898_v50 = vld [vmem:[#allocation2 + $0x340] ss:$16 sps:$4 sm:$0xff]  }
  0x57   :  { %1486 = vmatprep.subr.bf16.mxu0 %v4812_v51  ;;  %1634 = vmatprep.subr.bf16.mxu1 %v4816_v53  ;;  %v4901_v51 = vld [vmem:[#allocation2 + $0x248] ss:$16 sps:$4 sm:$0xff]   ;;  %v4909_v53 = vld [vmem:[#allocation2 + $0x26c] ss:$16 sps:$4 sm:$0xff]  }
  0x5a   :  { %1487 = vmatpush1.bf16.msra.mxu0 %v4817_v55  ;;  %1635 = vmatpush1.bf16.msra.mxu1 %v4814_v54  ;;  %v4904_v54 = vld [vmem:[#allocation2 + $0x360] ss:$16 sps:$4 sm:$0xff]   ;;  %v4907_v55 = vld [vmem:[#allocation2 + $0x268] ss:$16 sps:$4 sm:$0xff]  }
  0x5b   :  { %1488 = vmatprep.subr.bf16.mxu0 %v4818_v56  ;;  %1636 = vmatprep.subr.bf16.mxu1 %v4822_v57  ;;  %v4912_v56 = vld [vmem:[#allocation2 + $0x384] ss:$16 sps:$4 sm:$0xff]   ;;  %v4915_v57 = vld [vmem:[#allocation2 + $0x28c] ss:$16 sps:$4 sm:$0xff]  }
  0x5e   :  { %1489 = vmatpush1.bf16.msra.mxu0 %v4823_v59  ;;  %1637 = vmatpush1.bf16.msra.mxu1 %v4820_v58  ;;  %v4910_v58 = vld [vmem:[#allocation2 + $0x380] ss:$16 sps:$4 sm:$0xff]   ;;  %v4913_v59 = vld [vmem:[#allocation2 + $0x288] ss:$16 sps:$4 sm:$0xff]  }
  0x5f   :  { %1490 = vmatprep.subr.bf16.mxu0 %v4824_v60  ;;  %1638 = vmatprep.subr.bf16.mxu1 %v4828_v61  ;;  %v4918_v60 = vld [vmem:[#allocation2 + $0x3a4] ss:$16 sps:$4 sm:$0xff]   ;;  %v4921_v61 = vld [vmem:[#allocation2 + $0x2ac] ss:$16 sps:$4 sm:$0xff]  }
  0x62   :  { %1491 = vmatpush1.bf16.msra.mxu0 %v4829_v63  ;;  %1639 = vmatpush1.bf16.msra.mxu1 %v4826_v62  ;;  %v4916_v62 = vld [vmem:[#allocation2 + $0x3a0] ss:$16 sps:$4 sm:$0xff]   ;;  %v4919_v63 = vld [vmem:[#allocation2 + $0x2a8] ss:$16 sps:$4 sm:$0xff]  }
  0x63   :  { %1492 = vmatprep.subr.bf16.mxu0 %v4830_v1  ;;  %1640 = vmatprep.subr.bf16.mxu1 %v4834_v2  ;;  %v4924_v1 = vld [vmem:[#allocation2 + $0x3c4] ss:$16 sps:$4 sm:$0xff]   ;;  %v4927_v2 = vld [vmem:[#allocation2 + $0x2cc] ss:$16 sps:$4 sm:$0xff]  }
  0x66   :  { %1493 = vmatpush1.bf16.msra.mxu0 %v4835_v4  ;;  %1641 = vmatpush1.bf16.msra.mxu1 %v4832_v3  ;;  %v4922_v3 = vld [vmem:[#allocation2 + $0x3c0] ss:$16 sps:$4 sm:$0xff]   ;;  %v4925_v4 = vld [vmem:[#allocation2 + $0x2c8] ss:$16 sps:$4 sm:$0xff]  }
  0x67   :  { %1503 = vmatprep.subr.bf16.mxu0 %v4840_v5  ;;  %1642 = vmatprep.subr.bf16.mxu1 %v4843_v6  ;;  %v4930_v5 = vld [vmem:[#allocation2 + $0x3e4] ss:$16 sps:$4 sm:$0xff]   ;;  %v4933_v6 = vld [vmem:[#allocation2 + $0x2ec] ss:$16 sps:$4 sm:$0xff]  }
  0x69   :  { %1495 = vmatmul.mubr.bf16.vlgmr.msra.gmra.mrb[0].mxu0 %v5608_v7 }
  0x6a   :  { %1504 = vmatpush1.bf16.msra.mxu0 %v4838_v8  ;;  %1643 = vmatpush1.bf16.msra.mxu1 %v4841_v9  ;;  %v4931_v8 = vld [vmem:[#allocation2 + $0x2e8] ss:$16 sps:$4 sm:$0xff]   ;;  %v4938_v9 = vld [vmem:[#allocation2 + $0x404] ss:$16 sps:$4 sm:$0xff]  }
  0x6b   :  { %1505 = vmatprep.subr.bf16.mxu0 %v4846_v10  ;;  %1644 = vmatprep.subr.bf16.mxu1 %v4849_v11  ;;  %v4941_v10 = vld [vmem:[#allocation2 + $0x30c] ss:$16 sps:$4 sm:$0xff]   ;;  %v5621_v11 = vcombine.low %v5614_v32, %v5614_v32  ;;  %v4968_v32 = vld [vmem:[#allocation2 + $0x4a4] ss:$16 sps:$4 sm:$0xff]  }
  0x6c   :  { %1535 = vmatprep.mubr.bf16.mxu0 %v4034_v35 }
  0x6e   :  { %1506 = vmatpush1.bf16.msra.mxu0 %v4844_v12  ;;  %1645 = vmatpush1.bf16.msra.mxu1 %v4847_v13  ;;  %v4936_v12 = vld [vmem:[#allocation2 + $0x400] ss:$16 sps:$4 sm:$0xff]   ;;  %v4939_v13 = vld [vmem:[#allocation2 + $0x308] ss:$16 sps:$4 sm:$0xff]  }
  0x6f   :  { %1507 = vmatprep.subr.bf16.mxu0 %v4852_v14  ;;  %1646 = vmatprep.subr.bf16.mxu1 %v4855_v15  ;;  %v4944_v14 = vld [vmem:[#allocation2 + $0x424] ss:$16 sps:$4 sm:$0xff]   ;;  %v4947_v15 = vld [vmem:[#allocation2 + $0x32c] ss:$16 sps:$4 sm:$0xff]  }
  0x72   :  { %1508 = vmatpush1.bf16.msra.mxu0 %v4850_v16  ;;  %1647 = vmatpush1.bf16.msra.mxu1 %v4853_v17  ;;  %v5626_v16 = vld [vmem:[%s5984_s0 + $0x10] sm:$0xff] }
  0x73   :  { %1509 = vmatprep.subr.bf16.mxu0 %v4858_v18  ;;  %1648 = vmatprep.subr.bf16.mxu1 %v4861_v19  ;;  %v5630_v17 = vcombine.high %v5626_v16, %v5626_v16  ;;  %v4942_v18 = vld [vmem:[#allocation2 + $0x420] ss:$16 sps:$4 sm:$0xff]   ;;  %v4945_v19 = vld [vmem:[#allocation2 + $0x328] ss:$16 sps:$4 sm:$0xff]  }
  0x76   :  { %1510 = vmatpush1.bf16.msra.mxu0 %v4856_v20  ;;  %1649 = vmatpush1.bf16.msra.mxu1 %v4859_v21  ;;  %v4950_v20 = vld [vmem:[#allocation2 + $0x444] ss:$16 sps:$4 sm:$0xff]   ;;  %v4953_v21 = vld [vmem:[#allocation2 + $0x34c] ss:$16 sps:$4 sm:$0xff]  }
  0x77   :  { %1511 = vmatprep.subr.bf16.mxu0 %v4864_v22  ;;  %1650 = vmatprep.subr.bf16.mxu1 %v4867_v23  ;;  %v4948_v22 = vld [vmem:[#allocation2 + $0x440] ss:$16 sps:$4 sm:$0xff]   ;;  %v4951_v23 = vld [vmem:[#allocation2 + $0x348] ss:$16 sps:$4 sm:$0xff]  }
  0x7a   :  { %1512 = vmatpush1.bf16.msra.mxu0 %v4862_v24  ;;  %1651 = vmatpush1.bf16.msra.mxu1 %v4865_v25  ;;  %v4956_v24 = vld [vmem:[#allocation2 + $0x464] ss:$16 sps:$4 sm:$0xff]   ;;  %v4959_v25 = vld [vmem:[#allocation2 + $0x36c] ss:$16 sps:$4 sm:$0xff]  }
  0x7b   :  { %1513 = vmatprep.subr.bf16.mxu0 %v4870_v26  ;;  %1652 = vmatprep.subr.bf16.mxu1 %v4873_v27  ;;  %v4954_v26 = vld [vmem:[#allocation2 + $0x460] ss:$16 sps:$4 sm:$0xff]   ;;  %v4957_v27 = vld [vmem:[#allocation2 + $0x368] ss:$16 sps:$4 sm:$0xff]  }
  0x7e   :  { %1514 = vmatpush1.bf16.msra.mxu0 %v4868_v28  ;;  %1653 = vmatpush1.bf16.msra.mxu1 %v4871_v29  ;;  %v4962_v28 = vld [vmem:[#allocation2 + $0x484] ss:$16 sps:$4 sm:$0xff]   ;;  %v4965_v29 = vld [vmem:[#allocation2 + $0x38c] ss:$16 sps:$4 sm:$0xff]  }
  0x7f   :  { %1515 = vmatprep.subr.bf16.mxu0 %v4876_v30  ;;  %1654 = vmatprep.subr.bf16.mxu1 %v4879_v31  ;;  %v4960_v30 = vld [vmem:[#allocation2 + $0x480] ss:$16 sps:$4 sm:$0xff]   ;;  %v4963_v31 = vld [vmem:[#allocation2 + $0x388] ss:$16 sps:$4 sm:$0xff]  }
  0x82   :  { %1516 = vmatpush1.bf16.msra.mxu0 %v4874_v33  ;;  %1655 = vmatpush1.bf16.msra.mxu1 %v4877_v34  ;;  %v4971_v33 = vld [vmem:[#allocation2 + $0x3ac] ss:$16 sps:$4 sm:$0xff]   ;;  %v4966_v34 = vld [vmem:[#allocation2 + $0x4a0] ss:$16 sps:$4 sm:$0xff]  }
  0x83   :  { %1517 = vmatprep.subr.bf16.mxu0 %v4882_v36  ;;  %1656 = vmatprep.subr.bf16.mxu1 %v4885_v37  ;;  %v4974_v36 = vld [vmem:[#allocation2 + $0x4c4] ss:$16 sps:$4 sm:$0xff]   ;;  %v4977_v37 = vld [vmem:[#allocation2 + $0x3cc] ss:$16 sps:$4 sm:$0xff]  }
  0x86   :  { %1518 = vmatpush1.bf16.msra.mxu0 %v4880_v38  ;;  %1657 = vmatpush1.bf16.msra.mxu1 %v4883_v39  ;;  %v4972_v38 = vld [vmem:[#allocation2 + $0x4c0] ss:$16 sps:$4 sm:$0xff]   ;;  %v4975_v39 = vld [vmem:[#allocation2 + $0x3c8] ss:$16 sps:$4 sm:$0xff]  }
  0x87   :  { %1519 = vmatprep.subr.bf16.mxu0 %v4888_v40  ;;  %1667 = vmatprep.subr.bf16.mxu1 %v4891_v41  ;;  %v4980_v40 = vld [vmem:[#allocation2 + $0x4e4] ss:$16 sps:$4 sm:$0xff]   ;;  %v4983_v41 = vld [vmem:[#allocation2 + $0x3ec] ss:$16 sps:$4 sm:$0xff]  }
  0x89   :  { %1659 = vmatmul.mubr.bf16.vlgmr.msra.gmra.mrb[4].mxu1 %v5608_v7  ;;  %v4928_v7 = vld [vmem:[#allocation2 + $0x3e0] ss:$16 sps:$4 sm:$0xff]  }
  0x8a   :  { %1520 = vmatpush1.bf16.msra.mxu0 %v4886_v42  ;;  %1668 = vmatpush1.bf16.msra.mxu1 %v4889_v43  ;;  %v4978_v42 = vld [vmem:[#allocation2 + $0x4e0] ss:$16 sps:$4 sm:$0xff]   ;;  %v4981_v43 = vld [vmem:[#allocation2 + $0x3e8] ss:$16 sps:$4 sm:$0xff]  }
  0x8b   :  { %1521 = vmatprep.subr.bf16.mxu0 %v4894_v44  ;;  %1669 = vmatprep.subr.bf16.mxu1 %v4897_v45  ;;  %v4986_v44 = vld [vmem:[#allocation2 + $0x504] ss:$16 sps:$4 sm:$0xff]   ;;  %v4989_v45 = vld [vmem:[#allocation2 + $0x40c] ss:$16 sps:$4 sm:$0xff]  }
  0x8c   :  { %1699 = vmatprep.mubr.bf16.mxu1 %v4034_v35  ;;  %v4969_v35 = vld [vmem:[#allocation2 + $0x3a8] ss:$16 sps:$4 sm:$0xff]  }
  0x8e   :  { %1522 = vmatpush1.bf16.msra.mxu0 %v4892_v46  ;;  %1670 = vmatpush1.bf16.msra.mxu1 %v4895_v47  ;;  %v4984_v46 = vld [vmem:[#allocation2 + $0x500] ss:$16 sps:$4 sm:$0xff]   ;;  %v4987_v47 = vld [vmem:[#allocation2 + $0x408] ss:$16 sps:$4 sm:$0xff]  }
  0x8f   :  { %1523 = vmatprep.subr.bf16.mxu0 %v4900_v48  ;;  %1671 = vmatprep.subr.bf16.mxu1 %v4903_v49  ;;  %v4992_v48 = vld [vmem:[#allocation2 + $0x524] ss:$16 sps:$4 sm:$0xff]   ;;  %v4995_v49 = vld [vmem:[#allocation2 + $0x42c] ss:$16 sps:$4 sm:$0xff]  }
  0x92   :  { %1524 = vmatpush1.bf16.msra.mxu0 %v4898_v50  ;;  %1672 = vmatpush1.bf16.msra.mxu1 %v4901_v51  ;;  %v4990_v50 = vld [vmem:[#allocation2 + $0x520] ss:$16 sps:$4 sm:$0xff]   ;;  %v4993_v51 = vld [vmem:[#allocation2 + $0x428] ss:$16 sps:$4 sm:$0xff]  }
  0x93   :  { %1525 = vmatprep.subr.bf16.mxu0 %v4906_v52  ;;  %1673 = vmatprep.subr.bf16.mxu1 %v4909_v53  ;;  %v4998_v52 = vld [vmem:[#allocation2 + $0x544] ss:$16 sps:$4 sm:$0xff]   ;;  %v5001_v53 = vld [vmem:[#allocation2 + $0x44c] ss:$16 sps:$4 sm:$0xff]  }
  0x96   :  { %1526 = vmatpush1.bf16.msra.mxu0 %v4904_v54  ;;  %1674 = vmatpush1.bf16.msra.mxu1 %v4907_v55  ;;  %v4996_v54 = vld [vmem:[#allocation2 + $0x540] ss:$16 sps:$4 sm:$0xff]   ;;  %v4999_v55 = vld [vmem:[#allocation2 + $0x448] ss:$16 sps:$4 sm:$0xff]  }
  0x97   :  { %1527 = vmatprep.subr.bf16.mxu0 %v4912_v56  ;;  %1675 = vmatprep.subr.bf16.mxu1 %v4915_v57  ;;  %v5004_v56 = vld [vmem:[#allocation2 + $0x564] ss:$16 sps:$4 sm:$0xff]   ;;  %v5007_v57 = vld [vmem:[#allocation2 + $0x46c] ss:$16 sps:$4 sm:$0xff]  }
  0x9a   :  { %1528 = vmatpush1.bf16.msra.mxu0 %v4910_v58  ;;  %1676 = vmatpush1.bf16.msra.mxu1 %v4913_v59  ;;  %v5002_v58 = vld [vmem:[#allocation2 + $0x560] ss:$16 sps:$4 sm:$0xff]   ;;  %v5005_v59 = vld [vmem:[#allocation2 + $0x468] ss:$16 sps:$4 sm:$0xff]  }
  0x9b   :  { %1529 = vmatprep.subr.bf16.mxu0 %v4918_v60  ;;  %1677 = vmatprep.subr.bf16.mxu1 %v4921_v61  ;;  %v5010_v60 = vld [vmem:[#allocation2 + $0x584] ss:$16 sps:$4 sm:$0xff]   ;;  %v5013_v61 = vld [vmem:[#allocation2 + $0x48c] ss:$16 sps:$4 sm:$0xff]  }
  0x9e   :  { %1530 = vmatpush1.bf16.msra.mxu0 %v4916_v62  ;;  %1678 = vmatpush1.bf16.msra.mxu1 %v4919_v63  ;;  %v5008_v62 = vld [vmem:[#allocation2 + $0x580] ss:$16 sps:$4 sm:$0xff]   ;;  %v5011_v63 = vld [vmem:[#allocation2 + $0x488] ss:$16 sps:$4 sm:$0xff]  }
  0x9f   :  { %1531 = vmatprep.subr.bf16.mxu0 %v4924_v1  ;;  %1679 = vmatprep.subr.bf16.mxu1 %v4927_v2  ;;  %v5016_v1 = vld [vmem:[#allocation2 + $0x5a4] ss:$16 sps:$4 sm:$0xff]   ;;  %v5019_v2 = vld [vmem:[#allocation2 + $0x4ac] ss:$16 sps:$4 sm:$0xff]  }
  0xa2   :  { %1532 = vmatpush1.bf16.msra.mxu0 %v4922_v3  ;;  %1680 = vmatpush1.bf16.msra.mxu1 %v4925_v4  ;;  %v5014_v3 = vld [vmem:[#allocation2 + $0x5a0] ss:$16 sps:$4 sm:$0xff]   ;;  %v5017_v4 = vld [vmem:[#allocation2 + $0x4a8] ss:$16 sps:$4 sm:$0xff]  }
  0xa3   :  { %1533 = vmatprep.subr.bf16.mxu0 %v4930_v5  ;;  %1681 = vmatprep.subr.bf16.mxu1 %v4933_v6  ;;  %v5022_v5 = vld [vmem:[#allocation2 + $0x5c4] ss:$16 sps:$4 sm:$0xff]   ;;  %v5025_v6 = vld [vmem:[#allocation2 + $0x4cc] ss:$16 sps:$4 sm:$0xff]  }
  0xa6   :  { %1534 = vmatpush1.bf16.msra.mxu0 %v4928_v7  ;;  %1682 = vmatpush1.bf16.msra.mxu1 %v4931_v8  ;;  %v5020_v7 = vld [vmem:[#allocation2 + $0x5c0] ss:$16 sps:$4 sm:$0xff]   ;;  %v5023_v8 = vld [vmem:[#allocation2 + $0x4c8] ss:$16 sps:$4 sm:$0xff]  }
  0xa7   :  { %1544 = vmatprep.subr.bf16.mxu0 %v4938_v9  ;;  %1683 = vmatprep.subr.bf16.mxu1 %v4941_v10  ;;  %v5028_v9 = vld [vmem:[#allocation2 + $0x5e4] ss:$16 sps:$4 sm:$0xff]   ;;  %v5031_v10 = vld [vmem:[#allocation2 + $0x4ec] ss:$16 sps:$4 sm:$0xff]  }
  0xa9   :  { %1536 = vmatmul.mubr.bf16.vlgmr.msra.gmra.mrb[0].mxu0 %v5621_v11 }
  0xaa   :  { %1545 = vmatpush1.bf16.msra.mxu0 %v4936_v12  ;;  %1684 = vmatpush1.bf16.msra.mxu1 %v4939_v13  ;;  %v1811_v12 = vld [vmem:[%s5987_s3 + $0x88] sm:$0xff]  ;;  %v5026_v13 = vld [vmem:[#allocation2 + $0x5e0] ss:$16 sps:$4 sm:$0xff]  }
  0xab   :  { %1546 = vmatprep.subr.bf16.mxu0 %v4944_v14  ;;  %1685 = vmatprep.subr.bf16.mxu1 %v4947_v15  ;;  %v5029_v14 = vld [vmem:[#allocation2 + $0x4e8] ss:$16 sps:$4 sm:$0xff]   ;;  %v5036_v15 = vld [vmem:[#allocation2 + $0x50c] ss:$16 sps:$4 sm:$0xff]  }
  0xac   :  { %1576 = vmatprep.mubr.bf16.mxu0 %v5630_v17 }
  0xae   :  { %1547 = vmatpush1.bf16.msra.mxu0 %v4942_v18  ;;  %1686 = vmatpush1.bf16.msra.mxu1 %v4945_v19  ;;  %v1795_v18 = vld [vmem:[%s5987_s3 + $0x8] sm:$0xff]  ;;  %v1812_v19 = vld [vmem:[%s5987_s3 + $0x90] sm:$0xff] }
  0xaf   :  { %1548 = vmatprep.subr.bf16.mxu0 %v4950_v20  ;;  %1687 = vmatprep.subr.bf16.mxu1 %v4953_v21  ;;  %v1813_v20 = vld [vmem:[%s5987_s3 + $0x98] sm:$0xff] }
  0xb2   :  { %1549 = vmatpush1.bf16.msra.mxu0 %v4948_v22  ;;  %1688 = vmatpush1.bf16.msra.mxu1 %v4951_v23  ;;  %v5034_v22 = vld [vmem:[#allocation2 + $0x508] ss:$16 sps:$4 sm:$0xff]   ;;  %v5656_v23 = vcombine.low %v5626_v16, %v5626_v16 }
  0xb3   :  { %1550 = vmatprep.subr.bf16.mxu0 %v4956_v24  ;;  %1689 = vmatprep.subr.bf16.mxu1 %v4959_v25  ;;  %v5039_v24 = vld [vmem:[#allocation2 + $0x52c] ss:$16 sps:$4 sm:$0xff]   ;;  %v1796_v25 = vld [vmem:[%s5987_s3 + $0x10] sm:$0xff] }
  0xb4   :  { %v1815_v16 = vld [vmem:[%s5987_s3 + $0xa8] sm:$0xff] }
  0xb6   :  { %1551 = vmatpush1.bf16.msra.mxu0 %v4954_v26  ;;  %1690 = vmatpush1.bf16.msra.mxu1 %v4957_v27  ;;  %v1797_v26 = vld [vmem:[%s5987_s3 + $0x18] sm:$0xff] }
  0xb7   :  { %1552 = vmatprep.subr.bf16.mxu0 %v4962_v28  ;;  %1691 = vmatprep.subr.bf16.mxu1 %v4965_v29  ;;  %v1814_v28 = vld [vmem:[%s5987_s3 + $0xa0] sm:$0xff]  ;;  %v4621_v29 = vpack.c.bf16 %v1813_v20, %v1812_v19  ;;  %v5076_v19 = vld [vmem:[#allocation2 + $0x6c8] ss:$16 sps:$4 sm:$0xff]  }
  0xba   :  { %1553 = vmatpush1.bf16.msra.mxu0 %v4960_v30  ;;  %1692 = vmatpush1.bf16.msra.mxu1 %v4963_v31  ;;  %v5037_v30 = vld [vmem:[#allocation2 + $0x528] ss:$16 sps:$4 sm:$0xff]   ;;  %v5042_v31 = vld [vmem:[#allocation2 + $0x54c] ss:$16 sps:$4 sm:$0xff]  }
  0xbb   :  { %1554 = vmatprep.subr.bf16.mxu0 %v4968_v32  ;;  %1693 = vmatprep.subr.bf16.mxu1 %v4971_v33  ;;  %v1798_v32 = vld [vmem:[%s5987_s3 + $0x20] sm:$0xff]  ;;  %v1799_v33 = vld [vmem:[%s5987_s3 + $0x28] sm:$0xff] }
  0xbe   :  { %1555 = vmatpush1.bf16.msra.mxu0 %v4966_v34  ;;  %1694 = vmatpush1.bf16.msra.mxu1 %v4969_v35  ;;  %v4623_v34 = vpack.c.bf16 %v1797_v26, %v1796_v25  ;;  %v1816_v35 = vld [vmem:[%s5987_s3 + $0xb0] sm:$0xff]  ;;  %v1823_v25 = vld [vmem:[%s5987_s3 + $0xe8] sm:$0xff] }
  0xbf   :  { %1556 = vmatprep.subr.bf16.mxu0 %v4974_v36  ;;  %1695 = vmatprep.subr.bf16.mxu1 %v4977_v37  ;;  %v1817_v36 = vld [vmem:[%s5987_s3 + $0xb8] sm:$0xff]  ;;  %v4625_v37 = vpack.c.bf16 %v1815_v16, %v1814_v28  ;;  %v1807_v28 = vld [vmem:[%s5987_s3 + $0x68] sm:$0xff] }
  0xc2   :  { %1557 = vmatpush1.bf16.msra.mxu0 %v4972_v38  ;;  %1696 = vmatpush1.bf16.msra.mxu1 %v4975_v39  ;;  %v5040_v38 = vld [vmem:[#allocation2 + $0x548] ss:$16 sps:$4 sm:$0xff]   ;;  %v5045_v39 = vld [vmem:[#allocation2 + $0x56c] ss:$16 sps:$4 sm:$0xff]  }
  0xc3   :  { %1558 = vmatprep.subr.bf16.mxu0 %v4980_v40  ;;  %1697 = vmatprep.subr.bf16.mxu1 %v4983_v41  ;;  %v1800_v40 = vld [vmem:[%s5987_s3 + $0x30] sm:$0xff]  ;;  %v1801_v41 = vld [vmem:[%s5987_s3 + $0x38] sm:$0xff] }
  0xc6   :  { %1559 = vmatpush1.bf16.msra.mxu0 %v4978_v42  ;;  %1698 = vmatpush1.bf16.msra.mxu1 %v4981_v43  ;;  %v4627_v42 = vpack.c.bf16 %v1799_v33, %v1798_v32  ;;  %v1818_v43 = vld [vmem:[%s5987_s3 + $0xc0] sm:$0xff]  ;;  %v1808_v32 = vld [vmem:[%s5987_s3 + $0x70] sm:$0xff]  ;;  %v1809_v33 = vld [vmem:[%s5987_s3 + $0x78] sm:$0xff] }
  0xc7   :  { %1560 = vmatprep.subr.bf16.mxu0 %v4986_v44  ;;  %1708 = vmatprep.subr.bf16.mxu1 %v4989_v45  ;;  %v1819_v44 = vld [vmem:[%s5987_s3 + $0xc8] sm:$0xff]  ;;  %v4629_v45 = vpack.c.bf16 %v1817_v36, %v1816_v35  ;;  %v1842_v35 = vld [vmem:[%s5987_s3 + $0x180] sm:$0xff] }
  0xc8   :  { %v1843_v36 = vld [vmem:[%s5987_s3 + $0x188] sm:$0xff] }
  0xc9   :  { %1700 = vmatmul.mubr.bf16.vlgmr.msra.gmra.mrb[4].mxu1 %v5621_v11  ;;  %v1810_v11 = vld [vmem:[%s5987_s3 + $0x80] sm:$0xff] }
  0xca   :  { %1561 = vmatpush1.bf16.msra.mxu0 %v4984_v46  ;;  %1709 = vmatpush1.bf16.msra.mxu1 %v4987_v47  ;;  %v4617_v21 = vpack.c.bf16 %v1811_v12, %v1810_v11  ;;  %v5043_v46 = vld [vmem:[#allocation2 + $0x568] ss:$16 sps:$4 sm:$0xff]   ;;  %v5048_v47 = vld [vmem:[#allocation2 + $0x58c] ss:$16 sps:$4 sm:$0xff]  }
  0xcb   :  { %1562 = vmatprep.subr.bf16.mxu0 %v4992_v48  ;;  %1710 = vmatprep.subr.bf16.mxu1 %v4995_v49  ;;  %v1802_v48 = vld [vmem:[%s5987_s3 + $0x40] sm:$0xff]  ;;  %v1803_v49 = vld [vmem:[%s5987_s3 + $0x48] sm:$0xff] }
  0xcc   :  { %1740 = vmatprep.mubr.bf16.mxu1 %v5630_v17  ;;  %v1794_v17 = vld [vmem:[%s5987_s3] sm:$0xff]  ;;  %v5072_v11 = vld [vmem:[#allocation2 + $0x68c] ss:$16 sps:$4 sm:$0xff]   ;;  %v5070_v12 = vld [vmem:[#allocation2 + $0x688] ss:$16 sps:$4 sm:$0xff]  }
  0xcd   :  { %v4619_v27 = vpack.c.bf16 %v1795_v18, %v1794_v17 }
  0xce   :  { %1563 = vmatpush1.bf16.msra.mxu0 %v4990_v50  ;;  %1711 = vmatpush1.bf16.msra.mxu1 %v4993_v51  ;;  %v4631_v50 = vpack.c.bf16 %v1801_v41, %v1800_v40  ;;  %v1820_v51 = vld [vmem:[%s5987_s3 + $0xd0] sm:$0xff]  ;;  %v1845_v41 = vld [vmem:[%s5987_s3 + $0x198] sm:$0xff] }
  0xcf   :  { %1564 = vmatprep.subr.bf16.mxu0 %v4998_v52  ;;  %1712 = vmatprep.subr.bf16.mxu1 %v5001_v53  ;;  %v1821_v52 = vld [vmem:[%s5987_s3 + $0xd8] sm:$0xff]  ;;  %v4633_v53 = vpack.c.bf16 %v1819_v44, %v1818_v43  ;;  %v1844_v40 = vld [vmem:[%s5987_s3 + $0x190] sm:$0xff] }
  0xd0   :  { %v4653_v43 = vpack.c.bf16 %v1845_v41, %v1844_v40  ;;  %v1828_v44 = vld [vmem:[%s5987_s3 + $0x110] sm:$0xff] }
  0xd2   :  { %1565 = vmatpush1.bf16.msra.mxu0 %v4996_v54  ;;  %1713 = vmatpush1.bf16.msra.mxu1 %v4999_v55  ;;  %v5046_v54 = vld [vmem:[#allocation2 + $0x588] ss:$16 sps:$4 sm:$0xff]   ;;  %v5051_v55 = vld [vmem:[#allocation2 + $0x5ac] ss:$16 sps:$4 sm:$0xff]  }
  0xd3   :  { %1566 = vmatprep.subr.bf16.mxu0 %v5004_v56  ;;  %1714 = vmatprep.subr.bf16.mxu1 %v5007_v57  ;;  %v1804_v56 = vld [vmem:[%s5987_s3 + $0x50] sm:$0xff]  ;;  %v1805_v57 = vld [vmem:[%s5987_s3 + $0x58] sm:$0xff] }
  0xd6   :  { %1567 = vmatpush1.bf16.msra.mxu0 %v5002_v58  ;;  %1715 = vmatpush1.bf16.msra.mxu1 %v5005_v59  ;;  %v4635_v58 = vpack.c.bf16 %v1803_v49, %v1802_v48  ;;  %v4637_v59 = vpack.c.bf16 %v1821_v52, %v1820_v51  ;;  %v1831_v51 = vld [vmem:[%s5987_s3 + $0x128] sm:$0xff]  ;;  %v1848_v52 = vld [vmem:[%s5987_s3 + $0x1b0] sm:$0xff] }
  0xd7   :  { %1568 = vmatprep.subr.bf16.mxu0 %v5010_v60  ;;  %1716 = vmatprep.subr.bf16.mxu1 %v5013_v61  ;;  %v5049_v60 = vld [vmem:[#allocation2 + $0x5a8] ss:$16 sps:$4 sm:$0xff]   ;;  %v5054_v61 = vld [vmem:[#allocation2 + $0x5cc] ss:$16 sps:$4 sm:$0xff]  }
  0xda   :  { %1569 = vmatpush1.bf16.msra.mxu0 %v5008_v62  ;;  %1717 = vmatpush1.bf16.msra.mxu1 %v5011_v63  ;;  %v4639_v62 = vpack.c.bf16 %v1805_v57, %v1804_v56  ;;  %v5052_v63 = vld [vmem:[#allocation2 + $0x5c8] ss:$16 sps:$4 sm:$0xff]   ;;  %v1832_v56 = vld [vmem:[%s5987_s3 + $0x130] sm:$0xff] }
  0xdb   :  { %1570 = vmatprep.subr.bf16.mxu0 %v5016_v1  ;;  %1718 = vmatprep.subr.bf16.mxu1 %v5019_v2  ;;  %v5057_v1 = vld [vmem:[#allocation2 + $0x5ec] ss:$16 sps:$4 sm:$0xff]   ;;  %v5055_v2 = vld [vmem:[#allocation2 + $0x5e8] ss:$16 sps:$4 sm:$0xff]  }
  0xdc   :  { %v1833_v57 = vld [vmem:[%s5987_s3 + $0x138] sm:$0xff] }
  0xde   :  { %1571 = vmatpush1.bf16.msra.mxu0 %v5014_v3  ;;  %1719 = vmatpush1.bf16.msra.mxu1 %v5017_v4  ;;  %v5060_v3 = vld [vmem:[#allocation2 + $0x60c] ss:$16 sps:$4 sm:$0xff]   ;;  %v5058_v4 = vld [vmem:[#allocation2 + $0x608] ss:$16 sps:$4 sm:$0xff]  }
  0xdf   :  { %1572 = vmatprep.subr.bf16.mxu0 %v5022_v5  ;;  %1720 = vmatprep.subr.bf16.mxu1 %v5025_v6  ;;  %v5063_v5 = vld [vmem:[#allocation2 + $0x62c] ss:$16 sps:$4 sm:$0xff]   ;;  %v5061_v6 = vld [vmem:[#allocation2 + $0x628] ss:$16 sps:$4 sm:$0xff]  }
  0xe2   :  { %1573 = vmatpush1.bf16.msra.mxu0 %v5020_v7  ;;  %1721 = vmatpush1.bf16.msra.mxu1 %v5023_v8  ;;  %v5066_v7 = vld [vmem:[#allocation2 + $0x64c] ss:$16 sps:$4 sm:$0xff]   ;;  %v5064_v8 = vld [vmem:[#allocation2 + $0x648] ss:$16 sps:$4 sm:$0xff]  }
  0xe3   :  { %1574 = vmatprep.subr.bf16.mxu0 %v5028_v9  ;;  %1722 = vmatprep.subr.bf16.mxu1 %v5031_v10  ;;  %v5069_v9 = vld [vmem:[#allocation2 + $0x66c] ss:$16 sps:$4 sm:$0xff]   ;;  %v5067_v10 = vld [vmem:[#allocation2 + $0x668] ss:$16 sps:$4 sm:$0xff]  }
  0xe6   :  { %1575 = vmatpush1.bf16.msra.mxu0 %v5026_v13  ;;  %1723 = vmatpush1.bf16.msra.mxu1 %v5029_v14  ;;  %v5075_v13 = vld [vmem:[#allocation2 + $0x6ac] ss:$16 sps:$4 sm:$0xff]   ;;  %v5073_v14 = vld [vmem:[#allocation2 + $0x6a8] ss:$16 sps:$4 sm:$0xff]  }
  0xe7   :  { %1724 = vmatprep.subr.bf16.mxu1 %v5036_v15  ;;  %4618 = vmatprep.subr.bf16.mxu0 %v4617_v21  ;;  %v5078_v15 = vld [vmem:[#allocation2 + $0x6cc] ss:$16 sps:$4 sm:$0xff]  }
  0xe8   :  { %v5081_v21 = vld [vmem:[#allocation2 + $0x6ec] ss:$16 sps:$4 sm:$0xff]  }
  0xe9   :  { %1577 = vmatmul.mubr.bf16.vlgmr.msra.gmra.mrb[0].mxu0 %v5656_v23 }
  0xea   :  { %1725 = vmatpush1.bf16.msra.mxu1 %v5034_v22  ;;  %4620 = vmatpush3.bf16.msra.mxu0 %v4619_v27  ;;  %v5079_v22 = vld [vmem:[#allocation2 + $0x6e8] ss:$16 sps:$4 sm:$0xff]   ;;  %v1806_v27 = vld [vmem:[%s5987_s3 + $0x60] sm:$0xff] }
  0xeb   :  { %1726 = vmatprep.subr.bf16.mxu1 %v5039_v24  ;;  %4622 = vmatprep.subr.bf16.mxu0 %v4621_v29  ;;  %v1822_v24 = vld [vmem:[%s5987_s3 + $0xe0] sm:$0xff]  ;;  %v4643_v16 = vpack.c.bf16 %v1807_v28, %v1806_v27  ;;  %v1824_v29 = vld [vmem:[%s5987_s3 + $0xf0] sm:$0xff] }
  0xec   :  { %v4641_v26 = vpack.c.bf16 %v1823_v25, %v1822_v24 }
  0xee   :  { %1727 = vmatpush1.bf16.msra.mxu1 %v5037_v30  ;;  %4624 = vmatpush3.bf16.msra.mxu0 %v4623_v34  ;;  %v1825_v30 = vld [vmem:[%s5987_s3 + $0xf8] sm:$0xff]  ;;  %v4647_v34 = vpack.c.bf16 %v1809_v33, %v1808_v32 }
  0xef   :  { %1728 = vmatprep.subr.bf16.mxu1 %v5042_v31  ;;  %4626 = vmatprep.subr.bf16.mxu0 %v4625_v37  ;;  %v4645_v31 = vpack.c.bf16 %v1825_v30, %v1824_v29  ;;  %v1826_v37 = vld [vmem:[%s5987_s3 + $0x100] sm:$0xff] }
  0xf2   :  { %1729 = vmatpush1.bf16.msra.mxu1 %v5040_v38  ;;  %4628 = vmatpush3.bf16.msra.mxu0 %v4627_v42  ;;  %v4649_v38 = vpack.c.bf16 %v1843_v36, %v1842_v35 }
  0xf3   :  { %1730 = vmatprep.subr.bf16.mxu1 %v5045_v39  ;;  %4630 = vmatprep.subr.bf16.mxu0 %v4629_v45  ;;  %v1827_v39 = vld [vmem:[%s5987_s3 + $0x108] sm:$0xff]  ;;  %v1829_v45 = vld [vmem:[%s5987_s3 + $0x118] sm:$0xff] }
  0xf4   :  { %v4651_v42 = vpack.c.bf16 %v1827_v39, %v1826_v37  ;;  %v4655_v48 = vpack.c.bf16 %v1829_v45, %v1828_v44 }
  0xf6   :  { %1731 = vmatpush1.bf16.msra.mxu1 %v5043_v46  ;;  %4632 = vmatpush3.bf16.msra.mxu0 %v4631_v50  ;;  %v1846_v46 = vld [vmem:[%s5987_s3 + $0x1a0] sm:$0xff] }
  0xf7   :  { %1732 = vmatprep.subr.bf16.mxu1 %v5048_v47  ;;  %4634 = vmatprep.subr.bf16.mxu0 %v4633_v53  ;;  %v1847_v47 = vld [vmem:[%s5987_s3 + $0x1a8] sm:$0xff]  ;;  %v1830_v50 = vld [vmem:[%s5987_s3 + $0x120] sm:$0xff]  ;;  %v1849_v53 = vld [vmem:[%s5987_s3 + $0x1b8] sm:$0xff] }
  0xf8   :  { %v4657_v49 = vpack.c.bf16 %v1847_v47, %v1846_v46 }
  0xfa   :  { %1733 = vmatpush1.bf16.msra.mxu1 %v5046_v54  ;;  %4636 = vmatpush3.bf16.msra.mxu0 %v4635_v58  ;;  %v4659_v54 = vpack.c.bf16 %v1831_v51, %v1830_v50  ;;  %v1850_v58 = vld [vmem:[%s5987_s3 + $0x1c0] sm:$0xff] }
  0xfb   :  { %1734 = vmatprep.subr.bf16.mxu1 %v5051_v55  ;;  %4638 = vmatprep.subr.bf16.mxu0 %v4637_v59  ;;  %v4661_v55 = vpack.c.bf16 %v1849_v53, %v1848_v52  ;;  %v1851_v59 = vld [vmem:[%s5987_s3 + $0x1c8] sm:$0xff]  ;;  %v4262_v52 = vld [vmem:[%s5988_s4] ss:$0 sm:$0xff] }
  0xfe   :  { %1735 = vmatpush1.bf16.msra.mxu1 %v5049_v60  ;;  %4640 = vmatpush3.bf16.msra.mxu0 %v4639_v62  ;;  %v4663_v60 = vpack.c.bf16 %v1833_v57, %v1832_v56  ;;  %v1834_v62 = vld [vmem:[%s5987_s3 + $0x140] sm:$0xff] }
  0xff   :  { %1736 = vmatprep.subr.bf16.mxu1 %v5054_v61  ;;  %4642 = vmatprep.subr.bf16.mxu0 %v4641_v26  ;;  %v4665_v61 = vpack.c.bf16 %v1851_v59, %v1850_v58  ;;  %v295_v26 = vld [vmem:[%s5986_s2] sm:$0xf] }
 0x102   :  { %1737 = vmatpush1.bf16.msra.mxu1 %v5052_v63  ;;  %4644 = vmatpush3.bf16.msra.mxu0 %v4643_v16  ;;  %v1835_v63 = vld [vmem:[%s5987_s3 + $0x148] sm:$0xff] }
 0x103   :  { %1738 = vmatprep.subr.bf16.mxu1 %v5057_v1  ;;  %4646 = vmatprep.subr.bf16.mxu0 %v4645_v31  ;;  %v1852_v1 = vld [vmem:[%s5987_s3 + $0x1d0] sm:$0xff] }
 0x106   :  { %1739 = vmatpush1.bf16.msra.mxu1 %v5055_v2  ;;  %4648 = vmatpush3.bf16.msra.mxu0 %v4647_v34  ;;  %v1853_v2 = vld [vmem:[%s5987_s3 + $0x1d8] sm:$0xff] }
 0x107   :  { %1749 = vmatprep.subr.bf16.mxu1 %v5060_v3  ;;  %v4667_v3 = vpack.c.bf16 %v1835_v63, %v1834_v62  ;;  %v5084_v62 = vld [vmem:[#allocation5 + $0x4] ss:$28 sps:$4 sm:$0xff]  }
 0x108   :  { %v5085_v63 = vld [vmem:[#allocation5 + $0x8] ss:$28 sps:$4 sm:$0xff]   ;;  %3610 = vmatprep.subr.bf16.mxu0 %v5084_v62  ;;  %v5163_v62 = vld [vmem:[#allocation5 + $0x2e0] ss:$28 sps:$4 sm:$0xff]  }
 0x109   :  { %1741 = vmatmul.mubr.bf16.vlgmr.msra.gmra.mrb[4].mxu1 %v5656_v23  ;;  %v5432_v23 = vld [vmem:[%s5984_s0 + $0x18] ss:$0 sps:$4 sm:$0xff]  }
 0x10a   :  { %1750 = vmatpush1.bf16.msra.mxu1 %v5058_v4  ;;  %1781 = vmatprep.mubr.bf16.mxu1 %v5511_v0  ;;  %v4669_v4 = vpack.c.bf16 %v1853_v2, %v1852_v1  ;;  %v5087_v1 = vld [vmem:[#allocation5 + $0xc] ss:$28 sps:$4 sm:$0xff]   ;;  %v5090_v2 = vld [vmem:[#allocation5 + $0x3c] ss:$28 sps:$4 sm:$0xff]  }
 0x10b   :  { %1751 = vmatprep.subr.bf16.mxu1 %v5063_v5  ;;  %v1836_v5 = vld [vmem:[%s5987_s3 + $0x150] sm:$0xff] }
 0x10e   :  { %1752 = vmatpush1.bf16.msra.mxu1 %v5061_v6  ;;  %v1837_v6 = vld [vmem:[%s5987_s3 + $0x158] sm:$0xff] }
 0x10f   :  { %1753 = vmatprep.subr.bf16.mxu1 %v5066_v7  ;;  %v1854_v7 = vld [vmem:[%s5987_s3 + $0x1e0] sm:$0xff] }
 0x112   :  { %1754 = vmatpush1.bf16.msra.mxu1 %v5064_v8  ;;  %v1855_v8 = vld [vmem:[%s5987_s3 + $0x1e8] sm:$0xff] }
 0x113   :  { %1755 = vmatprep.subr.bf16.mxu1 %v5069_v9  ;;  %v4671_v9 = vpack.c.bf16 %v1837_v6, %v1836_v5  ;;  %v5091_v6 = vld [vmem:[#allocation5 + $0x40] ss:$28 sps:$4 sm:$0xff]  }
 0x116   :  { %1756 = vmatpush1.bf16.msra.mxu1 %v5067_v10  ;;  %v4673_v10 = vpack.c.bf16 %v1855_v8, %v1854_v7  ;;  %v5096_v7 = vld [vmem:[#allocation5 + $0x74] ss:$28 sps:$4 sm:$0xff]   ;;  %v5099_v8 = vld [vmem:[#allocation5 + $0x7c] ss:$28 sps:$4 sm:$0xff]  }
 0x117   :  { %1757 = vmatprep.subr.bf16.mxu1 %v5072_v11  ;;  %v1838_v11 = vld [vmem:[%s5987_s3 + $0x160] sm:$0xff] }
 0x11a   :  { %1758 = vmatpush1.bf16.msra.mxu1 %v5070_v12  ;;  %v1839_v12 = vld [vmem:[%s5987_s3 + $0x168] sm:$0xff] }
 0x11b   :  { %1759 = vmatprep.subr.bf16.mxu1 %v5075_v13  ;;  %v4675_v13 = vpack.c.bf16 %v1839_v12, %v1838_v11  ;;  %v5102_v11 = vld [vmem:[#allocation5 + $0xac] ss:$28 sps:$4 sm:$0xff]   ;;  %v5105_v12 = vld [vmem:[#allocation5 + $0xb4] ss:$28 sps:$4 sm:$0xff]  }
 0x11c   :  { %v5715_v17 = vpop.f32.mrb[0].mxu1 }
 0x11d   :  { %v5717_v0 = vpop.f32.mrb[1].mxu1 }
 0x11e   :  { %v1623_v18 = vpop.f32.mrb[2].mxu1  ;;  %1760 = vmatpush1.bf16.msra.mxu1 %v5073_v14  ;;  %v1856_v14 = vld [vmem:[%s5987_s3 + $0x1f0] sm:$0xff] }
 0x11f   :  { %v1624_v20 = vpop.f32.mrb[3].mxu1  ;;  %1761 = vmatprep.subr.bf16.mxu1 %v5078_v15  ;;  %v1857_v15 = vld [vmem:[%s5987_s3 + $0x1f8] sm:$0xff] }
 0x120   :  { %v4677_v18 = vpack.c.bf16 %v1857_v15, %v1856_v14  ;;  %v1841_v20 = vld [vmem:[%s5987_s3 + $0x178] sm:$0xff]  ;;  %v5103_v14 = vld [vmem:[#allocation5 + $0xb0] ss:$28 sps:$4 sm:$0xff]   ;;  %v5108_v15 = vld [vmem:[#allocation5 + $0xe4] ss:$28 sps:$4 sm:$0xff]  }
 0x122   :  { %1762 = vmatpush1.bf16.msra.mxu1 %v5076_v19  ;;  %v1840_v19 = vld [vmem:[%s5987_s3 + $0x170] sm:$0xff] }
 0x123   :  { %1763 = vmatprep.subr.bf16.mxu1 %v5081_v21  ;;  %v4679_v21 = vpack.c.bf16 %v1841_v20, %v1840_v19  ;;  %v5106_v19 = vld [vmem:[#allocation5 + $0xe0] ss:$28 sps:$4 sm:$0xff]   ;;  %v5109_v20 = vld [vmem:[#allocation5 + $0xe8] ss:$28 sps:$4 sm:$0xff]  }
 0x126   :  { %1764 = vmatpush1.bf16.msra.mxu1 %v5079_v22  ;;  %v2005_v22 = vld [vmem:[%s5989_s5] sm:$0xff]  ;;  %s5514_s5 = smov 126  }
 0x127   :  { %4650 = vmatprep.subr.bf16.mxu1 %v4649_v38  ;;  %2007 = vrot.lane.b32.xlu0 %v2005_v22, %s5512_s15  ;;  %v5117_v22 = vld [vmem:[#allocation5 + $0x124] ss:$28 sps:$4 sm:$0xff]  }
 0x129   :  { %1782 = vmatmul.mubr.bf16.vlgmr.msra.gmra.mrb[4].mxu1 %v5432_v23  ;;  %v297_v23 = vlaneseq }
 0x12a   :  { %4652 = vmatpush3.bf16.msra.mxu1 %v4651_v42 }
 0x12b   :  { %4654 = vmatprep.subr.bf16.mxu1 %v4653_v43  ;;  %v5846_v24 = vshrl.u32 %v297_v23, 7  ;;  %v5112_v23 = vld [vmem:[#allocation5 + $0x118] ss:$28 sps:$4 sm:$0xff]  }
 0x12d   :  { %v5849_v25 = vsub.s32 0, %v5846_v24  ;;  %v5855_v27 = vsub.s32 1, %v5846_v24  ;;  %v5862_v39 = vsub.s32 2, %v5846_v24  ;;  %v5865_v40 = vsub.s32 3, %v5846_v24 }
 0x12e   :  { %4656 = vmatpush3.bf16.msra.mxu1 %v4655_v48 }
 0x12f   :  { %4658 = vmatprep.subr.bf16.mxu1 %v4657_v49  ;;  %v300_v28 = vrot.slane %v295_v26, %v5849_v25  ;;  %v304_v16 = vrot.slane %v295_v26, %v5855_v27  ;;  %v308_v41 = vrot.slane %v295_v26, %v5862_v39  ;;  %v312_v42 = vrot.slane %v295_v26, %v5865_v40  ;;  %v5115_v26 = vld [vmem:[#allocation5 + $0x120] ss:$28 sps:$4 sm:$0xff]  }
 0x132   :  { %4660 = vmatpush3.bf16.msra.mxu1 %v4659_v54 }
 0x133   :  { %4662 = vmatprep.subr.bf16.mxu1 %v4661_v55  ;;  %v5513_v55 = vmov 1  }
 0x134   :  { %4738 = vset.pattern.permute.xlu0 %v5513_v55 }
 0x136   :  { %4664 = vmatpush3.bf16.msra.mxu1 %v4663_v60 }
 0x137   :  { %4666 = vmatprep.subr.bf16.mxu1 %v4665_v61  ;;  %v5082_v61 = vld [vmem:[#allocation5] ss:$28 sps:$4 sm:$0xff]  }
 0x13a   :  { %4668 = vmatpush3.bf16.msra.mxu1 %v4667_v3  ;;  %v5093_v3 = vld [vmem:[#allocation5 + $0x44] ss:$28 sps:$4 sm:$0xff]  }
 0x13b   :  { %4670 = vmatprep.subr.bf16.mxu1 %v4669_v4  ;;  %v5088_v4 = vld [vmem:[#allocation5 + $0x38] ss:$28 sps:$4 sm:$0xff]  }
 0x13e   :  { %4672 = vmatpush3.bf16.msra.mxu1 %v4671_v9  ;;  %v5094_v9 = vld [vmem:[#allocation5 + $0x70] ss:$28 sps:$4 sm:$0xff]  }
 0x13f   :  { %4674 = vmatprep.subr.bf16.mxu1 %v4673_v10  ;;  %v5097_v10 = vld [vmem:[#allocation5 + $0x78] ss:$28 sps:$4 sm:$0xff]  }
 0x142   :  { %4676 = vmatpush3.bf16.msra.mxu1 %v4675_v13  ;;  %v5100_v13 = vld [vmem:[#allocation5 + $0xa8] ss:$28 sps:$4 sm:$0xff]  }
 0x143   :  { %4678 = vmatprep.subr.bf16.mxu1 %v4677_v18  ;;  %v5111_v18 = vld [vmem:[#allocation5 + $0xec] ss:$28 sps:$4 sm:$0xff]  }
 0x146   :  { %4680 = vmatpush3.bf16.msra.mxu1 %v4679_v21  ;;  %v5114_v21 = vld [vmem:[#allocation5 + $0x11c] ss:$28 sps:$4 sm:$0xff]  }
 0x147   :  { %3692 = vmatprep.subr.bf16.mxu1 %v5087_v1  ;;  %v5165_v1 = vld [vmem:[#allocation5 + $0x2e4] ss:$28 sps:$4 sm:$0xff]  }
 0x199   :  { %v2008_v58 = vpop.permute.xlu0 %2007 }
 0x1bc   :  { %v1578_v29 = vpop.f32.mrb[0].mxu0 }
 0x1bd   :  { %v4681_v30 = vadd.f32 %v1578_v29, %v300_v28  ;;  %v1580_v31 = vpop.f32.mrb[1].mxu0  ;;  %v5120_v28 = vld [vmem:[#allocation5 + $0x154] ss:$28 sps:$4 sm:$0xff]  }
 0x1be   :  { %v4683_v32 = vadd.f32 %v1580_v31, %v304_v16  ;;  %v1582_v33 = vpop.f32.mrb[2].mxu0  ;;  %v5123_v16 = vld [vmem:[#allocation5 + $0x15c] ss:$28 sps:$4 sm:$0xff]   ;;  %v5118_v29 = vld [vmem:[#allocation5 + $0x150] ss:$28 sps:$4 sm:$0xff]  }
 0x1bf   :  { %v4682_v34 = vadd.f32 %v4681_v30, %v5715_v17  ;;  %v1583_v35 = vpop.f32.mrb[3].mxu0  ;;  %v5121_v30 = vld [vmem:[#allocation5 + $0x158] ss:$28 sps:$4 sm:$0xff]   ;;  %v5126_v31 = vld [vmem:[#allocation5 + $0x18c] ss:$28 sps:$4 sm:$0xff]  }
 0x1c0   :  { %v4684_v36 = vadd.f32 %v4683_v32, %v5717_v0  ;;  %v5129_v32 = vld [vmem:[#allocation5 + $0x194] ss:$28 sps:$4 sm:$0xff]   ;;  %v5124_v33 = vld [vmem:[#allocation5 + $0x188] ss:$28 sps:$4 sm:$0xff]  }
 0x1c1   :  { %v1790_v38 = vmax.f32 %v4682_v34, 0.0  ;;  %v5127_v34 = vld [vmem:[#allocation5 + $0x190] ss:$28 sps:$4 sm:$0xff]   ;;  %v5132_v35 = vld [vmem:[#allocation5 + $0x1c4] ss:$28 sps:$4 sm:$0xff]  }
 0x1c2   :  { %v1791_v37 = vmax.f32 %v4684_v36, 0.0  ;;  %v5135_v36 = vld [vmem:[#allocation5 + $0x1cc] ss:$28 sps:$4 sm:$0xff]  }
 0x1c4   :  { %1929 = vmatprep.mubr.f32.mxu0 %v1791_v37  ;;  %v5130_v37 = vld [vmem:[#allocation5 + $0x1c0] ss:$28 sps:$4 sm:$0xff]  }
 0x1c5   :  { %1930 = vmatmul.mubr.f32.vlgmr.msra.gmra.mrb[4].mxu0 %v1790_v38  ;;  %v5133_v38 = vld [vmem:[#allocation5 + $0x1c8] ss:$28 sps:$4 sm:$0xff]  }
 0x1c6   :  { %3611 = vmatpush1.bf16.msra.mxu0 %v5082_v61  ;;  %v5162_v61 = vld [vmem:[#allocation5 + $0x2dc] ss:$28 sps:$4 sm:$0xff]  }
 0x1c7   :  { %3612 = vmatprep.subr.bf16.mxu0 %v5090_v2 }
 0x1ca   :  { %3613 = vmatpush1.bf16.msra.mxu0 %v5088_v4 }
 0x1cb   :  { %3614 = vmatprep.subr.bf16.mxu0 %v5096_v7 }
 0x1ce   :  { %3615 = vmatpush1.bf16.msra.mxu0 %v5094_v9  ;;  %v5169_v9 = vld [vmem:[#allocation5 + $0x318] ss:$28 sps:$4 sm:$0xff]  }
 0x1cf   :  { %3616 = vmatprep.subr.bf16.mxu0 %v5102_v11  ;;  %v5172_v11 = vld [vmem:[#allocation5 + $0x348] ss:$28 sps:$4 sm:$0xff]  }
 0x1d2   :  { %3617 = vmatpush1.bf16.msra.mxu0 %v5100_v13  ;;  %v5183_v13 = vld [vmem:[#allocation5 + $0x38c] ss:$28 sps:$4 sm:$0xff]  }
 0x1d3   :  { %3618 = vmatprep.subr.bf16.mxu0 %v5108_v15  ;;  %v2057_v15 = vsub.s32 6, %v5846_v24 }
 0x1d6   :  { %3619 = vmatpush1.bf16.msra.mxu0 %v5106_v19  ;;  %v2097_v19 = vsub.s32 5, %v5846_v24 }
 0x1d7   :  { %3620 = vmatprep.subr.bf16.mxu0 %v5114_v21 }
 0x1da   :  { %3621 = vmatpush1.bf16.msra.mxu0 %v5112_v23 }
 0x1db   :  { %3622 = vmatprep.subr.bf16.mxu0 %v5120_v28 }
 0x1de   :  { %3623 = vmatpush1.bf16.msra.mxu0 %v5118_v29 }
 0x1df   :  { %3624 = vmatprep.subr.bf16.mxu0 %v5126_v31 }
 0x1e2   :  { %3625 = vmatpush1.bf16.msra.mxu0 %v5124_v33 }
 0x1e3   :  { %3626 = vmatprep.subr.bf16.mxu0 %v5132_v35 }
 0x1e6   :  { %3627 = vmatpush1.bf16.msra.mxu0 %v5130_v37 }
 0x1fc   :  { %v1783_v43 = vpop.f32.mrb[4].mxu1 }
 0x1fd   :  { %v4685_v44 = vadd.f32 %v1783_v43, %v308_v41  ;;  %v1785_v17 = vpop.f32.mrb[5].mxu1  ;;  %v5138_v41 = vld [vmem:[#allocation5 + $0x1fc] ss:$28 sps:$4 sm:$0xff]  }
 0x1fe   :  { %v4686_v45 = vadd.f32 %v1785_v17, %v312_v42  ;;  %v1787_v46 = vpop.f32.mrb[6].mxu1  ;;  %v5141_v42 = vld [vmem:[#allocation5 + $0x204] ss:$28 sps:$4 sm:$0xff]   ;;  %v5136_v43 = vld [vmem:[#allocation5 + $0x1f8] ss:$28 sps:$4 sm:$0xff]   ;;  %3628 = vmatprep.subr.bf16.mxu0 %v5138_v41 }
 0x1ff   :  { %v1788_v0 = vpop.f32.mrb[7].mxu1  ;;  %v1792_v48 = vmax.f32 %v4685_v44, 0.0  ;;  %v5139_v44 = vld [vmem:[#allocation5 + $0x200] ss:$28 sps:$4 sm:$0xff]   ;;  %v5144_v17 = vld [vmem:[#allocation5 + $0x234] ss:$28 sps:$4 sm:$0xff]   ;;  %3629 = vmatpush1.bf16.msra.mxu0 %v5136_v43 }
 0x200   :  { %v1793_v47 = vmax.f32 %v4686_v45, 0.0  ;;  %v5147_v45 = vld [vmem:[#allocation5 + $0x23c] ss:$28 sps:$4 sm:$0xff]   ;;  %v5142_v46 = vld [vmem:[#allocation5 + $0x230] ss:$28 sps:$4 sm:$0xff]   ;;  %3630 = vmatprep.subr.bf16.mxu0 %v5144_v17 }
 0x201   :  { %v5145_v0 = vld [vmem:[#allocation5 + $0x238] ss:$28 sps:$4 sm:$0xff]  }
 0x202   :  { %1999 = vmatprep.mubr.f32.mxu1 %v1793_v47  ;;  %v5150_v47 = vld [vmem:[#allocation5 + $0x26c] ss:$28 sps:$4 sm:$0xff]  }
 0x203   :  { %2000 = vmatmul.mubr.f32.vlgmr.msra.gmra.mrb[8].mxu1 %v1792_v48  ;;  %v5153_v48 = vld [vmem:[#allocation5 + $0x274] ss:$28 sps:$4 sm:$0xff]   ;;  %3631 = vmatpush1.bf16.msra.mxu0 %v5142_v46 }
 0x204   :  { %3693 = vmatpush1.bf16.msra.mxu1 %v5085_v63  ;;  %3632 = vmatprep.subr.bf16.mxu0 %v5150_v47 }
 0x205   :  { %3694 = vmatprep.subr.bf16.mxu1 %v5093_v3 }
 0x208   :  { %3695 = vmatpush1.bf16.msra.mxu1 %v5091_v6  ;;  %v5168_v6 = vld [vmem:[#allocation5 + $0x314] ss:$28 sps:$4 sm:$0xff]  }
 0x209   :  { %3696 = vmatprep.subr.bf16.mxu1 %v5099_v8  ;;  %v5166_v8 = vld [vmem:[#allocation5 + $0x310] ss:$28 sps:$4 sm:$0xff]  }
 0x20c   :  { %3697 = vmatpush1.bf16.msra.mxu1 %v5097_v10  ;;  %v5177_v10 = vld [vmem:[#allocation5 + $0x354] ss:$28 sps:$4 sm:$0xff]  }
 0x20d   :  { %3698 = vmatprep.subr.bf16.mxu1 %v5105_v12  ;;  %v5175_v12 = vld [vmem:[#allocation5 + $0x350] ss:$28 sps:$4 sm:$0xff]  }
 0x210   :  { %3699 = vmatpush1.bf16.msra.mxu1 %v5103_v14  ;;  %v2053_v14 = vsub.s32 4, %v5846_v24 }
 0x211   :  { %3700 = vmatprep.subr.bf16.mxu1 %v5111_v18  ;;  %v2036_v18 = vld [vmem:[%s5990_s6] sm:$0xff] }
 0x212   :  { %v2046_v21 = vrot.slane %v2036_v18, %v5849_v25  ;;  %v2054_v23 = vrot.slane %v2036_v18, %v2053_v14  ;;  %v2090_v28 = vrot.slane %v2036_v18, %v5855_v27  ;;  %v2098_v29 = vrot.slane %v2036_v18, %v2097_v19 }
 0x214   :  { %3701 = vmatpush1.bf16.msra.mxu1 %v5109_v20  ;;  %v2101_v20 = vsub.s32 7, %v5846_v24  ;;  %v2110_v37 = vrot.slane %v2090_v28, %v5855_v27  ;;  %v2118_v41 = vrot.slane %v2098_v29, %v5855_v27  ;;  %v5199_v28 = vld [vmem:[#allocation5 + $0x430] ss:$28 sps:$4 sm:$0xff]  }
 0x215   :  { %3702 = vmatprep.subr.bf16.mxu1 %v5117_v22  ;;  %v2050_v22 = vrot.slane %v2036_v18, %v5862_v39  ;;  %v5207_v29 = vld [vmem:[#allocation5 + $0x46c] ss:$28 sps:$4 sm:$0xff]  }
 0x217   :  { %v2070_v33 = vrot.slane %v2050_v22, %v5849_v25  ;;  %v5198_v22 = vld [vmem:[#allocation5 + $0x42c] ss:$28 sps:$4 sm:$0xff]  }
 0x218   :  { %3703 = vmatpush1.bf16.msra.mxu1 %v5115_v26  ;;  %v2058_v26 = vrot.slane %v2036_v18, %v2057_v15 }
 0x219   :  { %3704 = vmatprep.subr.bf16.mxu1 %v5123_v16  ;;  %v2094_v16 = vrot.slane %v2036_v18, %v5865_v40 }
 0x21a   :  { %v2078_v35 = vrot.slane %v2058_v26, %v5849_v25  ;;  %v5196_v26 = vld [vmem:[#allocation5 + $0x428] ss:$28 sps:$4 sm:$0xff]  }
 0x21c   :  { %3705 = vmatpush1.bf16.msra.mxu1 %v5121_v30  ;;  %v2102_v30 = vrot.slane %v2036_v18, %v2101_v20  ;;  %v5195_v18 = vld [vmem:[#allocation5 + $0x3fc] ss:$28 sps:$4 sm:$0xff]   ;;  %v5190_v20 = vld [vmem:[#allocation5 + $0x3f0] ss:$28 sps:$4 sm:$0xff]  }
 0x21d   :  { %3706 = vmatprep.subr.bf16.mxu1 %v5129_v32  ;;  %v2066_v32 = vrot.slane %v2046_v21, %v5849_v25  ;;  %v5193_v21 = vld [vmem:[#allocation5 + $0x3f8] ss:$28 sps:$4 sm:$0xff]  }
 0x220   :  { %3707 = vmatpush1.bf16.msra.mxu1 %v5127_v34  ;;  %v2074_v34 = vrot.slane %v2054_v23, %v5849_v25  ;;  %v5201_v23 = vld [vmem:[#allocation5 + $0x434] ss:$28 sps:$4 sm:$0xff]  }
 0x221   :  { %3708 = vmatprep.subr.bf16.mxu1 %v5135_v36  ;;  %v2131_v36 = vld [vmem:[%s5991_s7] sm:$0xf] }
 0x222   :  { %v2140_v43 = vrot.slane %v2131_v36, %v5855_v27  ;;  %v2148_v17 = vrot.slane %v2131_v36, %v5865_v40 }
 0x224   :  { %3709 = vmatpush1.bf16.msra.mxu1 %v5133_v38  ;;  %v2114_v38 = vrot.slane %v2094_v16, %v5855_v27  ;;  %v5204_v16 = vld [vmem:[#allocation5 + $0x464] ss:$28 sps:$4 sm:$0xff]  }
 0x225   :  { %3710 = vmatprep.subr.bf16.mxu1 %v5141_v42  ;;  %v2122_v42 = vrot.slane %v2102_v30, %v5855_v27  ;;  %v5202_v30 = vld [vmem:[#allocation5 + $0x460] ss:$28 sps:$4 sm:$0xff]  }
 0x228   :  { %3711 = vmatpush1.bf16.msra.mxu1 %v5139_v44  ;;  %v2136_v44 = vrot.slane %v2131_v36, %v5849_v25 }
 0x229   :  { %3712 = vmatprep.subr.bf16.mxu1 %v5147_v45 }
 0x22c   :  { %3713 = vmatpush1.bf16.msra.mxu1 %v5145_v0 }
 0x22d   :  { %3714 = vmatprep.subr.bf16.mxu1 %v5153_v48 }
 0x298   :  { %v4535_v49 = vpop.f32.mrb[4].mxu0 }
 0x299   :  { %v4536_v50 = vpop.f32.mrb[5].mxu0 }
 0x29a   :  { %v4537_v51 = vadd.f32 %v4536_v50, %v4535_v49  ;;  %v5148_v49 = vld [vmem:[#allocation5 + $0x268] ss:$28 sps:$4 sm:$0xff]   ;;  %v5151_v50 = vld [vmem:[#allocation5 + $0x270] ss:$28 sps:$4 sm:$0xff]  }
 0x29b   :  { %3633 = vmatpush1.bf16.msra.mxu0 %v5148_v49  ;;  %3715 = vmatpush1.bf16.msra.mxu1 %v5151_v50 }
 0x29c   :  { %v1932_v56 = vadd.f32 %v4537_v51, %v4262_v52  ;;  %v5156_v51 = vld [vmem:[#allocation5 + $0x2a4] ss:$28 sps:$4 sm:$0xff]   ;;  %v5159_v52 = vld [vmem:[#allocation5 + $0x2ac] ss:$28 sps:$4 sm:$0xff]  }
 0x29d   :  { %3634 = vmatprep.subr.bf16.mxu0 %v5156_v51  ;;  %3716 = vmatprep.subr.bf16.mxu1 %v5159_v52 }
 0x2d6   :  { %v4570_v53 = vpop.f32.mrb[8].mxu1 }
 0x2d7   :  { %v4571_v54 = vpop.f32.mrb[9].mxu1 }
 0x2d8   :  { %v4572_v57 = vadd.f32 %v4571_v54, %v4570_v53  ;;  %v5154_v53 = vld [vmem:[#allocation5 + $0x2a0] ss:$28 sps:$4 sm:$0xff]   ;;  %v5157_v54 = vld [vmem:[#allocation5 + $0x2a8] ss:$28 sps:$4 sm:$0xff]  }
 0x2d9   :  { %3635 = vmatpush1.bf16.msra.mxu0 %v5154_v53  ;;  %3717 = vmatpush1.bf16.msra.mxu1 %v5157_v54  ;;  %v2144_v53 = vrot.slane %v2131_v36, %v5862_v39  ;;  %v5216_v36 = vld [vmem:[#allocation5 + $0x4d4] ss:$28 sps:$4 sm:$0xff]  }
 0x2da   :  { %v5873_v59 = vadd.f32 %v4572_v57, %v1932_v56  ;;  %3636 = vmatprep.subr.bf16.mxu0 %v5162_v61  ;;  %3718 = vmatprep.subr.bf16.mxu1 %v5165_v1 }
 0x2dc   :  { %v2010_v60 = vmul.f32 %v2008_v58, %v5873_v59  ;;  %v5879_v5 = vmul.f32 %v5873_v59, %v5873_v59  ;;  %5402 = vlog2.f32 %v5873_v59 }
 0x2dd   :  { %3719 = vmatpush1.bf16.msra.mxu1 %v5163_v62 }
 0x2de   :  { %2012 = vrot.lane.b32.xlu0 %v2010_v60, %s5514_s5  ;;  %v5160_v60 = vld [vmem:[#allocation5 + $0x2d8] ss:$28 sps:$4 sm:$0xff]  }
 0x2df   :  { %3637 = vmatpush1.bf16.msra.mxu0 %v5160_v60 }
 0x2e0   :  { %3638 = vmatprep.subr.bf16.mxu0 %v5168_v6 }
 0x2e2   :  { %2018 = vrot.lane.b32.xlu0 %v5879_v5, %s5512_s15 }
 0x2e3   :  { %3639 = vmatpush1.bf16.msra.mxu0 %v5166_v8  ;;  %v5181_v8 = vld [vmem:[#allocation5 + $0x388] ss:$28 sps:$4 sm:$0xff]  }
 0x2e6   :  { %v5403_v58 = vpop.eup %5402 }
 0x2e7   :  { %v2023_v2 = vmul.f32 0.6931472, %v5403_v58 }
 0x350   :  { %v2013_v56 = vpop.permute.xlu0 %2012 }
 0x351   :  { %v2015_v57 = vadd.f32 %v2013_v56, %v5873_v59  ;;  %v5171_v59 = vld [vmem:[#allocation5 + $0x31c] ss:$28 sps:$4 sm:$0xff]  }
 0x352   :  { %3720 = vmatprep.subr.bf16.mxu1 %v5171_v59 }
 0x353   :  { %2039 = vperm.xlu1 %4736, %v2015_v57   ;;  %3721 = vmatpush1.bf16.msra.mxu1 %v5169_v9 }
 0x354   :  { %v2019_v63 = vpop.permute.xlu0 %2018  ;;  %3722 = vmatprep.subr.bf16.mxu1 %v5177_v10  ;;  %v5189_v10 = vld [vmem:[#allocation5 + $0x3c4] ss:$28 sps:$4 sm:$0xff]  }
 0x355   :  { %v2021_v3 = vadd.f32 %v2019_v63, %v5879_v5  ;;  %v5174_v5 = vld [vmem:[#allocation5 + $0x34c] ss:$28 sps:$4 sm:$0xff]  }
 0x356   :  { %3640 = vmatprep.subr.bf16.mxu0 %v5174_v5  ;;  %v5186_v5 = vld [vmem:[#allocation5 + $0x3bc] ss:$28 sps:$4 sm:$0xff]  }
 0x357   :  { %v2024_v4 = vsub.f32 %v2021_v3, %v2023_v2  ;;  %4737 = vset.pattern.permute.xlu1 %v5513_v55  ;;  %3641 = vmatpush1.bf16.msra.mxu0 %v5172_v11  ;;  %v5180_v55 = vld [vmem:[#allocation5 + $0x384] ss:$28 sps:$4 sm:$0xff]  }
 0x358   :  { %2084 = vperm.xlu1 %4737, %v2015_v57   ;;  %3723 = vmatpush1.bf16.msra.mxu1 %v5175_v12  ;;  %v5184_v12 = vld [vmem:[#allocation5 + $0x3b8] ss:$28 sps:$4 sm:$0xff]  }
 0x359   :  { %v4263_v7 = vadd.f32 -0.5, %v2024_v4  ;;  %3651 = vmatprep.subr.bf16.mxu0 %v5180_v55  ;;  %3733 = vmatprep.subr.bf16.mxu1 %v5183_v13  ;;  %v5187_v55 = vld [vmem:[#allocation5 + $0x3c0] ss:$28 sps:$4 sm:$0xff]   ;;  %v5192_v13 = vld [vmem:[#allocation5 + $0x3f4] ss:$28 sps:$4 sm:$0xff]  }
 0x35c   :  { %2027 = vrot.lane.b32.xlu1 %v4263_v7, %s5514_s5  ;;  %v5178_v7 = vld [vmem:[#allocation5 + $0x380] ss:$28 sps:$4 sm:$0xff]  }
 0x3d2   :  { %v2040_v31 = vpop.permute.xlu1 %2039 }
 0x3d3   :  { %v2079_v45 = vmul.f32 %v2066_v32, %v2040_v31  ;;  %v2080_v46 = vmul.f32 %v2070_v33, %v2040_v31  ;;  %v2081_v0 = vmul.f32 %v2074_v34, %v2040_v31  ;;  %v2082_v47 = vmul.f32 %v2078_v35, %v2040_v31  ;;  %v5205_v31 = vld [vmem:[#allocation5 + $0x468] ss:$28 sps:$4 sm:$0xff]   ;;  %v5210_v32 = vld [vmem:[#allocation5 + $0x49c] ss:$28 sps:$4 sm:$0xff]  }
 0x3d4   :  { %v5213_v33 = vld [vmem:[#allocation5 + $0x4a4] ss:$28 sps:$4 sm:$0xff]   ;;  %v5208_v34 = vld [vmem:[#allocation5 + $0x498] ss:$28 sps:$4 sm:$0xff]  }
 0x3d5   :  { %v5211_v35 = vld [vmem:[#allocation5 + $0x4a0] ss:$28 sps:$4 sm:$0xff]  }
 0x3d7   :  { %v2085_v48 = vpop.permute.xlu1 %2084 }
 0x3d8   :  { %v2123_v49 = vmul.f32 %v2110_v37, %v2085_v48  ;;  %v2124_v50 = vmul.f32 %v2114_v38, %v2085_v48  ;;  %v2125_v51 = vmul.f32 %v2118_v41, %v2085_v48  ;;  %v2126_v52 = vmul.f32 %v2122_v42, %v2085_v48  ;;  %v5219_v37 = vld [vmem:[#allocation5 + $0x4dc] ss:$28 sps:$4 sm:$0xff]   ;;  %v5214_v38 = vld [vmem:[#allocation5 + $0x4d0] ss:$28 sps:$4 sm:$0xff]  }
 0x3d9   :  { %v5217_v41 = vld [vmem:[#allocation5 + $0x4d8] ss:$28 sps:$4 sm:$0xff]   ;;  %v5222_v42 = vld [vmem:[#allocation5 + $0x50c] ss:$28 sps:$4 sm:$0xff]  }
 0x3da   :  { %v2127_v54 = vadd.f32 %v2123_v49, %v2079_v45  ;;  %v2128_v56 = vadd.f32 %v2124_v50, %v2080_v46  ;;  %v2129_v57 = vadd.f32 %v2125_v51, %v2081_v0  ;;  %v2130_v58 = vadd.f32 %v2126_v52, %v2082_v47  ;;  %v5228_v45 = vld [vmem:[#allocation5 + $0x544] ss:$28 sps:$4 sm:$0xff]   ;;  %v5231_v46 = vld [vmem:[#allocation5 + $0x54c] ss:$28 sps:$4 sm:$0xff]   ;;  %v5234_v48 = vld [vmem:[#allocation5 + $0x57c] ss:$28 sps:$4 sm:$0xff]  }
 0x3db   :  { %v2028_v60 = vpop.permute.xlu1 %2027  ;;  %v5226_v0 = vld [vmem:[#allocation5 + $0x540] ss:$28 sps:$4 sm:$0xff]   ;;  %v5229_v47 = vld [vmem:[#allocation5 + $0x548] ss:$28 sps:$4 sm:$0xff]   ;;  %v5232_v50 = vld [vmem:[#allocation5 + $0x578] ss:$28 sps:$4 sm:$0xff]  }
 0x3dc   :  { %v2031_v61 = vsel %vm2030_vm0, %v2028_v60, 0.0  ;;  %v2154_v62 = vadd.f32 %v2140_v43, %v2128_v56  ;;  %v2153_v63 = vadd.f32 %v2136_v44, %v2127_v54  ;;  %v2156_v1 = vadd.f32 %v2148_v17, %v2130_v58  ;;  %v5225_v43 = vld [vmem:[#allocation5 + $0x514] ss:$28 sps:$4 sm:$0xff]   ;;  %v5220_v44 = vld [vmem:[#allocation5 + $0x508] ss:$28 sps:$4 sm:$0xff]  }
 0x3dd   :  { %2032 = vadd.xlane.f32.xlu0 %v2031_v61  ;;  %v5920_v2 = vadd.f32 %v2144_v53, %v2129_v57  ;;  %v5223_v17 = vld [vmem:[#allocation5 + $0x510] ss:$28 sps:$4 sm:$0xff]   ;;  %v5237_v49 = vld [vmem:[#allocation5 + $0x584] ss:$28 sps:$4 sm:$0xff]   ;;  %v5243_v53 = vld [vmem:[#allocation5 + $0x5bc] ss:$28 sps:$4 sm:$0xff]  }
 0x3de   :  { %v2158_v3 = vmax.f32 %v2154_v62, 0.0  ;;  %v2157_v4 = vmax.f32 %v2153_v63, 0.0  ;;  %v2160_v6 = vmax.f32 %v2156_v1, 0.0  ;;  %v5235_v51 = vld [vmem:[#allocation5 + $0x580] ss:$28 sps:$4 sm:$0xff]  }
 0x3df   :  { %v5240_v52 = vld [vmem:[#allocation5 + $0x5b4] ss:$28 sps:$4 sm:$0xff]   ;;  %v5246_v57 = vld [vmem:[#allocation5 + $0x5ec] ss:$28 sps:$4 sm:$0xff]   ;;  %v5252_v62 = vld [vmem:[#allocation5 + $0x624] ss:$28 sps:$4 sm:$0xff]  }
 0x3e0   :  { %v5922_v59 = vpack.c.bf16 %v2158_v3, %v2158_v3  ;;  %v5924_v9 = vpack.c.bf16 %v2157_v4, %v2157_v4  ;;  %v5930_v11 = vpack.c.bf16 %v2160_v6, %v2160_v6  ;;  %v5238_v54 = vld [vmem:[#allocation5 + $0x5b0] ss:$28 sps:$4 sm:$0xff]   ;;  %v5241_v56 = vld [vmem:[#allocation5 + $0x5b8] ss:$28 sps:$4 sm:$0xff]   ;;  %v5244_v60 = vld [vmem:[#allocation5 + $0x5e8] ss:$28 sps:$4 sm:$0xff]  }
 0x3e1   :  { %v5249_v58 = vld [vmem:[#allocation5 + $0x5f4] ss:$28 sps:$4 sm:$0xff]   ;;  %v5255_v63 = vld [vmem:[#allocation5 + $0x62c] ss:$28 sps:$4 sm:$0xff]   ;;  %v5250_v1 = vld [vmem:[#allocation5 + $0x620] ss:$28 sps:$4 sm:$0xff]  }
 0x3e2   :  { %3642 = vmatprep.mubr.bf16.mxu0 %v5922_v59  ;;  %3724 = vmatprep.mubr.bf16.mxu1 %v5922_v59  ;;  %v5247_v61 = vld [vmem:[#allocation5 + $0x5f0] ss:$28 sps:$4 sm:$0xff]   ;;  %v5253_v3 = vld [vmem:[#allocation5 + $0x628] ss:$28 sps:$4 sm:$0xff]   ;;  %v5258_v4 = vld [vmem:[#allocation5 + $0x65c] ss:$28 sps:$4 sm:$0xff]  }
 0x3e3   :  { %3643 = vmatmul.mubr.bf16.vlgmr.msra.gmra.mrb[8].mxu0 %v5924_v9  ;;  %3725 = vmatmul.mubr.bf16.vlgmr.msra.gmra.mrb[12].mxu1 %v5924_v9  ;;  %v5261_v6 = vld [vmem:[#allocation5 + $0x664] ss:$28 sps:$4 sm:$0xff]  }
 0x3e4   :  { %3652 = vmatpush1.bf16.msra.mxu0 %v5178_v7  ;;  %3734 = vmatpush1.bf16.msra.mxu1 %v5181_v8  ;;  %v5256_v7 = vld [vmem:[#allocation5 + $0x658] ss:$28 sps:$4 sm:$0xff]   ;;  %v5259_v8 = vld [vmem:[#allocation5 + $0x660] ss:$28 sps:$4 sm:$0xff]  }
 0x3e5   :  { %3683 = vmatprep.mubr.bf16.mxu0 %v5930_v11  ;;  %3765 = vmatprep.mubr.bf16.mxu1 %v5930_v11 }
 0x3e6   :  { %3653 = vmatprep.subr.bf16.mxu0 %v5186_v5  ;;  %3735 = vmatprep.subr.bf16.mxu1 %v5189_v10  ;;  %v5264_v5 = vld [vmem:[#allocation5 + $0x694] ss:$28 sps:$4 sm:$0xff]   ;;  %v5267_v10 = vld [vmem:[#allocation5 + $0x69c] ss:$28 sps:$4 sm:$0xff]  }
 0x3e8   :  { %3654 = vmatpush1.bf16.msra.mxu0 %v5184_v12  ;;  %3736 = vmatpush1.bf16.msra.mxu1 %v5187_v55  ;;  %v5262_v12 = vld [vmem:[#allocation5 + $0x690] ss:$28 sps:$4 sm:$0xff]   ;;  %v5265_v55 = vld [vmem:[#allocation5 + $0x698] ss:$28 sps:$4 sm:$0xff]  }
 0x3e9   :  { %3655 = vmatprep.subr.bf16.mxu0 %v5192_v13  ;;  %3737 = vmatprep.subr.bf16.mxu1 %v5195_v18  ;;  %v5270_v13 = vld [vmem:[#allocation5 + $0x6cc] ss:$28 sps:$4 sm:$0xff]   ;;  %v5273_v18 = vld [vmem:[#allocation5 + $0x6d4] ss:$28 sps:$4 sm:$0xff]  }
 0x3ec   :  { %3656 = vmatpush1.bf16.msra.mxu0 %v5190_v20  ;;  %3738 = vmatpush1.bf16.msra.mxu1 %v5193_v21  ;;  %v5268_v20 = vld [vmem:[#allocation5 + $0x6c8] ss:$28 sps:$4 sm:$0xff]   ;;  %v5271_v21 = vld [vmem:[#allocation5 + $0x6d0] ss:$28 sps:$4 sm:$0xff]  }
 0x3ed   :  { %3657 = vmatprep.subr.bf16.mxu0 %v5198_v22  ;;  %3739 = vmatprep.subr.bf16.mxu1 %v5201_v23  ;;  %v2159_v22 = vmax.f32 %v5920_v2, 0.0  ;;  %v5276_v23 = vld [vmem:[#allocation5 + $0x14] ss:$28 sps:$4 sm:$0xff]   ;;  %v5279_v2 = vld [vmem:[#allocation5 + $0x48] ss:$28 sps:$4 sm:$0xff]  }
 0x3f0   :  { %3658 = vmatpush1.bf16.msra.mxu0 %v5196_v26  ;;  %3740 = vmatpush1.bf16.msra.mxu1 %v5199_v28  ;;  %v5277_v26 = vld [vmem:[#allocation5 + $0x1d8] ss:$28 sps:$4 sm:$0xff]   ;;  %v5274_v28 = vld [vmem:[#allocation5 + $0x10] ss:$28 sps:$4 sm:$0xff]  }
 0x3f1   :  { %3659 = vmatprep.subr.bf16.mxu0 %v5204_v16  ;;  %3741 = vmatprep.subr.bf16.mxu1 %v5207_v29  ;;  %v5935_v16 = vpack.c.bf16 %v2159_v22, %v2159_v22  ;;  %v5278_v29 = vld [vmem:[#allocation5 + $0x18] ss:$28 sps:$4 sm:$0xff]   ;;  %v5341_v22 = vld [vmem:[#allocation5 + $0x2ec] ss:$28 sps:$4 sm:$0xff]  }
 0x3f4   :  { %3660 = vmatpush1.bf16.msra.mxu0 %v5202_v30  ;;  %3742 = vmatpush1.bf16.msra.mxu1 %v5205_v31  ;;  %v5281_v30 = vld [vmem:[#allocation5 + $0x4c] ss:$28 sps:$4 sm:$0xff]  }
 0x3f5   :  { %3661 = vmatprep.subr.bf16.mxu0 %v5210_v32  ;;  %3743 = vmatprep.subr.bf16.mxu1 %v5213_v33  ;;  %v5282_v31 = vld [vmem:[#allocation5 + $0x210] ss:$28 sps:$4 sm:$0xff]   ;;  %v5286_v33 = vld [vmem:[#allocation5 + $0x84] ss:$28 sps:$4 sm:$0xff]  }
 0x3f6   :  { %v5283_v32 = vld [vmem:[#allocation5 + $0x50] ss:$28 sps:$4 sm:$0xff]  }
 0x3f8   :  { %3662 = vmatpush1.bf16.msra.mxu0 %v5208_v34  ;;  %3744 = vmatpush1.bf16.msra.mxu1 %v5211_v35  ;;  %v5287_v34 = vld [vmem:[#allocation5 + $0x248] ss:$28 sps:$4 sm:$0xff]   ;;  %v5284_v35 = vld [vmem:[#allocation5 + $0x80] ss:$28 sps:$4 sm:$0xff]  }
 0x3f9   :  { %3663 = vmatprep.subr.bf16.mxu0 %v5216_v36  ;;  %3745 = vmatprep.subr.bf16.mxu1 %v5219_v37  ;;  %v5288_v36 = vld [vmem:[#allocation5 + $0x88] ss:$28 sps:$4 sm:$0xff]   ;;  %v5291_v37 = vld [vmem:[#allocation5 + $0xbc] ss:$28 sps:$4 sm:$0xff]  }
 0x3fc   :  { %3664 = vmatpush1.bf16.msra.mxu0 %v5214_v38  ;;  %3746 = vmatpush1.bf16.msra.mxu1 %v5217_v41  ;;  %v5292_v38 = vld [vmem:[#allocation5 + $0x280] ss:$28 sps:$4 sm:$0xff]   ;;  %v5289_v41 = vld [vmem:[#allocation5 + $0xb8] ss:$28 sps:$4 sm:$0xff]  }
 0x3fd   :  { %3665 = vmatprep.subr.bf16.mxu0 %v5222_v42  ;;  %3747 = vmatprep.subr.bf16.mxu1 %v5225_v43  ;;  %v5293_v42 = vld [vmem:[#allocation5 + $0xc0] ss:$28 sps:$4 sm:$0xff]   ;;  %v5296_v43 = vld [vmem:[#allocation5 + $0xf4] ss:$28 sps:$4 sm:$0xff]  }
 0x400   :  { %3666 = vmatpush1.bf16.msra.mxu0 %v5220_v44  ;;  %3748 = vmatpush1.bf16.msra.mxu1 %v5223_v17  ;;  %v5294_v44 = vld [vmem:[#allocation5 + $0xf0] ss:$28 sps:$4 sm:$0xff]   ;;  %v5298_v17 = vld [vmem:[#allocation5 + $0xf8] ss:$28 sps:$4 sm:$0xff]  }
 0x401   :  { %3667 = vmatprep.subr.bf16.mxu0 %v5228_v45  ;;  %3749 = vmatprep.subr.bf16.mxu1 %v5231_v46  ;;  %v5301_v45 = vld [vmem:[#allocation5 + $0x12c] ss:$28 sps:$4 sm:$0xff]  }
 0x402   :  { %v5302_v46 = vld [vmem:[#allocation5 + $0x2f0] ss:$28 sps:$4 sm:$0xff]  }
 0x404   :  { %3668 = vmatpush1.bf16.msra.mxu0 %v5226_v0  ;;  %3750 = vmatpush1.bf16.msra.mxu1 %v5229_v47  ;;  %v5299_v0 = vld [vmem:[#allocation5 + $0x128] ss:$28 sps:$4 sm:$0xff]   ;;  %v5303_v47 = vld [vmem:[#allocation5 + $0x130] ss:$28 sps:$4 sm:$0xff]  }
 0x405   :  { %3669 = vmatprep.subr.bf16.mxu0 %v5234_v48  ;;  %3751 = vmatprep.subr.bf16.mxu1 %v5237_v49  ;;  %v5306_v48 = vld [vmem:[#allocation5 + $0x164] ss:$28 sps:$4 sm:$0xff]  }
 0x406   :  { %v5307_v49 = vld [vmem:[#allocation5 + $0x328] ss:$28 sps:$4 sm:$0xff]  }
 0x408   :  { %3670 = vmatpush1.bf16.msra.mxu0 %v5232_v50  ;;  %3752 = vmatpush1.bf16.msra.mxu1 %v5235_v51  ;;  %v5304_v50 = vld [vmem:[#allocation5 + $0x160] ss:$28 sps:$4 sm:$0xff]   ;;  %v5308_v51 = vld [vmem:[#allocation5 + $0x168] ss:$28 sps:$4 sm:$0xff]  }
 0x409   :  { %3671 = vmatprep.subr.bf16.mxu0 %v5240_v52  ;;  %3753 = vmatprep.subr.bf16.mxu1 %v5243_v53  ;;  %v5311_v52 = vld [vmem:[#allocation5 + $0x19c] ss:$28 sps:$4 sm:$0xff]  }
 0x40a   :  { %v5312_v53 = vld [vmem:[#allocation5 + $0x360] ss:$28 sps:$4 sm:$0xff]  }
 0x40c   :  { %3672 = vmatpush1.bf16.msra.mxu0 %v5238_v54  ;;  %3754 = vmatpush1.bf16.msra.mxu1 %v5241_v56  ;;  %v5309_v54 = vld [vmem:[#allocation5 + $0x198] ss:$28 sps:$4 sm:$0xff]   ;;  %v5313_v56 = vld [vmem:[#allocation5 + $0x1a0] ss:$28 sps:$4 sm:$0xff]  }
 0x40d   :  { %3673 = vmatprep.subr.bf16.mxu0 %v5246_v57  ;;  %3755 = vmatprep.subr.bf16.mxu1 %v5249_v58  ;;  %v5316_v57 = vld [vmem:[#allocation5 + $0x1d4] ss:$28 sps:$4 sm:$0xff]  }
 0x40e   :  { %v5317_v58 = vld [vmem:[#allocation5 + $0x558] ss:$28 sps:$4 sm:$0xff]  }
 0x410   :  { %3674 = vmatpush1.bf16.msra.mxu0 %v5244_v60  ;;  %3756 = vmatpush1.bf16.msra.mxu1 %v5247_v61  ;;  %v5314_v60 = vld [vmem:[#allocation5 + $0x1d0] ss:$28 sps:$4 sm:$0xff]   ;;  %v5318_v61 = vld [vmem:[#allocation5 + $0x398] ss:$28 sps:$4 sm:$0xff]  }
 0x411   :  { %3675 = vmatprep.subr.bf16.mxu0 %v5252_v62  ;;  %3757 = vmatprep.subr.bf16.mxu1 %v5255_v63  ;;  %v5321_v62 = vld [vmem:[#allocation5 + $0x20c] ss:$28 sps:$4 sm:$0xff]  }
 0x412   :  { %v5322_v63 = vld [vmem:[#allocation5 + $0x590] ss:$28 sps:$4 sm:$0xff]  }
 0x414   :  { %3676 = vmatpush1.bf16.msra.mxu0 %v5250_v1  ;;  %3758 = vmatpush1.bf16.msra.mxu1 %v5253_v3  ;;  %v5319_v1 = vld [vmem:[#allocation5 + $0x208] ss:$28 sps:$4 sm:$0xff]   ;;  %v5323_v3 = vld [vmem:[#allocation5 + $0x3d0] ss:$28 sps:$4 sm:$0xff]  }
 0x415   :  { %3677 = vmatprep.subr.bf16.mxu0 %v5258_v4  ;;  %3759 = vmatprep.subr.bf16.mxu1 %v5261_v6  ;;  %v5326_v4 = vld [vmem:[#allocation5 + $0x244] ss:$28 sps:$4 sm:$0xff]  }
 0x416   :  { %v5327_v6 = vld [vmem:[#allocation5 + $0x5c8] ss:$28 sps:$4 sm:$0xff]  }
 0x418   :  { %3678 = vmatpush1.bf16.msra.mxu0 %v5256_v7  ;;  %3760 = vmatpush1.bf16.msra.mxu1 %v5259_v8  ;;  %v5324_v7 = vld [vmem:[#allocation5 + $0x240] ss:$28 sps:$4 sm:$0xff]   ;;  %v5328_v8 = vld [vmem:[#allocation5 + $0x408] ss:$28 sps:$4 sm:$0xff]  }
 0x419   :  { %3679 = vmatprep.subr.bf16.mxu0 %v5264_v5  ;;  %3761 = vmatprep.subr.bf16.mxu1 %v5267_v10  ;;  %v5331_v5 = vld [vmem:[#allocation5 + $0x27c] ss:$28 sps:$4 sm:$0xff]  }
 0x41a   :  { %v5332_v10 = vld [vmem:[#allocation5 + $0x600] ss:$28 sps:$4 sm:$0xff]  }
 0x41c   :  { %3680 = vmatpush1.bf16.msra.mxu0 %v5262_v12  ;;  %3762 = vmatpush1.bf16.msra.mxu1 %v5265_v55  ;;  %v5329_v12 = vld [vmem:[#allocation5 + $0x278] ss:$28 sps:$4 sm:$0xff]   ;;  %v5333_v55 = vld [vmem:[#allocation5 + $0x440] ss:$28 sps:$4 sm:$0xff]  }
 0x41d   :  { %3681 = vmatprep.subr.bf16.mxu0 %v5270_v13  ;;  %3763 = vmatprep.subr.bf16.mxu1 %v5273_v18  ;;  %v5336_v13 = vld [vmem:[#allocation5 + $0x2b4] ss:$28 sps:$4 sm:$0xff]  }
 0x41e   :  { %v5337_v18 = vld [vmem:[#allocation5 + $0x638] ss:$28 sps:$4 sm:$0xff]  }
 0x420   :  { %3682 = vmatpush1.bf16.msra.mxu0 %v5268_v20  ;;  %3764 = vmatpush1.bf16.msra.mxu1 %v5271_v21  ;;  %v5334_v20 = vld [vmem:[#allocation5 + $0x2b0] ss:$28 sps:$4 sm:$0xff]   ;;  %v5338_v21 = vld [vmem:[#allocation5 + $0x478] ss:$28 sps:$4 sm:$0xff]  }
 0x421   :  { %3774 = vmatprep.subr.bf16.mxu0 %v5276_v23  ;;  %4573 = vmatprep.subr.bf16.mxu1 %v5277_v26  ;;  %v5342_v23 = vld [vmem:[#allocation5 + $0x670] ss:$28 sps:$4 sm:$0xff]   ;;  %v5339_v26 = vld [vmem:[#allocation5 + $0x2e8] ss:$28 sps:$4 sm:$0xff]  }
 0x423   :  { %3684 = vmatmul.mubr.bf16.vlgmr.msra.gmra.mrb[8].mxu0 %v5935_v16  ;;  %3766 = vmatmul.mubr.bf16.vlgmr.msra.gmra.mrb[12].mxu1 %v5935_v16 }
 0x424   :  { %3775 = vmatpush1.bf16.msra.mxu0 %v5274_v28  ;;  %3806 = vmatprep.mubr.bf16.mxu0 %v5922_v59  ;;  %v5343_v28 = vld [vmem:[#allocation5 + $0x4b0] ss:$28 sps:$4 sm:$0xff]  }
 0x425   :  { %4574 = vmatpush3.bf16.msra.mxu1 %v5278_v29  ;;  %3888 = vmatprep.mubr.bf16.mxu1 %v5922_v59  ;;  %v5297_v59 = vld [vmem:[#allocation5 + $0x2b8] ss:$28 sps:$4 sm:$0xff]   ;;  %v5346_v29 = vld [vmem:[#allocation5 + $0x324] ss:$28 sps:$4 sm:$0xff]  }
 0x426   :  { %3776 = vmatprep.subr.bf16.mxu0 %v5281_v30  ;;  %4575 = vmatprep.subr.bf16.mxu1 %v5282_v31  ;;  %v5347_v30 = vld [vmem:[#allocation5 + $0x6a8] ss:$28 sps:$4 sm:$0xff]   ;;  %v5344_v31 = vld [vmem:[#allocation5 + $0x320] ss:$28 sps:$4 sm:$0xff]  }
 0x428   :  { %3777 = vmatpush1.bf16.msra.mxu0 %v5279_v2  ;;  %v5348_v2 = vld [vmem:[#allocation5 + $0x4e8] ss:$28 sps:$4 sm:$0xff]  }
 0x429   :  { %4576 = vmatpush3.bf16.msra.mxu1 %v5283_v32  ;;  %3778 = vmatprep.subr.bf16.mxu0 %v5286_v33  ;;  %v5351_v32 = vld [vmem:[#allocation5 + $0x35c] ss:$28 sps:$4 sm:$0xff]  }
 0x42a   :  { %4577 = vmatprep.subr.bf16.mxu1 %v5287_v34  ;;  %v5352_v33 = vld [vmem:[#allocation5 + $0x6e0] ss:$28 sps:$4 sm:$0xff]   ;;  %v5349_v34 = vld [vmem:[#allocation5 + $0x358] ss:$28 sps:$4 sm:$0xff]  }
 0x42c   :  { %3779 = vmatpush1.bf16.msra.mxu0 %v5284_v35  ;;  %v5353_v35 = vld [vmem:[#allocation5 + $0x520] ss:$28 sps:$4 sm:$0xff]  }
 0x42d   :  { %4578 = vmatpush3.bf16.msra.mxu1 %v5288_v36  ;;  %3780 = vmatprep.subr.bf16.mxu0 %v5291_v37  ;;  %v5356_v36 = vld [vmem:[#allocation5 + $0x394] ss:$28 sps:$4 sm:$0xff]  }
 0x42e   :  { %4579 = vmatprep.subr.bf16.mxu1 %v5292_v38  ;;  %v5354_v37 = vld [vmem:[#allocation5 + $0x390] ss:$28 sps:$4 sm:$0xff]  }
 0x42f   :  { %v5359_v38 = vld [vmem:[#allocation5 + $0x3cc] ss:$28 sps:$4 sm:$0xff]  }
 0x430   :  { %3781 = vmatpush1.bf16.msra.mxu0 %v5289_v41  ;;  %v5357_v41 = vld [vmem:[#allocation5 + $0x3c8] ss:$28 sps:$4 sm:$0xff]  }
 0x431   :  { %4580 = vmatpush3.bf16.msra.mxu1 %v5293_v42  ;;  %3782 = vmatprep.subr.bf16.mxu0 %v5296_v43  ;;  %v5362_v42 = vld [vmem:[#allocation5 + $0x404] ss:$28 sps:$4 sm:$0xff]  }
 0x432   :  { %4581 = vmatprep.subr.bf16.mxu1 %v5297_v59  ;;  %v5360_v43 = vld [vmem:[#allocation5 + $0x400] ss:$28 sps:$4 sm:$0xff]  }
 0x433   :  { %v5365_v59 = vld [vmem:[#allocation5 + $0x43c] ss:$28 sps:$4 sm:$0xff]  }
 0x434   :  { %3783 = vmatpush1.bf16.msra.mxu0 %v5294_v44 }
 0x435   :  { %4582 = vmatpush3.bf16.msra.mxu1 %v5298_v17  ;;  %3784 = vmatprep.subr.bf16.mxu0 %v5301_v45  ;;  %v5368_v17 = vld [vmem:[#allocation5 + $0x474] ss:$28 sps:$4 sm:$0xff]  }
 0x436   :  { %4583 = vmatprep.subr.bf16.mxu1 %v5302_v46  ;;  %v5366_v45 = vld [vmem:[#allocation5 + $0x470] ss:$28 sps:$4 sm:$0xff]   ;;  %v5369_v46 = vld [vmem:[#allocation5 + $0x4a8] ss:$28 sps:$4 sm:$0xff]  }
 0x438   :  { %3785 = vmatpush1.bf16.msra.mxu0 %v5299_v0  ;;  %v5374_v0 = vld [vmem:[#allocation5 + $0x4e4] ss:$28 sps:$4 sm:$0xff]  }
 0x439   :  { %4584 = vmatpush3.bf16.msra.mxu1 %v5303_v47  ;;  %3786 = vmatprep.subr.bf16.mxu0 %v5306_v48  ;;  %v5372_v47 = vld [vmem:[#allocation5 + $0x4e0] ss:$28 sps:$4 sm:$0xff]  }
 0x43a   :  { %4585 = vmatprep.subr.bf16.mxu1 %v5307_v49  ;;  %v5377_v48 = vld [vmem:[#allocation5 + $0x51c] ss:$28 sps:$4 sm:$0xff]  }
 0x43b   :  { %v5375_v49 = vld [vmem:[#allocation5 + $0x518] ss:$28 sps:$4 sm:$0xff]  }
 0x43c   :  { %3787 = vmatpush1.bf16.msra.mxu0 %v5304_v50  ;;  %v5380_v50 = vld [vmem:[#allocation5 + $0x554] ss:$28 sps:$4 sm:$0xff]  }
 0x43d   :  { %4586 = vmatpush3.bf16.msra.mxu1 %v5308_v51  ;;  %3788 = vmatprep.subr.bf16.mxu0 %v5311_v52  ;;  %v5378_v51 = vld [vmem:[#allocation5 + $0x550] ss:$28 sps:$4 sm:$0xff]  }
 0x43e   :  { %4587 = vmatprep.subr.bf16.mxu1 %v5312_v53  ;;  %v5383_v52 = vld [vmem:[#allocation5 + $0x58c] ss:$28 sps:$4 sm:$0xff]  }
 0x43f   :  { %v5381_v53 = vld [vmem:[#allocation5 + $0x588] ss:$28 sps:$4 sm:$0xff]  }
 0x440   :  { %3789 = vmatpush1.bf16.msra.mxu0 %v5309_v54  ;;  %v5386_v54 = vld [vmem:[#allocation5 + $0x5c4] ss:$28 sps:$4 sm:$0xff]  }
 0x441   :  { %4588 = vmatpush3.bf16.msra.mxu1 %v5313_v56  ;;  %3790 = vmatprep.subr.bf16.mxu0 %v5316_v57  ;;  %v5384_v56 = vld [vmem:[#allocation5 + $0x5c0] ss:$28 sps:$4 sm:$0xff]  }
 0x442   :  { %4595 = vmatprep.subr.bf16.mxu1 %v5317_v58  ;;  %v5389_v57 = vld [vmem:[#allocation5 + $0x5fc] ss:$28 sps:$4 sm:$0xff]  }
 0x443   :  { %v5387_v58 = vld [vmem:[#allocation5 + $0x5f8] ss:$28 sps:$4 sm:$0xff]  }
 0x444   :  { %3889 = vmatmul.mubr.bf16.vlgmr.msra.gmra.mrb[16].mxu1 %v5924_v9  ;;  %3791 = vmatpush1.bf16.msra.mxu0 %v5314_v60  ;;  %v5392_v60 = vld [vmem:[#allocation5 + $0x634] ss:$28 sps:$4 sm:$0xff]  }
 0x445   :  { %4596 = vmatpush3.bf16.msra.mxu1 %v5318_v61  ;;  %3928 = vmatprep.mubr.bf16.mxu1 %v5930_v11  ;;  %v5390_v61 = vld [vmem:[#allocation5 + $0x630] ss:$28 sps:$4 sm:$0xff]  }
 0x446   :  { %3792 = vmatprep.subr.bf16.mxu0 %v5321_v62  ;;  %4597 = vmatprep.subr.bf16.mxu1 %v5322_v63  ;;  %v5395_v62 = vld [vmem:[#allocation5 + $0x66c] ss:$28 sps:$4 sm:$0xff]  }
 0x447   :  { %v5393_v63 = vld [vmem:[#allocation5 + $0x668] ss:$28 sps:$4 sm:$0xff]  }
 0x448   :  { %3793 = vmatpush1.bf16.msra.mxu0 %v5319_v1  ;;  %v5398_v1 = vld [vmem:[#allocation5 + $0x6a4] ss:$28 sps:$4 sm:$0xff]  }
 0x449   :  { %4598 = vmatpush3.bf16.msra.mxu1 %v5323_v3  ;;  %3794 = vmatprep.subr.bf16.mxu0 %v5326_v4  ;;  %v5396_v3 = vld [vmem:[#allocation5 + $0x6a0] ss:$28 sps:$4 sm:$0xff]  }
 0x44a   :  { %4599 = vmatprep.subr.bf16.mxu1 %v5327_v6  ;;  %v5401_v4 = vld [vmem:[#allocation5 + $0x6dc] ss:$28 sps:$4 sm:$0xff]  }
 0x44b   :  { %v5399_v6 = vld [vmem:[#allocation5 + $0x6d8] ss:$28 sps:$4 sm:$0xff]  }
 0x44c   :  { %3795 = vmatpush1.bf16.msra.mxu0 %v5324_v7  ;;  %v5953_v7 = vld [vmem:[%s5993_s9] sm:$0xff]  ;;  %s5515_s9 = smov [#allocation7]  }
 0x44d   :  { %4600 = vmatpush3.bf16.msra.mxu1 %v5328_v8  ;;  %3796 = vmatprep.subr.bf16.mxu0 %v5331_v5  ;;  %v2426_v8 = vrot.slane %v5953_v7, %v5849_v25  ;;  %v2434_v5 = vrot.slane %v5953_v7, %v5862_v39  ;;  %s4017_s1 = sshll.u32 %s5515_s9, 4  ;;  %s4018_s1 = int_to_ptr.vmem [resolvable:$true] %s4017_s1 }
 0x44e   :  { %4601 = vmatprep.subr.bf16.mxu1 %v5332_v10  ;;  %v2430_v10 = vrot.slane %v5953_v7, %v5855_v27  ;;  %s5477_s18 = scalar_lea.vmem %s4018_s1, 448  ;;  %p5482_p3 = scmp.lt.s32.totalorder %s4018_s1, %s4018_s1 }
 0x44f   :  { %p5478_p2 = scmp.ne.s32.totalorder %s4018_s1, %s5477_s18  ;;  %p5483_p4 = scmp.lt.s32.totalorder %s5477_s18, %s5477_s18 }
 0x450   :  { %3797 = vmatpush1.bf16.msra.mxu0 %v5329_v12  ;;  %v2438_v12 = vrot.slane %v5953_v7, %v5865_v40 }
 0x451   :  { %4602 = vmatpush3.bf16.msra.mxu1 %v5333_v55  ;;  %3798 = vmatprep.subr.bf16.mxu0 %v5336_v13  ;;  %p5484_p5 = por %p5483_p4, %p5482_p3 }
 0x452   :  { %4603 = vmatprep.subr.bf16.mxu1 %v5337_v18 }
 0x453   :  { %p5485_p6 = pnand %p5484_p5, %p5478_p2 }
 0x454   :  { %3799 = vmatpush1.bf16.msra.mxu0 %v5334_v20 }
 0x455   :  { %4604 = vmatpush3.bf16.msra.mxu1 %v5338_v21  ;;  %3800 = vmatprep.subr.bf16.mxu0 %v5341_v22 }
 0x456   :  { %4605 = vmatprep.subr.bf16.mxu1 %v5342_v23 }
 0x458   :  { %3801 = vmatpush1.bf16.msra.mxu0 %v5339_v26 }
 0x459   :  { %4606 = vmatpush3.bf16.msra.mxu1 %v5343_v28  ;;  %3802 = vmatprep.subr.bf16.mxu0 %v5346_v29 }
 0x45a   :  { %4607 = vmatprep.subr.bf16.mxu1 %v5347_v30 }
 0x45c   :  { %3803 = vmatpush1.bf16.msra.mxu0 %v5344_v31 }
 0x45d   :  { %4608 = vmatpush3.bf16.msra.mxu1 %v5348_v2  ;;  %3804 = vmatprep.subr.bf16.mxu0 %v5351_v32 }
 0x45e   :  { %4609 = vmatprep.subr.bf16.mxu1 %v5352_v33 }
 0x460   :  { %3805 = vmatpush1.bf16.msra.mxu0 %v5349_v34 }
 0x461   :  { %4610 = vmatpush3.bf16.msra.mxu1 %v5353_v35  ;;  %3815 = vmatprep.subr.bf16.mxu0 %v5356_v36 }
 0x463   :  { %3807 = vmatmul.mubr.bf16.vlgmr.msra.gmra.mrb[12].mxu0 %v5924_v9  ;;  %v5363_v9 = vld [vmem:[#allocation5 + $0x438] ss:$28 sps:$4 sm:$0xff]  }
 0x464   :  { %3929 = vmatmul.mubr.bf16.vlgmr.msra.gmra.mrb[20].mxu1 %v5935_v16  ;;  %3816 = vmatpush1.bf16.msra.mxu0 %v5354_v37 }
 0x465   :  { %3847 = vmatprep.mubr.bf16.mxu0 %v5930_v11  ;;  %3817 = vmatprep.subr.bf16.mxu0 %v5359_v38  ;;  %v5371_v11 = vld [vmem:[#allocation5 + $0x4ac] ss:$28 sps:$4 sm:$0xff]  }
 0x468   :  { %3818 = vmatpush1.bf16.msra.mxu0 %v5357_v41 }
 0x469   :  { %3819 = vmatprep.subr.bf16.mxu0 %v5362_v42 }
 0x46a   :  { %v2033_v44 = vpop.xlane.xlu0 %2032 }
 0x46b   :  { %2035 = vst.msk [vmem:[%s5995_s11] sm:$0xff] %vm2034_vm1, %v2033_v44 }
 0x46c   :  { %3820 = vmatpush1.bf16.msra.mxu0 %v5360_v43 }
 0x46d   :  { %3821 = vmatprep.subr.bf16.mxu0 %v5365_v59 }
 0x470   :  { %3822 = vmatpush1.bf16.msra.mxu0 %v5363_v9 }
 0x471   :  { %3823 = vmatprep.subr.bf16.mxu0 %v5368_v17 }
 0x474   :  { %3824 = vmatpush1.bf16.msra.mxu0 %v5366_v45 }
 0x475   :  { %3825 = vmatprep.subr.bf16.mxu0 %v5371_v11 }
 0x478   :  { %3826 = vmatpush1.bf16.msra.mxu0 %v5369_v46 }
 0x479   :  { %3827 = vmatprep.subr.bf16.mxu0 %v5374_v0  ;;  %v2450_v0 = vrot.slane %v5953_v7, %v2057_v15  ;;  %v2446_v15 = vrot.slane %v5953_v7, %v2097_v19 }
 0x47c   :  { %3828 = vmatpush1.bf16.msra.mxu0 %v5372_v47 }
 0x47d   :  { %3829 = vmatprep.subr.bf16.mxu0 %v5377_v48 }
 0x480   :  { %3830 = vmatpush1.bf16.msra.mxu0 %v5375_v49 }
 0x481   :  { %3831 = vmatprep.subr.bf16.mxu0 %v5380_v50 }
 0x484   :  { %3832 = vmatpush1.bf16.msra.mxu0 %v5378_v51 }
 0x485   :  { %3833 = vmatprep.subr.bf16.mxu0 %v5383_v52 }
 0x488   :  { %3834 = vmatpush1.bf16.msra.mxu0 %v5381_v53 }
 0x489   :  { %3835 = vmatprep.subr.bf16.mxu0 %v5386_v54 }
 0x48c   :  { %3836 = vmatpush1.bf16.msra.mxu0 %v5384_v56 }
 0x48d   :  { %3837 = vmatprep.subr.bf16.mxu0 %v5389_v57 }
 0x490   :  { %3838 = vmatpush1.bf16.msra.mxu0 %v5387_v58 }
 0x491   :  { %3839 = vmatprep.subr.bf16.mxu0 %v5392_v60 }
 0x494   :  { %3840 = vmatpush1.bf16.msra.mxu0 %v5390_v61  ;;  %v2442_v61 = vrot.slane %v5953_v7, %v2053_v14 }
 0x495   :  { %3841 = vmatprep.subr.bf16.mxu0 %v5395_v62 }
 0x498   :  { %3842 = vmatpush1.bf16.msra.mxu0 %v5393_v63 }
 0x499   :  { %3843 = vmatprep.subr.bf16.mxu0 %v5398_v1 }
 0x49c   :  { %3844 = vmatpush1.bf16.msra.mxu0 %v5396_v3 }
 0x49d   :  { %3845 = vmatprep.subr.bf16.mxu0 %v5401_v4 }
 0x4a0   :  { %3846 = vmatpush1.bf16.msra.mxu0 %v5399_v6 }
 0x4a3   :  { %3848 = vmatmul.mubr.bf16.vlgmr.msra.gmra.mrb[12].mxu0 %v5935_v16 }
 0x4f6   :  { %v3685_v55 = vpop.f32.mrb[8].mxu0  ;;  %v3767_v13 = vpop.f32.mrb[12].mxu1 }
 0x4f7   :  { %v4687_v16 = vadd.f32 %v3685_v55, %v2426_v8  ;;  %v4689_v18 = vadd.f32 %v3767_v13, %v2434_v5  ;;  %v3687_v20 = vpop.f32.mrb[9].mxu0  ;;  %v3769_v21 = vpop.f32.mrb[13].mxu1 }
 0x4f8   :  { %v4688_v22 = vadd.f32 %v3687_v20, %v2430_v10  ;;  %v4690_v23 = vadd.f32 %v3769_v21, %v2438_v12  ;;  %v3689_v26 = vpop.f32.mrb[10].mxu0  ;;  %v3771_v28 = vpop.f32.mrb[14].mxu1 }
 0x4f9   :  { %v4488_v25 = vmul.f32 -1.442695, %v4687_v16  ;;  %v4490_v29 = vmul.f32 -1.442695, %v4689_v18  ;;  %v3690_v30 = vpop.f32.mrb[11].mxu0  ;;  %v3772_v39 = vpop.f32.mrb[15].mxu1 }
 0x4fa   :  { %v4489_v31 = vmul.f32 -1.442695, %v4688_v22  ;;  %v4491_v2 = vmul.f32 -1.442695, %v4690_v23 }
 0x4fb   :  { %5404 = vpow2.f32 %v4488_v25 }
 0x4fc   :  { %5406 = vpow2.f32 %v4490_v29 }
 0x4fd   :  { %5408 = vpow2.f32 %v4489_v31 }
 0x4fe   :  { %5410 = vpow2.f32 %v4491_v2 }
 0x505   :  { %v5405_v27 = vpop.eup %5404 }
 0x506   :  { %v5407_v40 = vpop.eup %5406  ;;  %v3957_v32 = vadd.f32 1.0, %v5405_v27 }
 0x507   :  { %v5409_v33 = vpop.eup %5408  ;;  %v3959_v34 = vadd.f32 1.0, %v5407_v40 }
 0x508   :  { %v5411_v35 = vpop.eup %5410  ;;  %5412 = vrcp.f32 %v3957_v32  ;;  %v3958_v36 = vadd.f32 1.0, %v5409_v33 }
 0x509   :  { %5414 = vrcp.f32 %v3959_v34  ;;  %v3960_v37 = vadd.f32 1.0, %v5411_v35 }
 0x50a   :  { %5416 = vrcp.f32 %v3958_v36 }
 0x50b   :  { %5418 = vrcp.f32 %v3960_v37 }
 0x512   :  { %v5413_v38 = vpop.eup %5412 }
 0x513   :  { %v5415_v41 = vpop.eup %5414 }
 0x514   :  { %v5417_v42 = vpop.eup %5416 }
 0x515   :  { %v5419_v43 = vpop.eup %5418  ;;  %v4499_v59 = vpack.c.bf16 %v5417_v42, %v5413_v38 }
 0x516   :  { %v4500_v44 = vpack.c.bf16 %v5419_v43, %v5415_v41 }
 0x517   :  { %v4589_v9 = vpop.f32.mrb[16].mxu1  ;;  %4007 = vst [vmem:[#allocation7] sm:$0xff] %v4499_v59 }
 0x518   :  { %v4590_v17 = vpop.f32.mrb[17].mxu1  ;;  %4008 = vst [vmem:[#allocation7 + $0x8] sm:$0xff] %v4500_v44 }
 0x519   :  { %v4591_v45 = vadd.f32 %v4590_v17, %v4589_v9  ;;  %v4592_v11 = vpop.f32.mrb[18].mxu1 }
 0x51a   :  { %v4593_v46 = vpop.f32.mrb[19].mxu1 }
 0x51b   :  { %v3891_v49 = vadd.f32 %v4591_v45, %v2450_v0 }
 0x537   :  { %v4611_v47 = vpop.f32.mrb[20].mxu1 }
 0x538   :  { %v4612_v48 = vpop.f32.mrb[21].mxu1 }
 0x539   :  { %v4613_v50 = vadd.f32 %v4612_v48, %v4611_v47  ;;  %v4614_v51 = vpop.f32.mrb[22].mxu1 }
 0x53a   :  { %v4615_v52 = vpop.f32.mrb[23].mxu1 }
 0x53b   :  { %v3931_v53 = vadd.f32 %v4613_v50, %v3891_v49 }
 0x53d   :  { %v4494_v54 = vmul.f32 -1.442695, %v3931_v53 }
 0x53f   :  { %5420 = vpow2.f32 %v4494_v54 }
 0x549   :  { %v5421_v56 = vpop.eup %5420 }
 0x54a   :  { %v3963_v57 = vadd.f32 1.0, %v5421_v56 }
 0x54c   :  { %5422 = vrcp.f32 %v3963_v57 }
 0x556   :  { %v5423_v58 = vpop.eup %5422 }
 0x557   :  { %v4502_v60 = vpack.c.bf16 %v5423_v58, %v5423_v58 }
 0x559   :  { %4010 = vst [vmem:[#allocation7 + $0x18] sm:$0xf] %v4502_v60 }
 0x576   :  { %v3849_v62 = vpop.f32.mrb[12].mxu0 }
 0x577   :  { %v4691_v63 = vadd.f32 %v3849_v62, %v2442_v61  ;;  %v3851_v1 = vpop.f32.mrb[13].mxu0 }
 0x578   :  { %v4692_v3 = vadd.f32 %v3851_v1, %v2446_v15  ;;  %v3853_v4 = vpop.f32.mrb[14].mxu0 }
 0x579   :  { %v4492_v6 = vmul.f32 -1.442695, %v4691_v63  ;;  %v3854_v8 = vpop.f32.mrb[15].mxu0 }
 0x57a   :  { %v4493_v5 = vmul.f32 -1.442695, %v4692_v3 }
 0x57b   :  { %5424 = vpow2.f32 %v4492_v6 }
 0x57c   :  { %5426 = vpow2.f32 %v4493_v5 }
 0x585   :  { %v5425_v10 = vpop.eup %5424 }
 0x586   :  { %v5427_v12 = vpop.eup %5426  ;;  %v3961_v55 = vadd.f32 1.0, %v5425_v10 }
 0x587   :  { %v3962_v13 = vadd.f32 1.0, %v5427_v12 }
 0x588   :  { %5428 = vrcp.f32 %v3961_v55 }
 0x589   :  { %5430 = vrcp.f32 %v3962_v13 }
 0x592   :  { %v5429_v24 = vpop.eup %5428 }
 0x593   :  { %v5431_v14 = vpop.eup %5430 }
 0x594   :  { %v4501_v19 = vpack.c.bf16 %v5431_v14, %v5429_v24 }
 0x596   :  { %4009 = vst [vmem:[#allocation7 + $0x10] sm:$0xff] %v4501_v19 }
 0x597   :  { %5488 = shalt.err (!%p5485_p6)
}
 0x598   :  { %s5489_s8 = scalar_lea.hbm %s5994_s10, 448 }
 0x599   :  { %p5490_p7 = scmp.ne.s32.totalorder %s5994_s10, %s5489_s8  ;;  %p5493_p8 = scmp.lt.u32.totalorder %s5489_s8, %s5994_s10 }
 0x59b   :  { %p5495_p9 = pnand %p5493_p8, %p5490_p7 }
 0x59d   :  { %5498 = shalt.err (!%p5495_p9)
}
 0x59e   :  { %4020 = dma.vmem_to_hbm [thread:$0]  %s4018_s1, 448, %s5994_s10, [#allocation4]  }
 0x59f   :  { %5503 = dma.done.wait [#allocation4], 448  }
 0x5a0   :  { %5504 = vsyncadd [#allocation4], 4294966848 }
 0x5a1   :  { %4028 = vsyncpa [#allocation3], 1 }
 0x5a2   :  { %4029 = vsyncpa [#allocation6], 1 }
 0x5a3   :  { %4030 = vsyncpa [#allocation4], 1 }

</bundles_post_ra>
